<compile_context>
chip_gen: v5e
topology: v5e:2x2
jax: 0.10.0
libtpu: 0.0.40
codegen_flags: <defaults>
</compile_context>

<pallas_src>
import functools

import jax
import jax.numpy as jnp
from jax.experimental import pallas as pl
from jax.experimental.pallas import tpu as pltpu


_INV_SQRT2 = 0.7071067811865476


# ----------------------------- in-kernel math -------------------------------

def _gelu_erf(x):
    """torch.nn.GELU() default ('none'): 0.5*x*(1+erf(x/sqrt(2))).

    erf via Abramowitz & Stegun 7.1.26 (max abs err ~1.5e-7).  The 1/(1+p|u|) term is seeded on
    the EUP (approx reciprocal, own VLIW slot) and polished with ONE Newton step; exp is also an
    EUP op, so the epilogue leaves the VALU mostly free for the matmul stream.
    """
    a1, a2, a3, a4, a5 = 0.254829592, -0.284496736, 1.421413741, -1.453152027, 1.061405429
    p = 0.3275911
    u = x * _INV_SQRT2
    au = jnp.abs(u)
    d = 1.0 + p * au
    t = pl.reciprocal(d, approx=True)
    t = t * (2.0 - d * t)                       # one Newton step (second dropped per review)
    poly = ((((a5 * t + a4) * t + a3) * t + a2) * t + a1) * t
    mag = 1.0 - poly * jnp.exp(-au * au)        # = erf(|u|), in [0, 1)
    erf = jnp.where(u >= 0.0, mag, -mag)
    return 0.5 * x * (1.0 + erf)


# ----------------------------- Pallas kernel ---------------------------------

def _upsample_block_kernel(x_ref, w1_ref, b1_ref, w2_ref, b2_ref, w3_ref, b3_ref,
                           o_ref, xs_ref, ys_ref, *, W, P, P128, Cin, Cout):
    """Whole UpsampleBlock for one batch sample, fully resident in VMEM.

    x_ref : (1, Cin, P128)        flattened NCHW input (spatial on lanes)
    w1_ref: (9, Cin, Cin)         conv_in taps, [3*dy+dx] = W1[:, :, dy, dx]
    w2_ref: (4*Cout, Cin)         fused ConvTranspose2x2 taps, rows = (i*2+j, co)
    w3_ref: (9, Cout, Cout)       conv_out taps, [3*dy+dx] = W3[:, :, dy, dx]
    b*_ref: (*, 1)                bias columns (f32)
    o_ref : (1, 4*Cout, P128)     rows = (i*2+j, co); pixel = h*W+w of the coarse grid
    xs_ref: (Cin,  P128+2*(W+1))  zero-haloed staging scratch for the input
    ys_ref: (4*Cout, P128+2*(W+1)) zero-haloed staging scratch for the 4 sub-pixel planes
    """
    pad = W + 1                                  # flat halo; covers shifts in [-(W+1), W+1]

    # Column-validity masks for +-1 column shifts.  Row under/overflow lands in the zero halo
    # and needs no mask; the only wrong (row-wrapped) reads are exactly the column-invalid ones.
    lane = jax.lax.broadcasted_iota(jnp.int32, (1, P128), 1)
    col = lane % W
    col_mask = {-1: col >= 1, 0: None, 1: col <= W - 2}

    def shifted(scr_ref, row0, nrows, sy, sx):
        start = pad + sy * W + sx                # static slice: lane-offset load, no HBM traffic
        v = scr_ref[row0:row0 + nrows, start:start + P128]
        m = col_mask[sx]
        return v if m is None else jnp.where(m, v, 0.0)

    # ---- stage the input into the zero-haloed scratch (in-kernel "im2col") ----
    xs_ref[...] = jnp.zeros(xs_ref.shape, xs_ref.dtype)
    xs_ref[:, pad:pad + P128] = x_ref[0]

    # ---- conv_in: 3x3 'same' conv + GELU, 9 accumulated channel matmuls ----
    acc1 = jnp.zeros((Cin, P128), jnp.float32)
    for dy in range(3):
        for dx in range(3):
            acc1 = acc1 + jnp.dot(w1_ref[3 * dy + dx],
                                  shifted(xs_ref, 0, Cin, dy - 1, dx - 1),
                                  preferred_element_type=jnp.float32)
    h1 = _gelu_erf(acc1 + b1_ref[...])

    # ---- conv_up: ConvTranspose2x2/s2 == per-pixel matmul to 4 sub-pixel planes + GELU ----
    y4 = jnp.dot(w2_ref[...], h1.astype(w2_ref.dtype),
                 preferred_element_type=jnp.float32) + b2_ref[...]
    y4 = _gelu_erf(y4)
    if P128 != P:                                # lane-padding pixels must act as halo zeros
        y4 = jnp.where(lane < P, y4, 0.0)
    ys_ref[...] = jnp.zeros(ys_ref.shape, ys_ref.dtype)
    ys_ref[:, pad:pad + P128] = y4.astype(ys_ref.dtype)

    # ---- conv_out: 3x3 'same' conv on the 2x-upsampled image, sub-pixel decomposition ----
    # out[co, 2h+i, 2w+j] = b3 + sum_{dy,dx,c} W3[co,c,dy,dx] * V_{p,q}[c, h+sy, w+sx]
    # with i+dy-1 = 2*sy+p and j+dx-1 = 2*sx+q; V_{p,q} lives in ys rows [(2p+q)*Cout : ...].
    memo = {}

    def vplane(p_sub, q_sub, sy, sx):
        key = (p_sub, q_sub, sy, sx)
        if key not in memo:                      # 16 distinct (plane, shift) reads, reused
            memo[key] = shifted(ys_ref, (2 * p_sub + q_sub) * Cout, Cout, sy, sx)
        return memo[key]

    for i in range(2):
        for j in range(2):
            acc3 = jnp.zeros((Cout, P128), jnp.float32)
            for dy in range(3):
                sy, p_sub = divmod(i + dy - 1, 2)
                for dx in range(3):
                    sx, q_sub = divmod(j + dx - 1, 2)
                    acc3 = acc3 + jnp.dot(w3_ref[3 * dy + dx],
                                          vplane(p_sub, q_sub, sy, sx),
                                          preferred_element_type=jnp.float32)
            z = acc3 + b3_ref[...]
            t = 2 * i + j
            o_ref[0, t * Cout:(t + 1) * Cout, :] = z.astype(o_ref.dtype)


# ------------------------------- JAX wrapper ---------------------------------

def upsample_block_forward(x_nchw, params, *, compute_dtype=None):
    """UpsampleBlock forward.  x_nchw: (N, Cin, H, W) -> (N, Cout, 2H, 2W)."""
    N, Cin, H, W = x_nchw.shape
    w1, b1 = params["conv_in_w"], params["conv_in_b"]
    w2, b2 = params["conv_up_w"], params["conv_up_b"]
    w3, b3 = params["conv_out_w"], params["conv_out_b"]
    Cout = w2.shape[1]

    P = H * W
    P128 = ((P + 127) // 128) * 128              # lane-dense spatial (pad, don't fall back)
    Pext = P128 + 2 * (W + 1)                    # + flat halo for the in-kernel im2col
    out_dtype = x_nchw.dtype
    cdt = jnp.dtype(compute_dtype) if compute_dtype is not None else jnp.dtype(jnp.float32)

    # NCHW -> (N, Cin, H*W): pure reshape (no transpose), spatial on lanes.
    x_flat = x_nchw.reshape(N, Cin, P)
    if P128 != P:
        x_flat = jnp.pad(x_flat, ((0, 0), (0, 0), (0, P128 - P)))
    x_flat = x_flat.astype(cdt)

    # One-time weight re-layouts (tiny): tap-indexed (co, ci) matrices + fused convT taps.
    w1t = jnp.transpose(w1, (2, 3, 0, 1)).reshape(9, Cin, Cin).astype(cdt)     # [3dy+dx](co,ci)
    b1c = b1.reshape(Cin, 1).astype(jnp.float32)
    w2m = jnp.transpose(w2, (2, 3, 1, 0)).reshape(4 * Cout, Cin).astype(cdt)   # rows (i,j,co)
    b2c = jnp.tile(b2, 4).reshape(4 * Cout, 1).astype(jnp.float32)
    w3t = jnp.transpose(w3, (2, 3, 0, 1)).reshape(9, Cout, Cout).astype(cdt)   # [3dy+dx](o,c)
    b3c = b3.reshape(Cout, 1).astype(jnp.float32)

    kernel = functools.partial(_upsample_block_kernel, W=W, P=P, P128=P128,
                               Cin=Cin, Cout=Cout)

    flops = 2 * N * P * (9 * Cin * Cin + Cin * 4 * Cout + 36 * Cout * Cout)
    bytes_acc = (x_flat.size * x_flat.dtype.itemsize
                 + (w1t.size + w2m.size + w3t.size) * jnp.dtype(cdt).itemsize
                 + (b1c.size + b2c.size + b3c.size) * 4
                 + N * 4 * Cout * P128 * jnp.dtype(out_dtype).itemsize)
    cost = pl.CostEstimate(flops=int(flops),
                           transcendentals=int(N * P * (Cin + 4 * Cout)),
                           bytes_accessed=int(bytes_acc))

    def full(shape):
        return pl.BlockSpec(shape, lambda n, _s=shape: (0,) * len(_s))

    out_flat = pl.pallas_call(
        kernel,
        out_shape=jax.ShapeDtypeStruct((N, 4 * Cout, P128), out_dtype),
        grid_spec=pltpu.PrefetchScalarGridSpec(
            num_scalar_prefetch=0,
            grid=(N,),
            in_specs=[
                pl.BlockSpec((1, Cin, P128), lambda n: (n, 0, 0)),
                full((9, Cin, Cin)), full((Cin, 1)),
                full((4 * Cout, Cin)), full((4 * Cout, 1)),
                full((9, Cout, Cout)), full((Cout, 1)),
            ],
            out_specs=pl.BlockSpec((1, 4 * Cout, P128), lambda n: (n, 0, 0)),
            scratch_shapes=[pltpu.VMEM((Cin, Pext), cdt),
                            pltpu.VMEM((4 * Cout, Pext), cdt)],
        ),
        compiler_params=pltpu.CompilerParams(
            dimension_semantics=("parallel",),
            vmem_limit_bytes=48 * 1024 * 1024,   # safe on v7x (64 MiB), useful on v5e/v6e
        ),
        cost_estimate=cost,
    )(x_flat, w1t, b1c, w2m, b2c, w3t, b3c)

    # Final sub-pixel interleave: rows (i, j, co) -> NCHW (co, 2h+i, 2w+j).  This is the only
    # XLA data movement left (one pass over the output tensor).
    out = out_flat[:, :, :P].reshape(N, 2, 2, Cout, H, W)
    out = jnp.transpose(out, (0, 3, 4, 1, 5, 2)).reshape(N, Cout, 2 * H, 2 * W)
    return out.astype(out_dtype)


# ----------------------------- pure-jnp reference ----------------------------

def reference_forward(x, params):
    """Plain-XLA reference replicating the PyTorch module (exact-erf GELU)."""
    hi = jax.lax.Precision.HIGHEST
    gelu = lambda v: jax.nn.gelu(v, approximate=False)

    def conv3x3(inp, w, b):
        n, _, h, wd = inp.shape
        xp = jnp.pad(inp, ((0, 0), (0, 0), (1, 1), (1, 1)))
        out = jnp.zeros((n, w.shape[0], h, wd), jnp.float32) + b.reshape(1, -1, 1, 1)
        for dy in range(3):
            for dx in range(3):
                out = out + jnp.einsum('oc,nchw->nohw', w[:, :, dy, dx],
                                       xp[:, :, dy:dy + h, dx:dx + wd], precision=hi)
        return out

    h = gelu(conv3x3(x, params["conv_in_w"], params["conv_in_b"]))
    w2, b2 = params["conv_up_w"], params["conv_up_b"]
    n, _, hh, ww = h.shape
    cout = w2.shape[1]
    y = jnp.einsum('nchw,coij->nohiwj', h, w2, precision=hi).reshape(n, cout, 2 * hh, 2 * ww)
    y = gelu(y + b2.reshape(1, -1, 1, 1))
    return conv3x3(y, params["conv_out_w"], params["conv_out_b"])


# --------------------------- parameter creation ------------------------------

def init_params(key, in_channels, out_channels):
    """Deterministic synthetic init (torch-style uniform bounds), torch weight layouts."""
    ks = jax.random.split(key, 6)

    def uconv(kw, kb, w_shape, fan_in, b_len):
        bound = 1.0 / (fan_in ** 0.5)
        w = jax.random.uniform(kw, w_shape, jnp.float32, -bound, bound)
        b = jax.random.uniform(kb, (b_len,), jnp.float32, -bound, bound)
        return w, b

    w1, b1 = uconv(ks[0], ks[1], (in_channels, in_channels, 3, 3),
                   in_channels * 9, in_channels)
    w2, b2 = uconv(ks[2], ks[3], (in_channels, out_channels, 2, 2),
                   out_channels * 4, out_channels)
    w3, b3 = uconv(ks[4], ks[5], (out_channels, out_channels, 3, 3),
                   out_channels * 9, out_channels)
    return {
        "conv_in_w": w1, "conv_in_b": b1,
        "conv_up_w": w2, "conv_up_b": b2,
        "conv_out_w": w3, "conv_out_b": b3,
    }


# --------------------------------- main --------------------------------------

if __name__ == "__main__":
    key = jax.random.PRNGKey(0)
    k_x, k_p = jax.random.split(key)

    N, Cin, Cout, H, W = 2, 4, 8, 16, 16
    x = jax.random.normal(k_x, (N, Cin, H, W), jnp.float32)   # NCHW, like PyTorch
    params = init_params(k_p, Cin, Cout)

    fwd = jax.jit(upsample_block_forward)
    out = jax.block_until_ready(fwd(x, params))

    assert out.shape == (N, Cout, 2 * H, 2 * W), out.shape
    assert out.dtype == jnp.float32
    assert bool(jnp.all(jnp.isfinite(out)))

    ref = jax.block_until_ready(jax.jit(reference_forward)(x, params))
    max_err = float(jnp.max(jnp.abs(out - ref)))
    assert max_err < 5e-3, f"kernel/reference mismatch: max abs err {max_err}"

    print("KERNEL_OK")
</pallas_src>

<mosaic_0001>
module attributes {stable_mosaic.version = 11 : i64} {
  func.func @_upsample_block_kernel(%arg0: i32, %arg1: memref<1x4x256xf32, #tpu.memory_space<vmem>>, %arg2: memref<9x4x4xf32, #tpu.memory_space<vmem>>, %arg3: memref<4x1xf32, #tpu.memory_space<vmem>>, %arg4: memref<32x4xf32, #tpu.memory_space<vmem>>, %arg5: memref<32x1xf32, #tpu.memory_space<vmem>>, %arg6: memref<9x8x8xf32, #tpu.memory_space<vmem>>, %arg7: memref<8x1xf32, #tpu.memory_space<vmem>>, %arg8: memref<1x32x256xf32, #tpu.memory_space<vmem>>, %arg9: memref<4x290xf32, #tpu.memory_space<vmem>>, %arg10: memref<32x290xf32, #tpu.memory_space<vmem>>) attributes {dimension_semantics = [#tpu.dimension_semantics<parallel>], iteration_bounds = array<i64: 2>, scalar_prefetch = 0 : i64, scratch_operands = 2 : i64, tpu.core_type = #tpu.core_type<tc>, window_params = [{transform_indices = @transform_0, window_bounds = array<i64: 1, 4, 256>}, {pipeline_mode = #tpu.pipeline_mode<synchronous>, transform_indices = @transform_1, window_bounds = array<i64: 9, 4, 4>}, {pipeline_mode = #tpu.pipeline_mode<synchronous>, transform_indices = @transform_2, window_bounds = array<i64: 4, 1>}, {pipeline_mode = #tpu.pipeline_mode<synchronous>, transform_indices = @transform_3, window_bounds = array<i64: 32, 4>}, {pipeline_mode = #tpu.pipeline_mode<synchronous>, transform_indices = @transform_4, window_bounds = array<i64: 32, 1>}, {pipeline_mode = #tpu.pipeline_mode<synchronous>, transform_indices = @transform_5, window_bounds = array<i64: 9, 8, 8>}, {pipeline_mode = #tpu.pipeline_mode<synchronous>, transform_indices = @transform_6, window_bounds = array<i64: 8, 1>}, {transform_indices = @transform_7, window_bounds = array<i64: 1, 32, 256>}]} {
    %0 = tpu.iota {dimensions = array<i32: 1>} : vector<1x256xi32>
    %c16_i32 = arith.constant 16 : i32
    %c0_i32 = arith.constant 0 : i32
    %1 = arith.cmpi eq, %c16_i32, %c0_i32 : i32
    %c1_i32 = arith.constant 1 : i32
    %2 = arith.select %1, %c1_i32, %c16_i32 : i32
    %3 = vector.broadcast %2 : i32 to vector<1x256xi32>
    %4 = arith.remsi %0, %3 : vector<1x256xi32>
    %c0_i32_0 = arith.constant 0 : i32
    %5 = vector.broadcast %c0_i32_0 : i32 to vector<1x256xi32>
    %6 = arith.cmpi ne, %4, %5 : vector<1x256xi32>
    %c0_i32_1 = arith.constant 0 : i32
    %7 = vector.broadcast %c0_i32_1 : i32 to vector<1x256xi32>
    %8 = arith.cmpi slt, %4, %7 : vector<1x256xi32>
    %c0_i32_2 = arith.constant 0 : i32
    %9 = arith.cmpi slt, %2, %c0_i32_2 : i32
    %10 = vector.broadcast %9 : i1 to vector<1x256xi1>
    %11 = vector.broadcast %10 : vector<1x256xi1> to vector<1x256xi1>
    %12 = arith.xori %8, %11 : vector<1x256xi1>
    %13 = arith.andi %12, %6 : vector<1x256xi1>
    %14 = vector.broadcast %2 : i32 to vector<1x256xi32>
    %15 = arith.addi %4, %14 : vector<1x256xi32>
    %16 = arith.select %13, %15, %4 : vector<1x256xi1>, vector<1x256xi32>
    %c1_i32_3 = arith.constant 1 : i32
    %17 = vector.broadcast %c1_i32_3 : i32 to vector<1x256xi32>
    %18 = arith.cmpi sge, %16, %17 : vector<1x256xi32>
    %c14_i32 = arith.constant 14 : i32
    %19 = vector.broadcast %c14_i32 : i32 to vector<1x256xi32>
    %20 = arith.cmpi sle, %16, %19 : vector<1x256xi32>
    %cst = arith.constant 0.000000e+00 : f32
    %21 = vector.broadcast %cst : f32 to vector<4x290xf32>
    %c0 = arith.constant 0 : index
    %c0_4 = arith.constant 0 : index
    %22 = vector.load %arg9[%c0, %c0_4] : memref<4x290xf32, #tpu.memory_space<vmem>>, vector<4x290xf32>
    tpu.vector_store %arg9[%c0, %c0_4], %21 {strides = array<i32>} : memref<4x290xf32, #tpu.memory_space<vmem>>, vector<4x290xf32>,
    %c0_5 = arith.constant 0 : index
    %c0_6 = arith.constant 0 : index
    %c0_7 = arith.constant 0 : index
    %23 = vector.load %arg1[%c0_5, %c0_6, %c0_7] : memref<1x4x256xf32, #tpu.memory_space<vmem>>, vector<1x4x256xf32>
    %24 = vector.shape_cast %23 : vector<1x4x256xf32> to vector<4x256xf32>
    %c0_8 = arith.constant 0 : index
    %c17 = arith.constant 17 : index
    %25 = vector.load %arg9[%c0_8, %c17] : memref<4x290xf32, #tpu.memory_space<vmem>>, vector<4x256xf32>
    tpu.vector_store %arg9[%c0_8, %c17], %24 {strides = array<i32>} : memref<4x290xf32, #tpu.memory_space<vmem>>, vector<4x256xf32>,
    %cst_9 = arith.constant 0.000000e+00 : f32
    %26 = vector.broadcast %cst_9 : f32 to vector<4x256xf32>
    %c0_10 = arith.constant 0 : index
    %c0_11 = arith.constant 0 : index
    %c0_12 = arith.constant 0 : index
    %27 = vector.load %arg2[%c0_10, %c0_11, %c0_12] : memref<9x4x4xf32, #tpu.memory_space<vmem>>, vector<1x4x4xf32>
    %28 = vector.shape_cast %27 : vector<1x4x4xf32> to vector<4x4xf32>
    %c0_13 = arith.constant 0 : index
    %c0_14 = arith.constant 0 : index
    %29 = vector.load %arg9[%c0_13, %c0_14] : memref<4x290xf32, #tpu.memory_space<vmem>>, vector<4x256xf32>
    %cst_15 = arith.constant 0.000000e+00 : f32
    %30 = vector.shape_cast %18 : vector<1x256xi1> to vector<1x256xi1>
    %31 = vector.broadcast %30 : vector<1x256xi1> to vector<4x256xi1>
    %32 = vector.broadcast %cst_15 : f32 to vector<4x256xf32>
    %33 = arith.select %31, %29, %32 : vector<4x256xi1>, vector<4x256xf32>
    %cst_16 = arith.constant dense<0.000000e+00> : vector<4x256xf32>
    %34 = tpu.matmul %28, %33, %cst_16 {dimension_numbers = #tpu.dot_dimension_numbers<[1], [0], [0], [1], [0, 0, 1, 1], [], []>} : vector<4x4xf32>, vector<4x256xf32>, vector<4x256xf32> -> vector<4x256xf32>
    %35 = arith.addf %26, %34 : vector<4x256xf32>
    %c1 = arith.constant 1 : index
    %c0_17 = arith.constant 0 : index
    %c0_18 = arith.constant 0 : index
    %36 = vector.load %arg2[%c1, %c0_17, %c0_18] : memref<9x4x4xf32, #tpu.memory_space<vmem>>, vector<1x4x4xf32>
    %37 = vector.shape_cast %36 : vector<1x4x4xf32> to vector<4x4xf32>
    %c0_19 = arith.constant 0 : index
    %c1_20 = arith.constant 1 : index
    %38 = vector.load %arg9[%c0_19, %c1_20] : memref<4x290xf32, #tpu.memory_space<vmem>>, vector<4x256xf32>
    %cst_21 = arith.constant dense<0.000000e+00> : vector<4x256xf32>
    %39 = tpu.matmul %37, %38, %cst_21 {dimension_numbers = #tpu.dot_dimension_numbers<[1], [0], [0], [1], [0, 0, 1, 1], [], []>} : vector<4x4xf32>, vector<4x256xf32>, vector<4x256xf32> -> vector<4x256xf32>
    %40 = arith.addf %35, %39 : vector<4x256xf32>
    %c2 = arith.constant 2 : index
    %c0_22 = arith.constant 0 : index
    %c0_23 = arith.constant 0 : index
    %41 = vector.load %arg2[%c2, %c0_22, %c0_23] : memref<9x4x4xf32, #tpu.memory_space<vmem>>, vector<1x4x4xf32>
    %42 = vector.shape_cast %41 : vector<1x4x4xf32> to vector<4x4xf32>
    %c0_24 = arith.constant 0 : index
    %c2_25 = arith.constant 2 : index
    %43 = vector.load %arg9[%c0_24, %c2_25] : memref<4x290xf32, #tpu.memory_space<vmem>>, vector<4x256xf32>
    %cst_26 = arith.constant 0.000000e+00 : f32
    %44 = vector.shape_cast %20 : vector<1x256xi1> to vector<1x256xi1>
    %45 = vector.broadcast %44 : vector<1x256xi1> to vector<4x256xi1>
    %46 = vector.broadcast %cst_26 : f32 to vector<4x256xf32>
    %47 = arith.select %45, %43, %46 : vector<4x256xi1>, vector<4x256xf32>
    %cst_27 = arith.constant dense<0.000000e+00> : vector<4x256xf32>
    %48 = tpu.matmul %42, %47, %cst_27 {dimension_numbers = #tpu.dot_dimension_numbers<[1], [0], [0], [1], [0, 0, 1, 1], [], []>} : vector<4x4xf32>, vector<4x256xf32>, vector<4x256xf32> -> vector<4x256xf32>
    %49 = arith.addf %40, %48 : vector<4x256xf32>
    %c3 = arith.constant 3 : index
    %c0_28 = arith.constant 0 : index
    %c0_29 = arith.constant 0 : index
    %50 = vector.load %arg2[%c3, %c0_28, %c0_29] : memref<9x4x4xf32, #tpu.memory_space<vmem>>, vector<1x4x4xf32>
    %51 = vector.shape_cast %50 : vector<1x4x4xf32> to vector<4x4xf32>
    %c0_30 = arith.constant 0 : index
    %c16 = arith.constant 16 : index
    %52 = vector.load %arg9[%c0_30, %c16] : memref<4x290xf32, #tpu.memory_space<vmem>>, vector<4x256xf32>
    %cst_31 = arith.constant 0.000000e+00 : f32
    %53 = vector.shape_cast %18 : vector<1x256xi1> to vector<1x256xi1>
    %54 = vector.broadcast %53 : vector<1x256xi1> to vector<4x256xi1>
    %55 = vector.broadcast %cst_31 : f32 to vector<4x256xf32>
    %56 = arith.select %54, %52, %55 : vector<4x256xi1>, vector<4x256xf32>
    %cst_32 = arith.constant dense<0.000000e+00> : vector<4x256xf32>
    %57 = tpu.matmul %51, %56, %cst_32 {dimension_numbers = #tpu.dot_dimension_numbers<[1], [0], [0], [1], [0, 0, 1, 1], [], []>} : vector<4x4xf32>, vector<4x256xf32>, vector<4x256xf32> -> vector<4x256xf32>
    %58 = arith.addf %49, %57 : vector<4x256xf32>
    %c4 = arith.constant 4 : index
    %c0_33 = arith.constant 0 : index
    %c0_34 = arith.constant 0 : index
    %59 = vector.load %arg2[%c4, %c0_33, %c0_34] : memref<9x4x4xf32, #tpu.memory_space<vmem>>, vector<1x4x4xf32>
    %60 = vector.shape_cast %59 : vector<1x4x4xf32> to vector<4x4xf32>
    %c0_35 = arith.constant 0 : index
    %c17_36 = arith.constant 17 : index
    %61 = vector.load %arg9[%c0_35, %c17_36] : memref<4x290xf32, #tpu.memory_space<vmem>>, vector<4x256xf32>
    %cst_37 = arith.constant dense<0.000000e+00> : vector<4x256xf32>
    %62 = tpu.matmul %60, %61, %cst_37 {dimension_numbers = #tpu.dot_dimension_numbers<[1], [0], [0], [1], [0, 0, 1, 1], [], []>} : vector<4x4xf32>, vector<4x256xf32>, vector<4x256xf32> -> vector<4x256xf32>
    %63 = arith.addf %58, %62 : vector<4x256xf32>
    %c5 = arith.constant 5 : index
    %c0_38 = arith.constant 0 : index
    %c0_39 = arith.constant 0 : index
    %64 = vector.load %arg2[%c5, %c0_38, %c0_39] : memref<9x4x4xf32, #tpu.memory_space<vmem>>, vector<1x4x4xf32>
    %65 = vector.shape_cast %64 : vector<1x4x4xf32> to vector<4x4xf32>
    %c0_40 = arith.constant 0 : index
    %c18 = arith.constant 18 : index
    %66 = vector.load %arg9[%c0_40, %c18] : memref<4x290xf32, #tpu.memory_space<vmem>>, vector<4x256xf32>
    %cst_41 = arith.constant 0.000000e+00 : f32
    %67 = vector.shape_cast %20 : vector<1x256xi1> to vector<1x256xi1>
    %68 = vector.broadcast %67 : vector<1x256xi1> to vector<4x256xi1>
    %69 = vector.broadcast %cst_41 : f32 to vector<4x256xf32>
    %70 = arith.select %68, %66, %69 : vector<4x256xi1>, vector<4x256xf32>
    %cst_42 = arith.constant dense<0.000000e+00> : vector<4x256xf32>
    %71 = tpu.matmul %65, %70, %cst_42 {dimension_numbers = #tpu.dot_dimension_numbers<[1], [0], [0], [1], [0, 0, 1, 1], [], []>} : vector<4x4xf32>, vector<4x256xf32>, vector<4x256xf32> -> vector<4x256xf32>
    %72 = arith.addf %63, %71 : vector<4x256xf32>
    %c6 = arith.constant 6 : index
    %c0_43 = arith.constant 0 : index
    %c0_44 = arith.constant 0 : index
    %73 = vector.load %arg2[%c6, %c0_43, %c0_44] : memref<9x4x4xf32, #tpu.memory_space<vmem>>, vector<1x4x4xf32>
    %74 = vector.shape_cast %73 : vector<1x4x4xf32> to vector<4x4xf32>
    %c0_45 = arith.constant 0 : index
    %c32 = arith.constant 32 : index
    %75 = vector.load %arg9[%c0_45, %c32] : memref<4x290xf32, #tpu.memory_space<vmem>>, vector<4x256xf32>
    %cst_46 = arith.constant 0.000000e+00 : f32
    %76 = vector.shape_cast %18 : vector<1x256xi1> to vector<1x256xi1>
    %77 = vector.broadcast %76 : vector<1x256xi1> to vector<4x256xi1>
    %78 = vector.broadcast %cst_46 : f32 to vector<4x256xf32>
    %79 = arith.select %77, %75, %78 : vector<4x256xi1>, vector<4x256xf32>
    %cst_47 = arith.constant dense<0.000000e+00> : vector<4x256xf32>
    %80 = tpu.matmul %74, %79, %cst_47 {dimension_numbers = #tpu.dot_dimension_numbers<[1], [0], [0], [1], [0, 0, 1, 1], [], []>} : vector<4x4xf32>, vector<4x256xf32>, vector<4x256xf32> -> vector<4x256xf32>
    %81 = arith.addf %72, %80 : vector<4x256xf32>
    %c7 = arith.constant 7 : index
    %c0_48 = arith.constant 0 : index
    %c0_49 = arith.constant 0 : index
    %82 = vector.load %arg2[%c7, %c0_48, %c0_49] : memref<9x4x4xf32, #tpu.memory_space<vmem>>, vector<1x4x4xf32>
    %83 = vector.shape_cast %82 : vector<1x4x4xf32> to vector<4x4xf32>
    %c0_50 = arith.constant 0 : index
    %c33 = arith.constant 33 : index
    %84 = vector.load %arg9[%c0_50, %c33] : memref<4x290xf32, #tpu.memory_space<vmem>>, vector<4x256xf32>
    %cst_51 = arith.constant dense<0.000000e+00> : vector<4x256xf32>
    %85 = tpu.matmul %83, %84, %cst_51 {dimension_numbers = #tpu.dot_dimension_numbers<[1], [0], [0], [1], [0, 0, 1, 1], [], []>} : vector<4x4xf32>, vector<4x256xf32>, vector<4x256xf32> -> vector<4x256xf32>
    %86 = arith.addf %81, %85 : vector<4x256xf32>
    %c8 = arith.constant 8 : index
    %c0_52 = arith.constant 0 : index
    %c0_53 = arith.constant 0 : index
    %87 = vector.load %arg2[%c8, %c0_52, %c0_53] : memref<9x4x4xf32, #tpu.memory_space<vmem>>, vector<1x4x4xf32>
    %88 = vector.shape_cast %87 : vector<1x4x4xf32> to vector<4x4xf32>
    %c0_54 = arith.constant 0 : index
    %c34 = arith.constant 34 : index
    %89 = vector.load %arg9[%c0_54, %c34] : memref<4x290xf32, #tpu.memory_space<vmem>>, vector<4x256xf32>
    %cst_55 = arith.constant 0.000000e+00 : f32
    %90 = vector.shape_cast %20 : vector<1x256xi1> to vector<1x256xi1>
    %91 = vector.broadcast %90 : vector<1x256xi1> to vector<4x256xi1>
    %92 = vector.broadcast %cst_55 : f32 to vector<4x256xf32>
    %93 = arith.select %91, %89, %92 : vector<4x256xi1>, vector<4x256xf32>
    %cst_56 = arith.constant dense<0.000000e+00> : vector<4x256xf32>
    %94 = tpu.matmul %88, %93, %cst_56 {dimension_numbers = #tpu.dot_dimension_numbers<[1], [0], [0], [1], [0, 0, 1, 1], [], []>} : vector<4x4xf32>, vector<4x256xf32>, vector<4x256xf32> -> vector<4x256xf32>
    %95 = arith.addf %86, %94 : vector<4x256xf32>
    %c0_57 = arith.constant 0 : index
    %c0_58 = arith.constant 0 : index
    %96 = vector.load %arg3[%c0_57, %c0_58] : memref<4x1xf32, #tpu.memory_space<vmem>>, vector<4x1xf32>
    %97 = vector.broadcast %96 : vector<4x1xf32> to vector<4x256xf32>
    %98 = arith.addf %95, %97 : vector<4x256xf32>
    %cst_59 = arith.constant 0.707106769 : f32
    %99 = vector.broadcast %cst_59 : f32 to vector<4x256xf32>
    %100 = arith.mulf %98, %99 : vector<4x256xf32>
    %101 = math.absf %100 : vector<4x256xf32>
    %cst_60 = arith.constant 0.327591091 : f32
    %102 = vector.broadcast %cst_60 : f32 to vector<4x256xf32>
    %103 = arith.mulf %102, %101 : vector<4x256xf32>
    %cst_61 = arith.constant 1.000000e+00 : f32
    %104 = vector.broadcast %cst_61 : f32 to vector<4x256xf32>
    %105 = arith.addf %104, %103 : vector<4x256xf32>
    %106 = tpu.reciprocal %105 {approx = true} : vector<4x256xf32> -> vector<4x256xf32>
    %107 = arith.mulf %105, %106 : vector<4x256xf32>
    %cst_62 = arith.constant 2.000000e+00 : f32
    %108 = vector.broadcast %cst_62 : f32 to vector<4x256xf32>
    %109 = arith.subf %108, %107 : vector<4x256xf32>
    %110 = arith.mulf %106, %109 : vector<4x256xf32>
    %cst_63 = arith.constant 1.06140542 : f32
    %111 = vector.broadcast %cst_63 : f32 to vector<4x256xf32>
    %112 = arith.mulf %111, %110 : vector<4x256xf32>
    %cst_64 = arith.constant -1.45315206 : f32
    %113 = vector.broadcast %cst_64 : f32 to vector<4x256xf32>
    %114 = arith.addf %112, %113 : vector<4x256xf32>
    %115 = arith.mulf %114, %110 : vector<4x256xf32>
    %cst_65 = arith.constant 1.42141378 : f32
    %116 = vector.broadcast %cst_65 : f32 to vector<4x256xf32>
    %117 = arith.addf %115, %116 : vector<4x256xf32>
    %118 = arith.mulf %117, %110 : vector<4x256xf32>
    %cst_66 = arith.constant -0.284496725 : f32
    %119 = vector.broadcast %cst_66 : f32 to vector<4x256xf32>
    %120 = arith.addf %118, %119 : vector<4x256xf32>
    %121 = arith.mulf %120, %110 : vector<4x256xf32>
    %cst_67 = arith.constant 0.254829586 : f32
    %122 = vector.broadcast %cst_67 : f32 to vector<4x256xf32>
    %123 = arith.addf %121, %122 : vector<4x256xf32>
    %124 = arith.mulf %123, %110 : vector<4x256xf32>
    %cst_68 = arith.constant 0.000000e+00 : f32
    %125 = vector.broadcast %cst_68 : f32 to vector<4x256xf32>
    %126 = arith.subf %125, %101 : vector<4x256xf32>
    %127 = arith.mulf %126, %101 : vector<4x256xf32>
    %128 = math.exp %127 : vector<4x256xf32>
    %129 = arith.mulf %124, %128 : vector<4x256xf32>
    %cst_69 = arith.constant 1.000000e+00 : f32
    %130 = vector.broadcast %cst_69 : f32 to vector<4x256xf32>
    %131 = arith.subf %130, %129 : vector<4x256xf32>
    %cst_70 = arith.constant 0.000000e+00 : f32
    %132 = vector.broadcast %cst_70 : f32 to vector<4x256xf32>
    %133 = arith.cmpf oge, %100, %132 : vector<4x256xf32>
    %cst_71 = arith.constant 0.000000e+00 : f32
    %134 = vector.broadcast %cst_71 : f32 to vector<4x256xf32>
    %135 = arith.subf %134, %131 : vector<4x256xf32>
    %136 = arith.select %133, %131, %135 : vector<4x256xi1>, vector<4x256xf32>
    %cst_72 = arith.constant 5.000000e-01 : f32
    %137 = vector.broadcast %cst_72 : f32 to vector<4x256xf32>
    %138 = arith.mulf %137, %98 : vector<4x256xf32>
    %cst_73 = arith.constant 1.000000e+00 : f32
    %139 = vector.broadcast %cst_73 : f32 to vector<4x256xf32>
    %140 = arith.addf %139, %136 : vector<4x256xf32>
    %141 = arith.mulf %138, %140 : vector<4x256xf32>
    %c0_74 = arith.constant 0 : index
    %c0_75 = arith.constant 0 : index
    %142 = vector.load %arg4[%c0_74, %c0_75] : memref<32x4xf32, #tpu.memory_space<vmem>>, vector<32x4xf32>
    %cst_76 = arith.constant dense<0.000000e+00> : vector<32x256xf32>
    %143 = tpu.matmul %142, %141, %cst_76 {dimension_numbers = #tpu.dot_dimension_numbers<[1], [0], [0], [1], [0, 0, 1, 1], [], []>} : vector<32x4xf32>, vector<4x256xf32>, vector<32x256xf32> -> vector<32x256xf32>
    %c0_77 = arith.constant 0 : index
    %c0_78 = arith.constant 0 : index
    %144 = vector.load %arg5[%c0_77, %c0_78] : memref<32x1xf32, #tpu.memory_space<vmem>>, vector<32x1xf32>
    %145 = vector.broadcast %144 : vector<32x1xf32> to vector<32x256xf32>
    %146 = arith.addf %143, %145 : vector<32x256xf32>
    %cst_79 = arith.constant 0.707106769 : f32
    %147 = vector.broadcast %cst_79 : f32 to vector<32x256xf32>
    %148 = arith.mulf %146, %147 : vector<32x256xf32>
    %149 = math.absf %148 : vector<32x256xf32>
    %cst_80 = arith.constant 0.327591091 : f32
    %150 = vector.broadcast %cst_80 : f32 to vector<32x256xf32>
    %151 = arith.mulf %150, %149 : vector<32x256xf32>
    %cst_81 = arith.constant 1.000000e+00 : f32
    %152 = vector.broadcast %cst_81 : f32 to vector<32x256xf32>
    %153 = arith.addf %152, %151 : vector<32x256xf32>
    %154 = tpu.reciprocal %153 {approx = true} : vector<32x256xf32> -> vector<32x256xf32>
    %155 = arith.mulf %153, %154 : vector<32x256xf32>
    %cst_82 = arith.constant 2.000000e+00 : f32
    %156 = vector.broadcast %cst_82 : f32 to vector<32x256xf32>
    %157 = arith.subf %156, %155 : vector<32x256xf32>
    %158 = arith.mulf %154, %157 : vector<32x256xf32>
    %cst_83 = arith.constant 1.06140542 : f32
    %159 = vector.broadcast %cst_83 : f32 to vector<32x256xf32>
    %160 = arith.mulf %159, %158 : vector<32x256xf32>
    %cst_84 = arith.constant -1.45315206 : f32
    %161 = vector.broadcast %cst_84 : f32 to vector<32x256xf32>
    %162 = arith.addf %160, %161 : vector<32x256xf32>
    %163 = arith.mulf %162, %158 : vector<32x256xf32>
    %cst_85 = arith.constant 1.42141378 : f32
    %164 = vector.broadcast %cst_85 : f32 to vector<32x256xf32>
    %165 = arith.addf %163, %164 : vector<32x256xf32>
    %166 = arith.mulf %165, %158 : vector<32x256xf32>
    %cst_86 = arith.constant -0.284496725 : f32
    %167 = vector.broadcast %cst_86 : f32 to vector<32x256xf32>
    %168 = arith.addf %166, %167 : vector<32x256xf32>
    %169 = arith.mulf %168, %158 : vector<32x256xf32>
    %cst_87 = arith.constant 0.254829586 : f32
    %170 = vector.broadcast %cst_87 : f32 to vector<32x256xf32>
    %171 = arith.addf %169, %170 : vector<32x256xf32>
    %172 = arith.mulf %171, %158 : vector<32x256xf32>
    %cst_88 = arith.constant 0.000000e+00 : f32
    %173 = vector.broadcast %cst_88 : f32 to vector<32x256xf32>
    %174 = arith.subf %173, %149 : vector<32x256xf32>
    %175 = arith.mulf %174, %149 : vector<32x256xf32>
    %176 = math.exp %175 : vector<32x256xf32>
    %177 = arith.mulf %172, %176 : vector<32x256xf32>
    %cst_89 = arith.constant 1.000000e+00 : f32
    %178 = vector.broadcast %cst_89 : f32 to vector<32x256xf32>
    %179 = arith.subf %178, %177 : vector<32x256xf32>
    %cst_90 = arith.constant 0.000000e+00 : f32
    %180 = vector.broadcast %cst_90 : f32 to vector<32x256xf32>
    %181 = arith.cmpf oge, %148, %180 : vector<32x256xf32>
    %cst_91 = arith.constant 0.000000e+00 : f32
    %182 = vector.broadcast %cst_91 : f32 to vector<32x256xf32>
    %183 = arith.subf %182, %179 : vector<32x256xf32>
    %184 = arith.select %181, %179, %183 : vector<32x256xi1>, vector<32x256xf32>
    %cst_92 = arith.constant 5.000000e-01 : f32
    %185 = vector.broadcast %cst_92 : f32 to vector<32x256xf32>
    %186 = arith.mulf %185, %146 : vector<32x256xf32>
    %cst_93 = arith.constant 1.000000e+00 : f32
    %187 = vector.broadcast %cst_93 : f32 to vector<32x256xf32>
    %188 = arith.addf %187, %184 : vector<32x256xf32>
    %189 = arith.mulf %186, %188 : vector<32x256xf32>
    %cst_94 = arith.constant 0.000000e+00 : f32
    %190 = vector.broadcast %cst_94 : f32 to vector<32x290xf32>
    %c0_95 = arith.constant 0 : index
    %c0_96 = arith.constant 0 : index
    %191 = vector.load %arg10[%c0_95, %c0_96] : memref<32x290xf32, #tpu.memory_space<vmem>>, vector<32x290xf32>
    tpu.vector_store %arg10[%c0_95, %c0_96], %190 {strides = array<i32>} : memref<32x290xf32, #tpu.memory_space<vmem>>, vector<32x290xf32>,
    %c0_97 = arith.constant 0 : index
    %c17_98 = arith.constant 17 : index
    %192 = vector.load %arg10[%c0_97, %c17_98] : memref<32x290xf32, #tpu.memory_space<vmem>>, vector<32x256xf32>
    tpu.vector_store %arg10[%c0_97, %c17_98], %189 {strides = array<i32>} : memref<32x290xf32, #tpu.memory_space<vmem>>, vector<32x256xf32>,
    %cst_99 = arith.constant 0.000000e+00 : f32
    %193 = vector.broadcast %cst_99 : f32 to vector<8x256xf32>
    %c0_100 = arith.constant 0 : index
    %c0_101 = arith.constant 0 : index
    %c0_102 = arith.constant 0 : index
    %194 = vector.load %arg6[%c0_100, %c0_101, %c0_102] : memref<9x8x8xf32, #tpu.memory_space<vmem>>, vector<1x8x8xf32>
    %195 = vector.shape_cast %194 : vector<1x8x8xf32> to vector<8x8xf32>
    %c24 = arith.constant 24 : index
    %c0_103 = arith.constant 0 : index
    %196 = vector.load %arg10[%c24, %c0_103] : memref<32x290xf32, #tpu.memory_space<vmem>>, vector<8x256xf32>
    %cst_104 = arith.constant 0.000000e+00 : f32
    %197 = vector.shape_cast %18 : vector<1x256xi1> to vector<1x256xi1>
    %198 = vector.broadcast %197 : vector<1x256xi1> to vector<8x256xi1>
    %199 = vector.broadcast %cst_104 : f32 to vector<8x256xf32>
    %200 = arith.select %198, %196, %199 : vector<8x256xi1>, vector<8x256xf32>
    %cst_105 = arith.constant dense<0.000000e+00> : vector<8x256xf32>
    %201 = tpu.matmul %195, %200, %cst_105 {dimension_numbers = #tpu.dot_dimension_numbers<[1], [0], [0], [1], [0, 0, 1, 1], [], []>} : vector<8x8xf32>, vector<8x256xf32>, vector<8x256xf32> -> vector<8x256xf32>
    %202 = arith.addf %193, %201 : vector<8x256xf32>
    %c1_106 = arith.constant 1 : index
    %c0_107 = arith.constant 0 : index
    %c0_108 = arith.constant 0 : index
    %203 = vector.load %arg6[%c1_106, %c0_107, %c0_108] : memref<9x8x8xf32, #tpu.memory_space<vmem>>, vector<1x8x8xf32>
    %204 = vector.shape_cast %203 : vector<1x8x8xf32> to vector<8x8xf32>
    %c16_109 = arith.constant 16 : index
    %c1_110 = arith.constant 1 : index
    %205 = vector.load %arg10[%c16_109, %c1_110] : memref<32x290xf32, #tpu.memory_space<vmem>>, vector<8x256xf32>
    %cst_111 = arith.constant dense<0.000000e+00> : vector<8x256xf32>
    %206 = tpu.matmul %204, %205, %cst_111 {dimension_numbers = #tpu.dot_dimension_numbers<[1], [0], [0], [1], [0, 0, 1, 1], [], []>} : vector<8x8xf32>, vector<8x256xf32>, vector<8x256xf32> -> vector<8x256xf32>
    %207 = arith.addf %202, %206 : vector<8x256xf32>
    %c2_112 = arith.constant 2 : index
    %c0_113 = arith.constant 0 : index
    %c0_114 = arith.constant 0 : index
    %208 = vector.load %arg6[%c2_112, %c0_113, %c0_114] : memref<9x8x8xf32, #tpu.memory_space<vmem>>, vector<1x8x8xf32>
    %209 = vector.shape_cast %208 : vector<1x8x8xf32> to vector<8x8xf32>
    %c24_115 = arith.constant 24 : index
    %c1_116 = arith.constant 1 : index
    %210 = vector.load %arg10[%c24_115, %c1_116] : memref<32x290xf32, #tpu.memory_space<vmem>>, vector<8x256xf32>
    %cst_117 = arith.constant dense<0.000000e+00> : vector<8x256xf32>
    %211 = tpu.matmul %209, %210, %cst_117 {dimension_numbers = #tpu.dot_dimension_numbers<[1], [0], [0], [1], [0, 0, 1, 1], [], []>} : vector<8x8xf32>, vector<8x256xf32>, vector<8x256xf32> -> vector<8x256xf32>
    %212 = arith.addf %207, %211 : vector<8x256xf32>
    %c3_118 = arith.constant 3 : index
    %c0_119 = arith.constant 0 : index
    %c0_120 = arith.constant 0 : index
    %213 = vector.load %arg6[%c3_118, %c0_119, %c0_120] : memref<9x8x8xf32, #tpu.memory_space<vmem>>, vector<1x8x8xf32>
    %214 = vector.shape_cast %213 : vector<1x8x8xf32> to vector<8x8xf32>
    %c8_121 = arith.constant 8 : index
    %c16_122 = arith.constant 16 : index
    %215 = vector.load %arg10[%c8_121, %c16_122] : memref<32x290xf32, #tpu.memory_space<vmem>>, vector<8x256xf32>
    %cst_123 = arith.constant 0.000000e+00 : f32
    %216 = vector.shape_cast %18 : vector<1x256xi1> to vector<1x256xi1>
    %217 = vector.broadcast %216 : vector<1x256xi1> to vector<8x256xi1>
    %218 = vector.broadcast %cst_123 : f32 to vector<8x256xf32>
    %219 = arith.select %217, %215, %218 : vector<8x256xi1>, vector<8x256xf32>
    %cst_124 = arith.constant dense<0.000000e+00> : vector<8x256xf32>
    %220 = tpu.matmul %214, %219, %cst_124 {dimension_numbers = #tpu.dot_dimension_numbers<[1], [0], [0], [1], [0, 0, 1, 1], [], []>} : vector<8x8xf32>, vector<8x256xf32>, vector<8x256xf32> -> vector<8x256xf32>
    %221 = arith.addf %212, %220 : vector<8x256xf32>
    %c4_125 = arith.constant 4 : index
    %c0_126 = arith.constant 0 : index
    %c0_127 = arith.constant 0 : index
    %222 = vector.load %arg6[%c4_125, %c0_126, %c0_127] : memref<9x8x8xf32, #tpu.memory_space<vmem>>, vector<1x8x8xf32>
    %223 = vector.shape_cast %222 : vector<1x8x8xf32> to vector<8x8xf32>
    %c0_128 = arith.constant 0 : index
    %c17_129 = arith.constant 17 : index
    %224 = vector.load %arg10[%c0_128, %c17_129] : memref<32x290xf32, #tpu.memory_space<vmem>>, vector<8x256xf32>
    %cst_130 = arith.constant dense<0.000000e+00> : vector<8x256xf32>
    %225 = tpu.matmul %223, %224, %cst_130 {dimension_numbers = #tpu.dot_dimension_numbers<[1], [0], [0], [1], [0, 0, 1, 1], [], []>} : vector<8x8xf32>, vector<8x256xf32>, vector<8x256xf32> -> vector<8x256xf32>
    %226 = arith.addf %221, %225 : vector<8x256xf32>
    %c5_131 = arith.constant 5 : index
    %c0_132 = arith.constant 0 : index
    %c0_133 = arith.constant 0 : index
    %227 = vector.load %arg6[%c5_131, %c0_132, %c0_133] : memref<9x8x8xf32, #tpu.memory_space<vmem>>, vector<1x8x8xf32>
    %228 = vector.shape_cast %227 : vector<1x8x8xf32> to vector<8x8xf32>
    %c8_134 = arith.constant 8 : index
    %c17_135 = arith.constant 17 : index
    %229 = vector.load %arg10[%c8_134, %c17_135] : memref<32x290xf32, #tpu.memory_space<vmem>>, vector<8x256xf32>
    %cst_136 = arith.constant dense<0.000000e+00> : vector<8x256xf32>
    %230 = tpu.matmul %228, %229, %cst_136 {dimension_numbers = #tpu.dot_dimension_numbers<[1], [0], [0], [1], [0, 0, 1, 1], [], []>} : vector<8x8xf32>, vector<8x256xf32>, vector<8x256xf32> -> vector<8x256xf32>
    %231 = arith.addf %226, %230 : vector<8x256xf32>
    %c6_137 = arith.constant 6 : index
    %c0_138 = arith.constant 0 : index
    %c0_139 = arith.constant 0 : index
    %232 = vector.load %arg6[%c6_137, %c0_138, %c0_139] : memref<9x8x8xf32, #tpu.memory_space<vmem>>, vector<1x8x8xf32>
    %233 = vector.shape_cast %232 : vector<1x8x8xf32> to vector<8x8xf32>
    %c24_140 = arith.constant 24 : index
    %c16_141 = arith.constant 16 : index
    %234 = vector.load %arg10[%c24_140, %c16_141] : memref<32x290xf32, #tpu.memory_space<vmem>>, vector<8x256xf32>
    %cst_142 = arith.constant 0.000000e+00 : f32
    %235 = vector.shape_cast %18 : vector<1x256xi1> to vector<1x256xi1>
    %236 = vector.broadcast %235 : vector<1x256xi1> to vector<8x256xi1>
    %237 = vector.broadcast %cst_142 : f32 to vector<8x256xf32>
    %238 = arith.select %236, %234, %237 : vector<8x256xi1>, vector<8x256xf32>
    %cst_143 = arith.constant dense<0.000000e+00> : vector<8x256xf32>
    %239 = tpu.matmul %233, %238, %cst_143 {dimension_numbers = #tpu.dot_dimension_numbers<[1], [0], [0], [1], [0, 0, 1, 1], [], []>} : vector<8x8xf32>, vector<8x256xf32>, vector<8x256xf32> -> vector<8x256xf32>
    %240 = arith.addf %231, %239 : vector<8x256xf32>
    %c7_144 = arith.constant 7 : index
    %c0_145 = arith.constant 0 : index
    %c0_146 = arith.constant 0 : index
    %241 = vector.load %arg6[%c7_144, %c0_145, %c0_146] : memref<9x8x8xf32, #tpu.memory_space<vmem>>, vector<1x8x8xf32>
    %242 = vector.shape_cast %241 : vector<1x8x8xf32> to vector<8x8xf32>
    %c16_147 = arith.constant 16 : index
    %c17_148 = arith.constant 17 : index
    %243 = vector.load %arg10[%c16_147, %c17_148] : memref<32x290xf32, #tpu.memory_space<vmem>>, vector<8x256xf32>
    %cst_149 = arith.constant dense<0.000000e+00> : vector<8x256xf32>
    %244 = tpu.matmul %242, %243, %cst_149 {dimension_numbers = #tpu.dot_dimension_numbers<[1], [0], [0], [1], [0, 0, 1, 1], [], []>} : vector<8x8xf32>, vector<8x256xf32>, vector<8x256xf32> -> vector<8x256xf32>
    %245 = arith.addf %240, %244 : vector<8x256xf32>
    %c8_150 = arith.constant 8 : index
    %c0_151 = arith.constant 0 : index
    %c0_152 = arith.constant 0 : index
    %246 = vector.load %arg6[%c8_150, %c0_151, %c0_152] : memref<9x8x8xf32, #tpu.memory_space<vmem>>, vector<1x8x8xf32>
    %247 = vector.shape_cast %246 : vector<1x8x8xf32> to vector<8x8xf32>
    %c24_153 = arith.constant 24 : index
    %c17_154 = arith.constant 17 : index
    %248 = vector.load %arg10[%c24_153, %c17_154] : memref<32x290xf32, #tpu.memory_space<vmem>>, vector<8x256xf32>
    %cst_155 = arith.constant dense<0.000000e+00> : vector<8x256xf32>
    %249 = tpu.matmul %247, %248, %cst_155 {dimension_numbers = #tpu.dot_dimension_numbers<[1], [0], [0], [1], [0, 0, 1, 1], [], []>} : vector<8x8xf32>, vector<8x256xf32>, vector<8x256xf32> -> vector<8x256xf32>
    %250 = arith.addf %245, %249 : vector<8x256xf32>
    %c0_156 = arith.constant 0 : index
    %c0_157 = arith.constant 0 : index
    %251 = vector.load %arg7[%c0_156, %c0_157] : memref<8x1xf32, #tpu.memory_space<vmem>>, vector<8x1xf32>
    %252 = vector.broadcast %251 : vector<8x1xf32> to vector<8x256xf32>
    %253 = arith.addf %250, %252 : vector<8x256xf32>
    %c0_158 = arith.constant 0 : index
    %c0_159 = arith.constant 0 : index
    %c0_160 = arith.constant 0 : index
    %254 = vector.load %arg8[%c0_158, %c0_159, %c0_160] : memref<1x32x256xf32, #tpu.memory_space<vmem>>, vector<1x8x256xf32>
    %255 = vector.shape_cast %254 : vector<1x8x256xf32> to vector<8x256xf32>
    %256 = vector.shape_cast %253 : vector<8x256xf32> to vector<1x8x256xf32>
    tpu.vector_store %arg8[%c0_158, %c0_159, %c0_160], %256 {strides = array<i32>} : memref<1x32x256xf32, #tpu.memory_space<vmem>>, vector<1x8x256xf32>,
    %cst_161 = arith.constant 0.000000e+00 : f32
    %257 = vector.broadcast %cst_161 : f32 to vector<8x256xf32>
    %c0_162 = arith.constant 0 : index
    %c0_163 = arith.constant 0 : index
    %c0_164 = arith.constant 0 : index
    %258 = vector.load %arg6[%c0_162, %c0_163, %c0_164] : memref<9x8x8xf32, #tpu.memory_space<vmem>>, vector<1x8x8xf32>
    %259 = vector.shape_cast %258 : vector<1x8x8xf32> to vector<8x8xf32>
    %cst_165 = arith.constant dense<0.000000e+00> : vector<8x256xf32>
    %260 = tpu.matmul %259, %205, %cst_165 {dimension_numbers = #tpu.dot_dimension_numbers<[1], [0], [0], [1], [0, 0, 1, 1], [], []>} : vector<8x8xf32>, vector<8x256xf32>, vector<8x256xf32> -> vector<8x256xf32>
    %261 = arith.addf %257, %260 : vector<8x256xf32>
    %c1_166 = arith.constant 1 : index
    %c0_167 = arith.constant 0 : index
    %c0_168 = arith.constant 0 : index
    %262 = vector.load %arg6[%c1_166, %c0_167, %c0_168] : memref<9x8x8xf32, #tpu.memory_space<vmem>>, vector<1x8x8xf32>
    %263 = vector.shape_cast %262 : vector<1x8x8xf32> to vector<8x8xf32>
    %cst_169 = arith.constant dense<0.000000e+00> : vector<8x256xf32>
    %264 = tpu.matmul %263, %210, %cst_169 {dimension_numbers = #tpu.dot_dimension_numbers<[1], [0], [0], [1], [0, 0, 1, 1], [], []>} : vector<8x8xf32>, vector<8x256xf32>, vector<8x256xf32> -> vector<8x256xf32>
    %265 = arith.addf %261, %264 : vector<8x256xf32>
    %c2_170 = arith.constant 2 : index
    %c0_171 = arith.constant 0 : index
    %c0_172 = arith.constant 0 : index
    %266 = vector.load %arg6[%c2_170, %c0_171, %c0_172] : memref<9x8x8xf32, #tpu.memory_space<vmem>>, vector<1x8x8xf32>
    %267 = vector.shape_cast %266 : vector<1x8x8xf32> to vector<8x8xf32>
    %c16_173 = arith.constant 16 : index
    %c2_174 = arith.constant 2 : index
    %268 = vector.load %arg10[%c16_173, %c2_174] : memref<32x290xf32, #tpu.memory_space<vmem>>, vector<8x256xf32>
    %cst_175 = arith.constant 0.000000e+00 : f32
    %269 = vector.shape_cast %20 : vector<1x256xi1> to vector<1x256xi1>
    %270 = vector.broadcast %269 : vector<1x256xi1> to vector<8x256xi1>
    %271 = vector.broadcast %cst_175 : f32 to vector<8x256xf32>
    %272 = arith.select %270, %268, %271 : vector<8x256xi1>, vector<8x256xf32>
    %cst_176 = arith.constant dense<0.000000e+00> : vector<8x256xf32>
    %273 = tpu.matmul %267, %272, %cst_176 {dimension_numbers = #tpu.dot_dimension_numbers<[1], [0], [0], [1], [0, 0, 1, 1], [], []>} : vector<8x8xf32>, vector<8x256xf32>, vector<8x256xf32> -> vector<8x256xf32>
    %274 = arith.addf %265, %273 : vector<8x256xf32>
    %c3_177 = arith.constant 3 : index
    %c0_178 = arith.constant 0 : index
    %c0_179 = arith.constant 0 : index
    %275 = vector.load %arg6[%c3_177, %c0_178, %c0_179] : memref<9x8x8xf32, #tpu.memory_space<vmem>>, vector<1x8x8xf32>
    %276 = vector.shape_cast %275 : vector<1x8x8xf32> to vector<8x8xf32>
    %cst_180 = arith.constant dense<0.000000e+00> : vector<8x256xf32>
    %277 = tpu.matmul %276, %224, %cst_180 {dimension_numbers = #tpu.dot_dimension_numbers<[1], [0], [0], [1], [0, 0, 1, 1], [], []>} : vector<8x8xf32>, vector<8x256xf32>, vector<8x256xf32> -> vector<8x256xf32>
    %278 = arith.addf %274, %277 : vector<8x256xf32>
    %c4_181 = arith.constant 4 : index
    %c0_182 = arith.constant 0 : index
    %c0_183 = arith.constant 0 : index
    %279 = vector.load %arg6[%c4_181, %c0_182, %c0_183] : memref<9x8x8xf32, #tpu.memory_space<vmem>>, vector<1x8x8xf32>
    %280 = vector.shape_cast %279 : vector<1x8x8xf32> to vector<8x8xf32>
    %cst_184 = arith.constant dense<0.000000e+00> : vector<8x256xf32>
    %281 = tpu.matmul %280, %229, %cst_184 {dimension_numbers = #tpu.dot_dimension_numbers<[1], [0], [0], [1], [0, 0, 1, 1], [], []>} : vector<8x8xf32>, vector<8x256xf32>, vector<8x256xf32> -> vector<8x256xf32>
    %282 = arith.addf %278, %281 : vector<8x256xf32>
    %c5_185 = arith.constant 5 : index
    %c0_186 = arith.constant 0 : index
    %c0_187 = arith.constant 0 : index
    %283 = vector.load %arg6[%c5_185, %c0_186, %c0_187] : memref<9x8x8xf32, #tpu.memory_space<vmem>>, vector<1x8x8xf32>
    %284 = vector.shape_cast %283 : vector<1x8x8xf32> to vector<8x8xf32>
    %c0_188 = arith.constant 0 : index
    %c18_189 = arith.constant 18 : index
    %285 = vector.load %arg10[%c0_188, %c18_189] : memref<32x290xf32, #tpu.memory_space<vmem>>, vector<8x256xf32>
    %cst_190 = arith.constant 0.000000e+00 : f32
    %286 = vector.shape_cast %20 : vector<1x256xi1> to vector<1x256xi1>
    %287 = vector.broadcast %286 : vector<1x256xi1> to vector<8x256xi1>
    %288 = vector.broadcast %cst_190 : f32 to vector<8x256xf32>
    %289 = arith.select %287, %285, %288 : vector<8x256xi1>, vector<8x256xf32>
    %cst_191 = arith.constant dense<0.000000e+00> : vector<8x256xf32>
    %290 = tpu.matmul %284, %289, %cst_191 {dimension_numbers = #tpu.dot_dimension_numbers<[1], [0], [0], [1], [0, 0, 1, 1], [], []>} : vector<8x8xf32>, vector<8x256xf32>, vector<8x256xf32> -> vector<8x256xf32>
    %291 = arith.addf %282, %290 : vector<8x256xf32>
    %c6_192 = arith.constant 6 : index
    %c0_193 = arith.constant 0 : index
    %c0_194 = arith.constant 0 : index
    %292 = vector.load %arg6[%c6_192, %c0_193, %c0_194] : memref<9x8x8xf32, #tpu.memory_space<vmem>>, vector<1x8x8xf32>
    %293 = vector.shape_cast %292 : vector<1x8x8xf32> to vector<8x8xf32>
    %cst_195 = arith.constant dense<0.000000e+00> : vector<8x256xf32>
    %294 = tpu.matmul %293, %243, %cst_195 {dimension_numbers = #tpu.dot_dimension_numbers<[1], [0], [0], [1], [0, 0, 1, 1], [], []>} : vector<8x8xf32>, vector<8x256xf32>, vector<8x256xf32> -> vector<8x256xf32>
    %295 = arith.addf %291, %294 : vector<8x256xf32>
    %c7_196 = arith.constant 7 : index
    %c0_197 = arith.constant 0 : index
    %c0_198 = arith.constant 0 : index
    %296 = vector.load %arg6[%c7_196, %c0_197, %c0_198] : memref<9x8x8xf32, #tpu.memory_space<vmem>>, vector<1x8x8xf32>
    %297 = vector.shape_cast %296 : vector<1x8x8xf32> to vector<8x8xf32>
    %cst_199 = arith.constant dense<0.000000e+00> : vector<8x256xf32>
    %298 = tpu.matmul %297, %248, %cst_199 {dimension_numbers = #tpu.dot_dimension_numbers<[1], [0], [0], [1], [0, 0, 1, 1], [], []>} : vector<8x8xf32>, vector<8x256xf32>, vector<8x256xf32> -> vector<8x256xf32>
    %299 = arith.addf %295, %298 : vector<8x256xf32>
    %c8_200 = arith.constant 8 : index
    %c0_201 = arith.constant 0 : index
    %c0_202 = arith.constant 0 : index
    %300 = vector.load %arg6[%c8_200, %c0_201, %c0_202] : memref<9x8x8xf32, #tpu.memory_space<vmem>>, vector<1x8x8xf32>
    %301 = vector.shape_cast %300 : vector<1x8x8xf32> to vector<8x8xf32>
    %c16_203 = arith.constant 16 : index
    %c18_204 = arith.constant 18 : index
    %302 = vector.load %arg10[%c16_203, %c18_204] : memref<32x290xf32, #tpu.memory_space<vmem>>, vector<8x256xf32>
    %cst_205 = arith.constant 0.000000e+00 : f32
    %303 = vector.shape_cast %20 : vector<1x256xi1> to vector<1x256xi1>
    %304 = vector.broadcast %303 : vector<1x256xi1> to vector<8x256xi1>
    %305 = vector.broadcast %cst_205 : f32 to vector<8x256xf32>
    %306 = arith.select %304, %302, %305 : vector<8x256xi1>, vector<8x256xf32>
    %cst_206 = arith.constant dense<0.000000e+00> : vector<8x256xf32>
    %307 = tpu.matmul %301, %306, %cst_206 {dimension_numbers = #tpu.dot_dimension_numbers<[1], [0], [0], [1], [0, 0, 1, 1], [], []>} : vector<8x8xf32>, vector<8x256xf32>, vector<8x256xf32> -> vector<8x256xf32>
    %308 = arith.addf %299, %307 : vector<8x256xf32>
    %c0_207 = arith.constant 0 : index
    %c0_208 = arith.constant 0 : index
    %309 = vector.load %arg7[%c0_207, %c0_208] : memref<8x1xf32, #tpu.memory_space<vmem>>, vector<8x1xf32>
    %310 = vector.broadcast %309 : vector<8x1xf32> to vector<8x256xf32>
    %311 = arith.addf %308, %310 : vector<8x256xf32>
    %c0_209 = arith.constant 0 : index
    %c8_210 = arith.constant 8 : index
    %c0_211 = arith.constant 0 : index
    %312 = vector.load %arg8[%c0_209, %c8_210, %c0_211] : memref<1x32x256xf32, #tpu.memory_space<vmem>>, vector<1x8x256xf32>
    %313 = vector.shape_cast %312 : vector<1x8x256xf32> to vector<8x256xf32>
    %314 = vector.shape_cast %311 : vector<8x256xf32> to vector<1x8x256xf32>
    tpu.vector_store %arg8[%c0_209, %c8_210, %c0_211], %314 {strides = array<i32>} : memref<1x32x256xf32, #tpu.memory_space<vmem>>, vector<1x8x256xf32>,
    %cst_212 = arith.constant 0.000000e+00 : f32
    %315 = vector.broadcast %cst_212 : f32 to vector<8x256xf32>
    %c0_213 = arith.constant 0 : index
    %c0_214 = arith.constant 0 : index
    %c0_215 = arith.constant 0 : index
    %316 = vector.load %arg6[%c0_213, %c0_214, %c0_215] : memref<9x8x8xf32, #tpu.memory_space<vmem>>, vector<1x8x8xf32>
    %317 = vector.shape_cast %316 : vector<1x8x8xf32> to vector<8x8xf32>
    %cst_216 = arith.constant dense<0.000000e+00> : vector<8x256xf32>
    %318 = tpu.matmul %317, %219, %cst_216 {dimension_numbers = #tpu.dot_dimension_numbers<[1], [0], [0], [1], [0, 0, 1, 1], [], []>} : vector<8x8xf32>, vector<8x256xf32>, vector<8x256xf32> -> vector<8x256xf32>
    %319 = arith.addf %315, %318 : vector<8x256xf32>
    %c1_217 = arith.constant 1 : index
    %c0_218 = arith.constant 0 : index
    %c0_219 = arith.constant 0 : index
    %320 = vector.load %arg6[%c1_217, %c0_218, %c0_219] : memref<9x8x8xf32, #tpu.memory_space<vmem>>, vector<1x8x8xf32>
    %321 = vector.shape_cast %320 : vector<1x8x8xf32> to vector<8x8xf32>
    %cst_220 = arith.constant dense<0.000000e+00> : vector<8x256xf32>
    %322 = tpu.matmul %321, %224, %cst_220 {dimension_numbers = #tpu.dot_dimension_numbers<[1], [0], [0], [1], [0, 0, 1, 1], [], []>} : vector<8x8xf32>, vector<8x256xf32>, vector<8x256xf32> -> vector<8x256xf32>
    %323 = arith.addf %319, %322 : vector<8x256xf32>
    %c2_221 = arith.constant 2 : index
    %c0_222 = arith.constant 0 : index
    %c0_223 = arith.constant 0 : index
    %324 = vector.load %arg6[%c2_221, %c0_222, %c0_223] : memref<9x8x8xf32, #tpu.memory_space<vmem>>, vector<1x8x8xf32>
    %325 = vector.shape_cast %324 : vector<1x8x8xf32> to vector<8x8xf32>
    %cst_224 = arith.constant dense<0.000000e+00> : vector<8x256xf32>
    %326 = tpu.matmul %325, %229, %cst_224 {dimension_numbers = #tpu.dot_dimension_numbers<[1], [0], [0], [1], [0, 0, 1, 1], [], []>} : vector<8x8xf32>, vector<8x256xf32>, vector<8x256xf32> -> vector<8x256xf32>
    %327 = arith.addf %323, %326 : vector<8x256xf32>
    %c3_225 = arith.constant 3 : index
    %c0_226 = arith.constant 0 : index
    %c0_227 = arith.constant 0 : index
    %328 = vector.load %arg6[%c3_225, %c0_226, %c0_227] : memref<9x8x8xf32, #tpu.memory_space<vmem>>, vector<1x8x8xf32>
    %329 = vector.shape_cast %328 : vector<1x8x8xf32> to vector<8x8xf32>
    %cst_228 = arith.constant dense<0.000000e+00> : vector<8x256xf32>
    %330 = tpu.matmul %329, %238, %cst_228 {dimension_numbers = #tpu.dot_dimension_numbers<[1], [0], [0], [1], [0, 0, 1, 1], [], []>} : vector<8x8xf32>, vector<8x256xf32>, vector<8x256xf32> -> vector<8x256xf32>
    %331 = arith.addf %327, %330 : vector<8x256xf32>
    %c4_229 = arith.constant 4 : index
    %c0_230 = arith.constant 0 : index
    %c0_231 = arith.constant 0 : index
    %332 = vector.load %arg6[%c4_229, %c0_230, %c0_231] : memref<9x8x8xf32, #tpu.memory_space<vmem>>, vector<1x8x8xf32>
    %333 = vector.shape_cast %332 : vector<1x8x8xf32> to vector<8x8xf32>
    %cst_232 = arith.constant dense<0.000000e+00> : vector<8x256xf32>
    %334 = tpu.matmul %333, %243, %cst_232 {dimension_numbers = #tpu.dot_dimension_numbers<[1], [0], [0], [1], [0, 0, 1, 1], [], []>} : vector<8x8xf32>, vector<8x256xf32>, vector<8x256xf32> -> vector<8x256xf32>
    %335 = arith.addf %331, %334 : vector<8x256xf32>
    %c5_233 = arith.constant 5 : index
    %c0_234 = arith.constant 0 : index
    %c0_235 = arith.constant 0 : index
    %336 = vector.load %arg6[%c5_233, %c0_234, %c0_235] : memref<9x8x8xf32, #tpu.memory_space<vmem>>, vector<1x8x8xf32>
    %337 = vector.shape_cast %336 : vector<1x8x8xf32> to vector<8x8xf32>
    %cst_236 = arith.constant dense<0.000000e+00> : vector<8x256xf32>
    %338 = tpu.matmul %337, %248, %cst_236 {dimension_numbers = #tpu.dot_dimension_numbers<[1], [0], [0], [1], [0, 0, 1, 1], [], []>} : vector<8x8xf32>, vector<8x256xf32>, vector<8x256xf32> -> vector<8x256xf32>
    %339 = arith.addf %335, %338 : vector<8x256xf32>
    %c6_237 = arith.constant 6 : index
    %c0_238 = arith.constant 0 : index
    %c0_239 = arith.constant 0 : index
    %340 = vector.load %arg6[%c6_237, %c0_238, %c0_239] : memref<9x8x8xf32, #tpu.memory_space<vmem>>, vector<1x8x8xf32>
    %341 = vector.shape_cast %340 : vector<1x8x8xf32> to vector<8x8xf32>
    %c8_240 = arith.constant 8 : index
    %c32_241 = arith.constant 32 : index
    %342 = vector.load %arg10[%c8_240, %c32_241] : memref<32x290xf32, #tpu.memory_space<vmem>>, vector<8x256xf32>
    %cst_242 = arith.constant 0.000000e+00 : f32
    %343 = vector.shape_cast %18 : vector<1x256xi1> to vector<1x256xi1>
    %344 = vector.broadcast %343 : vector<1x256xi1> to vector<8x256xi1>
    %345 = vector.broadcast %cst_242 : f32 to vector<8x256xf32>
    %346 = arith.select %344, %342, %345 : vector<8x256xi1>, vector<8x256xf32>
    %cst_243 = arith.constant dense<0.000000e+00> : vector<8x256xf32>
    %347 = tpu.matmul %341, %346, %cst_243 {dimension_numbers = #tpu.dot_dimension_numbers<[1], [0], [0], [1], [0, 0, 1, 1], [], []>} : vector<8x8xf32>, vector<8x256xf32>, vector<8x256xf32> -> vector<8x256xf32>
    %348 = arith.addf %339, %347 : vector<8x256xf32>
    %c7_244 = arith.constant 7 : index
    %c0_245 = arith.constant 0 : index
    %c0_246 = arith.constant 0 : index
    %349 = vector.load %arg6[%c7_244, %c0_245, %c0_246] : memref<9x8x8xf32, #tpu.memory_space<vmem>>, vector<1x8x8xf32>
    %350 = vector.shape_cast %349 : vector<1x8x8xf32> to vector<8x8xf32>
    %c0_247 = arith.constant 0 : index
    %c33_248 = arith.constant 33 : index
    %351 = vector.load %arg10[%c0_247, %c33_248] : memref<32x290xf32, #tpu.memory_space<vmem>>, vector<8x256xf32>
    %cst_249 = arith.constant dense<0.000000e+00> : vector<8x256xf32>
    %352 = tpu.matmul %350, %351, %cst_249 {dimension_numbers = #tpu.dot_dimension_numbers<[1], [0], [0], [1], [0, 0, 1, 1], [], []>} : vector<8x8xf32>, vector<8x256xf32>, vector<8x256xf32> -> vector<8x256xf32>
    %353 = arith.addf %348, %352 : vector<8x256xf32>
    %c8_250 = arith.constant 8 : index
    %c0_251 = arith.constant 0 : index
    %c0_252 = arith.constant 0 : index
    %354 = vector.load %arg6[%c8_250, %c0_251, %c0_252] : memref<9x8x8xf32, #tpu.memory_space<vmem>>, vector<1x8x8xf32>
    %355 = vector.shape_cast %354 : vector<1x8x8xf32> to vector<8x8xf32>
    %c8_253 = arith.constant 8 : index
    %c33_254 = arith.constant 33 : index
    %356 = vector.load %arg10[%c8_253, %c33_254] : memref<32x290xf32, #tpu.memory_space<vmem>>, vector<8x256xf32>
    %cst_255 = arith.constant dense<0.000000e+00> : vector<8x256xf32>
    %357 = tpu.matmul %355, %356, %cst_255 {dimension_numbers = #tpu.dot_dimension_numbers<[1], [0], [0], [1], [0, 0, 1, 1], [], []>} : vector<8x8xf32>, vector<8x256xf32>, vector<8x256xf32> -> vector<8x256xf32>
    %358 = arith.addf %353, %357 : vector<8x256xf32>
    %c0_256 = arith.constant 0 : index
    %c0_257 = arith.constant 0 : index
    %359 = vector.load %arg7[%c0_256, %c0_257] : memref<8x1xf32, #tpu.memory_space<vmem>>, vector<8x1xf32>
    %360 = vector.broadcast %359 : vector<8x1xf32> to vector<8x256xf32>
    %361 = arith.addf %358, %360 : vector<8x256xf32>
    %c0_258 = arith.constant 0 : index
    %c16_259 = arith.constant 16 : index
    %c0_260 = arith.constant 0 : index
    %362 = vector.load %arg8[%c0_258, %c16_259, %c0_260] : memref<1x32x256xf32, #tpu.memory_space<vmem>>, vector<1x8x256xf32>
    %363 = vector.shape_cast %362 : vector<1x8x256xf32> to vector<8x256xf32>
    %364 = vector.shape_cast %361 : vector<8x256xf32> to vector<1x8x256xf32>
    tpu.vector_store %arg8[%c0_258, %c16_259, %c0_260], %364 {strides = array<i32>} : memref<1x32x256xf32, #tpu.memory_space<vmem>>, vector<1x8x256xf32>,
    %cst_261 = arith.constant 0.000000e+00 : f32
    %365 = vector.broadcast %cst_261 : f32 to vector<8x256xf32>
    %c0_262 = arith.constant 0 : index
    %c0_263 = arith.constant 0 : index
    %c0_264 = arith.constant 0 : index
    %366 = vector.load %arg6[%c0_262, %c0_263, %c0_264] : memref<9x8x8xf32, #tpu.memory_space<vmem>>, vector<1x8x8xf32>
    %367 = vector.shape_cast %366 : vector<1x8x8xf32> to vector<8x8xf32>
    %cst_265 = arith.constant dense<0.000000e+00> : vector<8x256xf32>
    %368 = tpu.matmul %367, %224, %cst_265 {dimension_numbers = #tpu.dot_dimension_numbers<[1], [0], [0], [1], [0, 0, 1, 1], [], []>} : vector<8x8xf32>, vector<8x256xf32>, vector<8x256xf32> -> vector<8x256xf32>
    %369 = arith.addf %365, %368 : vector<8x256xf32>
    %c1_266 = arith.constant 1 : index
    %c0_267 = arith.constant 0 : index
    %c0_268 = arith.constant 0 : index
    %370 = vector.load %arg6[%c1_266, %c0_267, %c0_268] : memref<9x8x8xf32, #tpu.memory_space<vmem>>, vector<1x8x8xf32>
    %371 = vector.shape_cast %370 : vector<1x8x8xf32> to vector<8x8xf32>
    %cst_269 = arith.constant dense<0.000000e+00> : vector<8x256xf32>
    %372 = tpu.matmul %371, %229, %cst_269 {dimension_numbers = #tpu.dot_dimension_numbers<[1], [0], [0], [1], [0, 0, 1, 1], [], []>} : vector<8x8xf32>, vector<8x256xf32>, vector<8x256xf32> -> vector<8x256xf32>
    %373 = arith.addf %369, %372 : vector<8x256xf32>
    %c2_270 = arith.constant 2 : index
    %c0_271 = arith.constant 0 : index
    %c0_272 = arith.constant 0 : index
    %374 = vector.load %arg6[%c2_270, %c0_271, %c0_272] : memref<9x8x8xf32, #tpu.memory_space<vmem>>, vector<1x8x8xf32>
    %375 = vector.shape_cast %374 : vector<1x8x8xf32> to vector<8x8xf32>
    %cst_273 = arith.constant dense<0.000000e+00> : vector<8x256xf32>
    %376 = tpu.matmul %375, %289, %cst_273 {dimension_numbers = #tpu.dot_dimension_numbers<[1], [0], [0], [1], [0, 0, 1, 1], [], []>} : vector<8x8xf32>, vector<8x256xf32>, vector<8x256xf32> -> vector<8x256xf32>
    %377 = arith.addf %373, %376 : vector<8x256xf32>
    %c3_274 = arith.constant 3 : index
    %c0_275 = arith.constant 0 : index
    %c0_276 = arith.constant 0 : index
    %378 = vector.load %arg6[%c3_274, %c0_275, %c0_276] : memref<9x8x8xf32, #tpu.memory_space<vmem>>, vector<1x8x8xf32>
    %379 = vector.shape_cast %378 : vector<1x8x8xf32> to vector<8x8xf32>
    %cst_277 = arith.constant dense<0.000000e+00> : vector<8x256xf32>
    %380 = tpu.matmul %379, %243, %cst_277 {dimension_numbers = #tpu.dot_dimension_numbers<[1], [0], [0], [1], [0, 0, 1, 1], [], []>} : vector<8x8xf32>, vector<8x256xf32>, vector<8x256xf32> -> vector<8x256xf32>
    %381 = arith.addf %377, %380 : vector<8x256xf32>
    %c4_278 = arith.constant 4 : index
    %c0_279 = arith.constant 0 : index
    %c0_280 = arith.constant 0 : index
    %382 = vector.load %arg6[%c4_278, %c0_279, %c0_280] : memref<9x8x8xf32, #tpu.memory_space<vmem>>, vector<1x8x8xf32>
    %383 = vector.shape_cast %382 : vector<1x8x8xf32> to vector<8x8xf32>
    %cst_281 = arith.constant dense<0.000000e+00> : vector<8x256xf32>
    %384 = tpu.matmul %383, %248, %cst_281 {dimension_numbers = #tpu.dot_dimension_numbers<[1], [0], [0], [1], [0, 0, 1, 1], [], []>} : vector<8x8xf32>, vector<8x256xf32>, vector<8x256xf32> -> vector<8x256xf32>
    %385 = arith.addf %381, %384 : vector<8x256xf32>
    %c5_282 = arith.constant 5 : index
    %c0_283 = arith.constant 0 : index
    %c0_284 = arith.constant 0 : index
    %386 = vector.load %arg6[%c5_282, %c0_283, %c0_284] : memref<9x8x8xf32, #tpu.memory_space<vmem>>, vector<1x8x8xf32>
    %387 = vector.shape_cast %386 : vector<1x8x8xf32> to vector<8x8xf32>
    %cst_285 = arith.constant dense<0.000000e+00> : vector<8x256xf32>
    %388 = tpu.matmul %387, %306, %cst_285 {dimension_numbers = #tpu.dot_dimension_numbers<[1], [0], [0], [1], [0, 0, 1, 1], [], []>} : vector<8x8xf32>, vector<8x256xf32>, vector<8x256xf32> -> vector<8x256xf32>
    %389 = arith.addf %385, %388 : vector<8x256xf32>
    %c6_286 = arith.constant 6 : index
    %c0_287 = arith.constant 0 : index
    %c0_288 = arith.constant 0 : index
    %390 = vector.load %arg6[%c6_286, %c0_287, %c0_288] : memref<9x8x8xf32, #tpu.memory_space<vmem>>, vector<1x8x8xf32>
    %391 = vector.shape_cast %390 : vector<1x8x8xf32> to vector<8x8xf32>
    %cst_289 = arith.constant dense<0.000000e+00> : vector<8x256xf32>
    %392 = tpu.matmul %391, %351, %cst_289 {dimension_numbers = #tpu.dot_dimension_numbers<[1], [0], [0], [1], [0, 0, 1, 1], [], []>} : vector<8x8xf32>, vector<8x256xf32>, vector<8x256xf32> -> vector<8x256xf32>
    %393 = arith.addf %389, %392 : vector<8x256xf32>
    %c7_290 = arith.constant 7 : index
    %c0_291 = arith.constant 0 : index
    %c0_292 = arith.constant 0 : index
    %394 = vector.load %arg6[%c7_290, %c0_291, %c0_292] : memref<9x8x8xf32, #tpu.memory_space<vmem>>, vector<1x8x8xf32>
    %395 = vector.shape_cast %394 : vector<1x8x8xf32> to vector<8x8xf32>
    %cst_293 = arith.constant dense<0.000000e+00> : vector<8x256xf32>
    %396 = tpu.matmul %395, %356, %cst_293 {dimension_numbers = #tpu.dot_dimension_numbers<[1], [0], [0], [1], [0, 0, 1, 1], [], []>} : vector<8x8xf32>, vector<8x256xf32>, vector<8x256xf32> -> vector<8x256xf32>
    %397 = arith.addf %393, %396 : vector<8x256xf32>
    %c8_294 = arith.constant 8 : index
    %c0_295 = arith.constant 0 : index
    %c0_296 = arith.constant 0 : index
    %398 = vector.load %arg6[%c8_294, %c0_295, %c0_296] : memref<9x8x8xf32, #tpu.memory_space<vmem>>, vector<1x8x8xf32>
    %399 = vector.shape_cast %398 : vector<1x8x8xf32> to vector<8x8xf32>
    %c0_297 = arith.constant 0 : index
    %c34_298 = arith.constant 34 : index
    %400 = vector.load %arg10[%c0_297, %c34_298] : memref<32x290xf32, #tpu.memory_space<vmem>>, vector<8x256xf32>
    %cst_299 = arith.constant 0.000000e+00 : f32
    %401 = vector.shape_cast %20 : vector<1x256xi1> to vector<1x256xi1>
    %402 = vector.broadcast %401 : vector<1x256xi1> to vector<8x256xi1>
    %403 = vector.broadcast %cst_299 : f32 to vector<8x256xf32>
    %404 = arith.select %402, %400, %403 : vector<8x256xi1>, vector<8x256xf32>
    %cst_300 = arith.constant dense<0.000000e+00> : vector<8x256xf32>
    %405 = tpu.matmul %399, %404, %cst_300 {dimension_numbers = #tpu.dot_dimension_numbers<[1], [0], [0], [1], [0, 0, 1, 1], [], []>} : vector<8x8xf32>, vector<8x256xf32>, vector<8x256xf32> -> vector<8x256xf32>
    %406 = arith.addf %397, %405 : vector<8x256xf32>
    %c0_301 = arith.constant 0 : index
    %c0_302 = arith.constant 0 : index
    %407 = vector.load %arg7[%c0_301, %c0_302] : memref<8x1xf32, #tpu.memory_space<vmem>>, vector<8x1xf32>
    %408 = vector.broadcast %407 : vector<8x1xf32> to vector<8x256xf32>
    %409 = arith.addf %406, %408 : vector<8x256xf32>
    %c0_303 = arith.constant 0 : index
    %c24_304 = arith.constant 24 : index
    %c0_305 = arith.constant 0 : index
    %410 = vector.load %arg8[%c0_303, %c24_304, %c0_305] : memref<1x32x256xf32, #tpu.memory_space<vmem>>, vector<1x8x256xf32>
    %411 = vector.shape_cast %410 : vector<1x8x256xf32> to vector<8x256xf32>
    %412 = vector.shape_cast %409 : vector<8x256xf32> to vector<1x8x256xf32>
    tpu.vector_store %arg8[%c0_303, %c24_304, %c0_305], %412 {strides = array<i32>} : memref<1x32x256xf32, #tpu.memory_space<vmem>>, vector<1x8x256xf32>,
    return
  }
  func.func @transform_0(%arg0: i32) -> (i32, i32, i32) {
    %c0_i32 = arith.constant 0 : i32
    %c0_i32_0 = arith.constant 0 : i32
    %c0_i32_1 = arith.constant 0 : i32
    return %arg0, %c0_i32, %c0_i32_0 : i32, i32, i32
  }
  func.func @transform_1(%arg0: i32) -> (i32, i32, i32) {
    %c0_i32 = arith.constant 0 : i32
    %c0_i32_0 = arith.constant 0 : i32
    %c0_i32_1 = arith.constant 0 : i32
    %c0_i32_2 = arith.constant 0 : i32
    return %c0_i32, %c0_i32_0, %c0_i32_1 : i32, i32, i32
  }
  func.func @transform_2(%arg0: i32) -> (i32, i32) {
    %c0_i32 = arith.constant 0 : i32
    %c0_i32_0 = arith.constant 0 : i32
    %c0_i32_1 = arith.constant 0 : i32
    return %c0_i32, %c0_i32_0 : i32, i32
  }
  func.func @transform_3(%arg0: i32) -> (i32, i32) {
    %c0_i32 = arith.constant 0 : i32
    %c0_i32_0 = arith.constant 0 : i32
    %c0_i32_1 = arith.constant 0 : i32
    return %c0_i32, %c0_i32_0 : i32, i32
  }
  func.func @transform_4(%arg0: i32) -> (i32, i32) {
    %c0_i32 = arith.constant 0 : i32
    %c0_i32_0 = arith.constant 0 : i32
    %c0_i32_1 = arith.constant 0 : i32
    return %c0_i32, %c0_i32_0 : i32, i32
  }
  func.func @transform_5(%arg0: i32) -> (i32, i32, i32) {
    %c0_i32 = arith.constant 0 : i32
    %c0_i32_0 = arith.constant 0 : i32
    %c0_i32_1 = arith.constant 0 : i32
    %c0_i32_2 = arith.constant 0 : i32
    return %c0_i32, %c0_i32_0, %c0_i32_1 : i32, i32, i32
  }
  func.func @transform_6(%arg0: i32) -> (i32, i32) {
    %c0_i32 = arith.constant 0 : i32
    %c0_i32_0 = arith.constant 0 : i32
    %c0_i32_1 = arith.constant 0 : i32
    return %c0_i32, %c0_i32_0 : i32, i32
  }
  func.func @transform_7(%arg0: i32) -> (i32, i32, i32) {
    %c0_i32 = arith.constant 0 : i32
    %c0_i32_0 = arith.constant 0 : i32
    %c0_i32_1 = arith.constant 0 : i32
    return %arg0, %c0_i32, %c0_i32_0 : i32, i32, i32
  }
}

</mosaic_0001>

<bundles_post_ra>
// kernel: tile.8
= control target key start
LH: loop header
LB: loop body
LE: loop exit
PB: predicated region body
PF: predicated region fallthrough
CT: control target
= control target key end

     0   :  { %s22_s0 = inlined_call_operand.vmem [shape: f32[8], index: 0, kind: input, shape index: {}]   ;;  %s23_s1 = inlined_call_operand.vmem [shape: f32[4,8], index: 1, kind: output, shape index: {}]  }
   0x1   :  { %v4_v0 = vld [vmem:[%s22_s0] ss:$0 sm:$0xff] }
   0x2   :  { %5 = vst [vmem:[%s23_s1] sm:$0xf] %v4_v0 }

// kernel: tile.0
= control target key start
LH: loop header
LB: loop body
LE: loop exit
PB: predicated region body
PF: predicated region fallthrough
CT: control target
= control target key end

     0   :  { %s66_s8 = smov 125   ;;  %s67_s9 = smov 123   ;;  %vm7_vm0 = vcmask 7168   ;;  %s117_s0 = inlined_call_operand.vmem [shape: f32[4,8], index: 0, kind: input, shape index: {}]   ;;  %s118_s1 = inlined_call_operand.vmem [shape: f32[32,1], index: 1, kind: output, shape index: {}]  }
   0x1   :  { %v4_v0 = vld [vmem:[%s117_s0] sm:$0xf]  ;;  %s65_s0 = smov 127   ;;  %s68_s10 = smov 126  }
   0x2   :  { %5 = vst [vmem:[#allocation0] sm:$0xf] %v4_v0  ;;  %s69_s11 = smov 124   ;;  %s70_s12 = smov 122  }
   0x3   :  { %s71_s13 = smov 121  }
   0x9   :  { %v9_v1 = vld [vmem:[#allocation0] sm:$0xf]  }
   0xa   :  { %v21_v2 = vld [vmem:[#allocation0] sm:$0xf]   ;;  %10 = vrot.lane.b32.xlu0 %v9_v1, %s65_s0 }
   0xb   :  { %22 = vrot.lane.b32.xlu1 %v21_v2, %s66_s8  ;;  %v33_v3 = vld [vmem:[#allocation0] sm:$0xf]  }
   0xc   :  { %34 = vrot.lane.b32.xlu2 %v33_v3, %s67_s9  ;;  %v15_v4 = vld [vmem:[#allocation0] sm:$0xf]  }
   0xd   :  { %v27_v5 = vld [vmem:[#allocation0] sm:$0xf]  }
   0xe   :  { %v39_v6 = vld [vmem:[#allocation0] sm:$0xf]  }
   0xf   :  { %v45_v7 = vld [vmem:[#allocation0] sm:$0xf]  }
  0x10   :  { %v6_v8 = vld [vmem:[#allocation0] sm:$0xf]  }
  0x11   :  { %8 = vst.msk [vmem:[%s118_s1] ss:$8 sm:$0xf] %vm7_vm0, %v6_v8  }
  0x12   :  { %16 = vrot.lane.b32.xlu0 %v15_v4, %s68_s10 }
  0x13   :  { %28 = vrot.lane.b32.xlu1 %v27_v5, %s69_s11 }
  0x14   :  { %40 = vrot.lane.b32.xlu2 %v39_v6, %s70_s12 }
  0x1a   :  { %46 = vrot.lane.b32.xlu0 %v45_v7, %s71_s13 }
  0x66   :  { %v35_v9 = vpop.permute.xlu2 %34  }
  0x67   :  { %55 = vst.msk [vmem:[%s118_s1 + $0x5] ss:$8 sm:$0xf] %vm7_vm0, %v35_v9  }
  0x6e   :  { %v41_v10 = vpop.permute.xlu2 %40  }
  0x6f   :  { %56 = vst.msk [vmem:[%s118_s1 + $0x6] ss:$8 sm:$0xf] %vm7_vm0, %v41_v10  }
  0x7c   :  { %v11_v11 = vpop.permute.xlu0 %10  }
  0x7d   :  { %v23_v12 = vpop.permute.xlu1 %22   ;;  %51 = vst.msk [vmem:[%s118_s1 + $0x1] ss:$8 sm:$0xf] %vm7_vm0, %v11_v11  }
  0x7e   :  { %53 = vst.msk [vmem:[%s118_s1 + $0x3] ss:$8 sm:$0xf] %vm7_vm0, %v23_v12  }
  0x84   :  { %v17_v13 = vpop.permute.xlu0 %16  }
  0x85   :  { %v29_v14 = vpop.permute.xlu1 %28   ;;  %52 = vst.msk [vmem:[%s118_s1 + $0x2] ss:$8 sm:$0xf] %vm7_vm0, %v17_v13  }
  0x86   :  { %54 = vst.msk [vmem:[%s118_s1 + $0x4] ss:$8 sm:$0xf] %vm7_vm0, %v29_v14  }
  0x8c   :  { %v47_v15 = vpop.permute.xlu0 %46  }
  0x8d   :  { %57 = vst.msk [vmem:[%s118_s1 + $0x7] ss:$8 sm:$0xf] %vm7_vm0, %v47_v15  }

// kernel: upsample_block_forward.1
= control target key start
LH: loop header
LB: loop body
LE: loop exit
PB: predicated region body
PF: predicated region fallthrough
CT: control target
= control target key end

     0   :  { %s3796_s24 = smov 0   ;;  %s4621_s0 = inlined_call_operand.vmem [shape: f32[2,4,256], index: 0, kind: input, shape index: {}]   ;;  %s4622_s1 = inlined_call_operand.vmem [shape: f32[9,4,4], index: 1, kind: input, shape index: {}]   ;;  %s4623_s2 = inlined_call_operand.vmem [shape: f32[4,1], index: 2, kind: input, shape index: {}]   ;;  %s4624_s3 = inlined_call_operand.vmem [shape: f32[32,4], index: 3, kind: input, shape index: {}]   ;;  %s4625_s4 = inlined_call_operand.vmem [shape: f32[32,1], index: 4, kind: input, shape index: {}]   ;;  %s4626_s5 = inlined_call_operand.vmem [shape: f32[9,8,8], index: 5, kind: input, shape index: {}]   ;;  %s4627_s6 = inlined_call_operand.vmem [shape: f32[8,1], index: 6, kind: input, shape index: {}]   ;;  %s4628_s7 = inlined_call_operand.vmem [shape: f32[2,32,256], index: 7, kind: output, shape index: {}]  }
   0x1 LB: > { %s3419_s25 = sadd.s32 4294967295, %s3743_s24   ;;  %p3423_p0 = scmp.ge.s32.totalorder %s3743_s24, 1  ;;  %s3743_s24 = sphi %s3796_s24, %s17_s24  }
   0x2   : > { %p237_p1 = scmp.lt.s32.totalorder %s3743_s24, 3 }
   0x4   : > { %p238_p2 = pnand %p3423_p0, %p237_p1 }
   0x5   : > { %p269_p3 = scmp.lt.s32.totalorder (!%p238_p2), %s3419_s25, 1  ;;  %s3746_s30 = smov (!%p238_p2), 17  }
   0x6   : > { %241 = sbr.rel (%p238_p2) target bundleno = 1248 (0x4e0), region = 48  ;;  %s3747_s8 = smov (!%p238_p2), 127  }
   0x7   : > { %s3748_s9 = smov (!%p238_p2), 126   ;;  %s3749_s10 = smov (!%p238_p2), 112  }
   0x8   : > { %s3750_s11 = smov (!%p238_p2), 111   ;;  %s3751_s12 = smov (!%p238_p2), 110  }
   0x9   : > { %s3752_s13 = smov (!%p238_p2), 96   ;;  %s3753_s14 = smov (!%p238_p2), 95  }
   0xa   : > { %s3754_s15 = smov (!%p238_p2), 94  }
   0xb   : > { %vm311_vm0 = vcmask 273408   ;;  %v3745_v0 = vmov 0.0   ;;  %s4641_s25 = smov (!%p269_p3, %s3419_s25), 1  ;;  %vm322_vm1 = vcmask 1043592   ;;  %vm323_vm2 = vcmask 1047556  }
   0xc   : > { %310 = vst [vmem:[#allocation2] sm:$0xff] %v3745_v0  ;;  %s3612_s26 = sshll.u32 %s4641_s25, 3  ;;  %vm318_vm3 = vcmask 138240   ;;  %vm326_vm4 = vcmask 134144   ;;  %vm324_vm5 = vmor %vm323_vm2, %vm322_vm1  ;;  %v279_v4 = vlaneseq  ;;  %vm367_vm8 = vcmask 1043456  }
   0xd   : > { %312 = vst.msk [vmem:[#allocation2 + $0x8] sm:$0xf] %vm311_vm0, %v3745_v0  ;;  %s273_s29 = scalar_lea.vmem %s4621_s0, %s3612_s26  ;;  %vm363_vm9 = vcmask 31744   ;;  %v328_v50 = vld [vmem:[%s4622_s1] sm:$0xf]  ;;  %vm483_vm11 = vcmask 1031168  }
   0xe   : > { %1387 = vst [vmem:[#allocation3] sm:$0xff] %v3745_v0  ;;  %v313_v1 = vld [vmem:[%s273_s29] sm:$0xff]  ;;  %v3812_v6 = vand.u32 127, %v279_v4  ;;  %vm360_vm12 = vcmask 1039360   ;;  %vm559_vm14 = vcmask 916480   ;;  %vm635_vm15 = vcmask 908288  }
   0xf   : > { %1391 = vst [vmem:[#allocation3 + $0x18] sm:$0xff] %v3745_v0  ;;  %315 = vrot.lane.b32.xlu0 %v313_v1, %s3746_s30  ;;  %v3428_v59 = vld [vmem:[%s4622_s1 + $0x4] sm:$0xf]  ;;  %vm705_vm0 = vcmask 900096   ;;  %vm781_vm1 = vcmask 785408   ;;  %vm857_vm2 = vcmask 777216  }
  0x10   : > { %1394 = vst [vmem:[#allocation3 + $0x30] sm:$0xff] %v3745_v0  ;;  %v3815_v7 = vadd.s32 128, %v3812_v6  ;;  %v286_v10 = vand.u32 15, %v3812_v6  ;;  %s3613_s29 = sshll.u32 %s4641_s25, 6 }
  0x11   : > { %1397 = vst [vmem:[#allocation3 + $0x48] sm:$0xff] %v3745_v0 }
  0x12   : > { %v293_v11 = vand.u32 15, %v3815_v7  ;;  %vm3824_vm6 = vcmp.ge.s32.totalorder %v286_v10, 1  ;;  %vm3896_vm13 = vcmp.le.s32.totalorder %v286_v10, 14 }
  0x14   : > { %vm3830_vm7 = vcmp.ge.s32.totalorder %v293_v11, 1  ;;  %vm3879_vm10 = vcmp.le.s32.totalorder %v293_v11, 14 }
  0x81   : > { %v316_v2 = vpop.permute.xlu0 %315 }
  0x82   : > { %v317_v3 = vrot.slane %v316_v2, 4 }
  0x84   : > { %v319_v5 = vsel %vm318_vm3, %v317_v3, %v316_v2  ;;  %327 = vst.msk [vmem:[#allocation2 + $0x8] sm:$0xf] %vm326_vm4, %v317_v3  ;;  %v3437_v2 = vld [vmem:[%s4622_s1 + $0x8] sm:$0xf]  ;;  %vm4629_vm4 = vcmask 769024  }
  0x85   : > { %325 = vst.msk [vmem:[#allocation2] sm:$0xff] %vm324_vm5, %v319_v5 }
  0x8b   : > { %v345_v8 = vld [vmem:[#allocation2 + $0x8] sm:$0xf] }
  0x8c   : > { %v3817_v9 = vld [vmem:[#allocation2] sm:$0xff]  ;;  %350 = vst [vmem:[#allocation1 + $0x10] ss:$2 sm:$0xff] %v345_v8  ;;  %v464_v15 = vld [vmem:[#allocation2 + $0x8] sm:$0xf] }
  0x8d   : > { %335 = vst [vmem:[#allocation1] ss:$2 sm:$0xff] %v3817_v9  ;;  %v544_v21 = vld [vmem:[#allocation2 + $0x8] sm:$0xf] }
  0x8e   : > { %v620_v25 = vld [vmem:[#allocation2 + $0x8] sm:$0xf] }
  0x8f   : > { %v690_v29 = vld [vmem:[#allocation2 + $0x8] sm:$0xf] }
  0x90   : > { %v766_v33 = vld [vmem:[#allocation2 + $0x8] sm:$0xf] }
  0x91   : > { %v842_v37 = vld [vmem:[#allocation2 + $0x8] sm:$0xf] }
  0x92   : > { %v912_v40 = vld [vmem:[#allocation2 + $0x8] sm:$0xf] }
  0x93   : > { %v353_v14 = vld.sshfl [vmem:[#allocation1 + $0x10] sm:$0xff pattern:$0x75316420] }
  0x94   : > { %358 = vrot.lane.b32.xlu1 %v353_v14, %s3747_s8  ;;  %473 = vst [vmem:[#allocation1 + $0x10] ss:$2 sm:$0xff] %v464_v15  ;;  %v336_v16 = vld.sshfl [vmem:[#allocation1] sm:$0xff pattern:$0x75316420] }
  0x95   : > { %v340_v17 = vsel %vm3824_vm6, %v336_v16, 0.0  ;;  %v337_v18 = vld.sshfl [vmem:[#allocation1 + $0x8] sm:$0xff pattern:$0x75316420] }
  0x96   : > { %3433 = vmatpush.msk.msra.mxu2 %vm367_vm8, %v340_v17  ;;  %v341_v19 = vsel %vm3830_vm7, %v337_v18, 0.0  ;;  %348 = vst [vmem:[#allocation1] ss:$2 sm:$0xff] %v3817_v9  ;;  %v3447_v17 = vld [vmem:[%s4622_s1 + $0x10] sm:$0xf] }
  0x97   : > { %3435 = vmatpush.msk.msra.mxu3 %vm367_vm8, %v341_v19  ;;  %3434 = vmatmul.msk.f32.vlgmr.msra.gmra.mxu2 %vm363_vm9, %v328_v50  ;;  %v985_v19 = vld [vmem:[%s4623_s2] sm:$0xf] }
  0x98   : > { %3436 = vmatmul.msk.f32.vlgmr.msra.gmra.mxu3 %vm363_vm9, %v328_v50 }
  0x9b   : > { %v476_v20 = vld.sshfl [vmem:[#allocation1 + $0x10] sm:$0xff pattern:$0x75316420] }
  0x9c   : > { %481 = vrot.lane.b32.xlu0 %v476_v20, %s3748_s9  ;;  %549 = vst [vmem:[#allocation1 + $0x10] ss:$2 sm:$0xff] %v544_v21  ;;  %v3755_v20 = vmov 0  }
  0x9d   : > { %v352_v22 = vld.sshfl [vmem:[#allocation1 + $0x8] sm:$0xff pattern:$0x75316420]  ;;  %v351_v23 = vld.sshfl [vmem:[#allocation1] sm:$0xff pattern:$0x75316420]  ;;  %3633 = vset.pattern.permute.xlu1 %v3755_v20  ;;  %3635 = vset.pattern.permute.xlu0 %v3755_v20 }
  0x9e   : > { %356 = vrot.lane.b32.xlu1 %v352_v22, %s3747_s8  ;;  %471 = vst [vmem:[#allocation1] ss:$2 sm:$0xff] %v3817_v9  ;;  %3634 = vset.pattern.permute.xlu2 %v3755_v20 }
  0xa3   : > { %v552_v24 = vld.sshfl [vmem:[#allocation1 + $0x10] sm:$0xff pattern:$0x75316420] }
  0xa4   : > { %354 = vrot.lane.b32.xlu0 %v351_v23, %s3747_s8  ;;  %625 = vst [vmem:[#allocation1 + $0x10] ss:$2 sm:$0xff] %v620_v25 }
  0xa5   : > { %v474_v26 = vld.sshfl [vmem:[#allocation1] sm:$0xff pattern:$0x75316420]  ;;  %v475_v27 = vld.sshfl [vmem:[#allocation1 + $0x8] sm:$0xff pattern:$0x75316420] }
  0xa6   : > { %477 = vrot.lane.b32.xlu2 %v474_v26, %s3748_s9  ;;  %547 = vst [vmem:[#allocation1] ss:$2 sm:$0xff] %v3817_v9  ;;  %v3452_v26 = vld [vmem:[%s4622_s1 + $0x14] sm:$0xf] }
  0xab   : > { %v628_v28 = vld.sshfl [vmem:[#allocation1 + $0x10] sm:$0xff pattern:$0x75316420] }
  0xac   : > { %557 = vrot.lane.b32.xlu0 %v552_v24, %s3749_s10  ;;  %695 = vst [vmem:[#allocation1 + $0x10] ss:$2 sm:$0xff] %v690_v29  ;;  %v1055_v29 = vld [vmem:[%s4625_s4] sm:$0xff] }
  0xad   : > { %v550_v30 = vld.sshfl [vmem:[#allocation1] sm:$0xff pattern:$0x75316420]  ;;  %v551_v31 = vld.sshfl [vmem:[#allocation1 + $0x8] sm:$0xff pattern:$0x75316420] }
  0xae   : > { %479 = vrot.lane.b32.xlu2 %v475_v27, %s3748_s9  ;;  %553 = vrot.lane.b32.xlu1 %v550_v30, %s3749_s10  ;;  %623 = vst [vmem:[#allocation1] ss:$2 sm:$0xff] %v3817_v9 }
  0xb3   : > { %v698_v32 = vld.sshfl [vmem:[#allocation1 + $0x10] sm:$0xff pattern:$0x75316420] }
  0xb4   : > { %633 = vrot.lane.b32.xlu0 %v628_v28, %s3750_s11  ;;  %771 = vst [vmem:[#allocation1 + $0x10] ss:$2 sm:$0xff] %v766_v33 }
  0xb5   : > { %v626_v34 = vld.sshfl [vmem:[#allocation1] sm:$0xff pattern:$0x75316420]  ;;  %v627_v35 = vld.sshfl [vmem:[#allocation1 + $0x8] sm:$0xff pattern:$0x75316420] }
  0xb6   : > { %555 = vrot.lane.b32.xlu2 %v551_v31, %s3749_s10  ;;  %629 = vrot.lane.b32.xlu1 %v626_v34, %s3750_s11  ;;  %693 = vst [vmem:[#allocation1] ss:$2 sm:$0xff] %v3817_v9 }
  0xbb   : > { %v774_v36 = vld.sshfl [vmem:[#allocation1 + $0x10] sm:$0xff pattern:$0x75316420] }
  0xbc   : > { %703 = vrot.lane.b32.xlu0 %v698_v32, %s3751_s12  ;;  %847 = vst [vmem:[#allocation1 + $0x10] ss:$2 sm:$0xff] %v842_v37 }
  0xbd   : > { %v696_v38 = vld.sshfl [vmem:[#allocation1] sm:$0xff pattern:$0x75316420]  ;;  %v697_v39 = vld.sshfl [vmem:[#allocation1 + $0x8] sm:$0xff pattern:$0x75316420] }
  0xbe   : > { %631 = vrot.lane.b32.xlu2 %v627_v35, %s3750_s11  ;;  %699 = vrot.lane.b32.xlu1 %v696_v38, %s3751_s12  ;;  %769 = vst [vmem:[#allocation1] ss:$2 sm:$0xff] %v3817_v9  ;;  %v3457_v35 = vld [vmem:[%s4622_s1 + $0x18] sm:$0xf] }
  0xc3   : > { %v850_v41 = vld.sshfl [vmem:[#allocation1 + $0x10] sm:$0xff pattern:$0x75316420] }
  0xc4   : > { %779 = vrot.lane.b32.xlu0 %v774_v36, %s3752_s13  ;;  %917 = vst [vmem:[#allocation1 + $0x10] ss:$2 sm:$0xff] %v912_v40 }
  0xc5   : > { %v772_v42 = vld.sshfl [vmem:[#allocation1] sm:$0xff pattern:$0x75316420]  ;;  %v773_v43 = vld.sshfl [vmem:[#allocation1 + $0x8] sm:$0xff pattern:$0x75316420] }
  0xc6   : > { %701 = vrot.lane.b32.xlu2 %v697_v39, %s3751_s12  ;;  %775 = vrot.lane.b32.xlu1 %v772_v42, %s3752_s13  ;;  %845 = vst [vmem:[#allocation1] ss:$2 sm:$0xff] %v3817_v9  ;;  %v3462_v39 = vld [vmem:[%s4622_s1 + $0x1c] sm:$0xf] }
  0xcb   : > { %v920_v46 = vld.sshfl [vmem:[#allocation1 + $0x10] sm:$0xff pattern:$0x75316420] }
  0xcc   : > { %855 = vrot.lane.b32.xlu0 %v850_v41, %s3753_s14 }
  0xcd   : > { %v848_v44 = vld.sshfl [vmem:[#allocation1] sm:$0xff pattern:$0x75316420]  ;;  %v849_v45 = vld.sshfl [vmem:[#allocation1 + $0x8] sm:$0xff pattern:$0x75316420] }
  0xce   : > { %777 = vrot.lane.b32.xlu2 %v773_v43, %s3752_s13  ;;  %851 = vrot.lane.b32.xlu1 %v848_v44, %s3753_s14  ;;  %915 = vst [vmem:[#allocation1] ss:$2 sm:$0xff] %v3817_v9  ;;  %v3442_v9 = vld [vmem:[%s4622_s1 + $0xc] sm:$0xf] }
  0xd4   : > { %925 = vrot.lane.b32.xlu0 %v920_v46, %s3754_s15  ;;  %v3467_v46 = vld [vmem:[%s4622_s1 + $0x20] sm:$0xf] }
  0xd5   : > { %v918_v47 = vld.sshfl [vmem:[#allocation1] sm:$0xff pattern:$0x75316420]  ;;  %v919_v48 = vld.sshfl [vmem:[#allocation1 + $0x8] sm:$0xff pattern:$0x75316420] }
  0xd6   : > { %853 = vrot.lane.b32.xlu2 %v849_v45, %s3753_s14  ;;  %921 = vrot.lane.b32.xlu1 %v918_v47, %s3754_s15 }
  0xde   : > { %923 = vrot.lane.b32.xlu2 %v919_v48, %s3754_s15  ;;  %988 = vperm.xlu1 %3633, %v985_v19  }
  0xe6   : > { %1061 = vperm.xlu1 %3633, %v1055_v29  }
 0x100   : > { %v478_v49 = vpop.permute.xlu2 %477 }
 0x106   : > { %v359_v51 = vpop.permute.xlu1 %358 }
 0x108   : > { %v480_v52 = vpop.permute.xlu2 %479 }
 0x109   : > { %v484_v61 = vsel %vm483_vm11, %v478_v49, %v480_v52 }
 0x10a   : > { %v488_v1 = vsel %vm3896_vm13, %v484_v61, 0.0 }
 0x10e   : > { %v482_v54 = vpop.permute.xlu0 %481 }
 0x10f   : > { %v485_v55 = vsel %vm483_vm11, %v480_v52, %v482_v54 }
 0x110   : > { %v357_v56 = vpop.permute.xlu1 %356  ;;  %v489_v57 = vsel %vm3879_vm10, %v485_v55, 0.0  ;;  %v556_v60 = vpop.permute.xlu2 %555 }
 0x111   : > { %v362_v58 = vsel %vm360_vm12, %v357_v56, %v359_v51 }
 0x112   : > { %3431 = vmatpush.msk.msra.mxu1 %vm367_vm8, %v362_v58 }
 0x113   : > { %3432 = vmatmul.msk.f32.vlgmr.msra.gmra.mxu1 %vm363_vm9, %v3428_v59 }
 0x114   : > { %3440 = vmatpush.msk.msrb.mxu1 %vm367_vm8, %v489_v57 }
 0x116   : > { %v355_v63 = vpop.permute.xlu0 %354 }
 0x117   : > { %v361_v0 = vsel %vm360_vm12, %v355_v63, %v357_v56 }
 0x118   : > { %3429 = vmatpush.msk.msra.mxu0 %vm367_vm8, %v361_v0  ;;  %v632_v3 = vpop.permute.xlu2 %631 }
 0x119   : > { %3430 = vmatmul.msk.f32.vlgmr.msra.gmra.mxu0 %vm363_vm9, %v3428_v59 }
 0x11a   : > { %3438 = vmatpush.msk.msrb.mxu0 %vm367_vm8, %v488_v1  ;;  %v438_v56 = vpop.f32.mrf.mxu2 }
 0x11b   : > { %3441 = vmatmul.msk.f32.vlgmr.msrb.gmra.mxu1 %vm363_vm9, %v3437_v2  ;;  %v458_v54 = vpop.f32.mrf.mxu3 }
 0x11e   : > { %v558_v4 = vpop.permute.xlu0 %557 }
 0x11f   : > { %v561_v5 = vsel %vm559_vm14, %v556_v60, %v558_v4 }
 0x120   : > { %v554_v6 = vpop.permute.xlu1 %553  ;;  %v565_v7 = vsel %vm3830_vm7, %v561_v5, 0.0  ;;  %v702_v15 = vpop.permute.xlu2 %701 }
 0x121   : > { %v560_v8 = vsel %vm559_vm14, %v554_v6, %v556_v60  ;;  %3445 = vmatpush.msk.msrb.mxu3 %vm367_vm8, %v565_v7  ;;  %3439 = vmatmul.msk.f32.vlgmr.msrb.gmra.mxu0 %vm363_vm9, %v3437_v2 }
 0x122   : > { %v564_v10 = vsel %vm3824_vm6, %v560_v8, 0.0  ;;  %3446 = vmatmul.msk.f32.vlgmr.msrb.gmra.mxu3 %vm363_vm9, %v3442_v9 }
 0x123   : > { %3443 = vmatpush.msk.msrb.mxu2 %vm367_vm8, %v564_v10 }
 0x124   : > { %3444 = vmatmul.msk.f32.vlgmr.msrb.gmra.mxu2 %vm363_vm9, %v3442_v9 }
 0x126   : > { %v634_v11 = vpop.permute.xlu0 %633 }
 0x127   : > { %v637_v14 = vsel %vm635_vm15, %v632_v3, %v634_v11 }
 0x128   : > { %v630_v16 = vpop.permute.xlu1 %629  ;;  %3450 = vmatpush.msk.msra.mxu1 %vm367_vm8, %v637_v14  ;;  %v778_v27 = vpop.permute.xlu2 %777 }
 0x129   : > { %v636_v18 = vsel %vm635_vm15, %v630_v16, %v632_v3  ;;  %3451 = vmatmul.msk.f32.vlgmr.msra.gmra.mxu1 %vm363_vm9, %v3447_v17 }
 0x12a   : > { %3448 = vmatpush.msk.msra.mxu0 %vm367_vm8, %v636_v18 }
 0x12b   : > { %3449 = vmatmul.msk.f32.vlgmr.msra.gmra.mxu0 %vm363_vm9, %v3447_v17 }
 0x12e   : > { %v704_v21 = vpop.permute.xlu0 %703 }
 0x12f   : > { %v707_v22 = vsel %vm705_vm0, %v702_v15, %v704_v21 }
 0x130   : > { %v711_v23 = vsel %vm3879_vm10, %v707_v22, 0.0  ;;  %v700_v24 = vpop.permute.xlu1 %699  ;;  %v854_v37 = vpop.permute.xlu2 %853 }
 0x131   : > { %v706_v25 = vsel %vm705_vm0, %v700_v24, %v702_v15  ;;  %3455 = vmatpush.msk.msra.mxu3 %vm367_vm8, %v711_v23 }
 0x132   : > { %v710_v28 = vsel %vm3896_vm13, %v706_v25, 0.0  ;;  %3456 = vmatmul.msk.f32.vlgmr.msra.gmra.mxu3 %vm363_vm9, %v3452_v26 }
 0x133   : > { %3453 = vmatpush.msk.msra.mxu2 %vm367_vm8, %v710_v28 }
 0x134   : > { %3454 = vmatmul.msk.f32.vlgmr.msra.gmra.mxu2 %vm363_vm9, %v3452_v26 }
 0x136   : > { %v780_v30 = vpop.permute.xlu0 %779 }
 0x137   : > { %v783_v31 = vsel %vm781_vm1, %v778_v27, %v780_v30 }
 0x138   : > { %v787_v32 = vsel %vm3830_vm7, %v783_v31, 0.0  ;;  %v776_v33 = vpop.permute.xlu1 %775  ;;  %v924_v43 = vpop.permute.xlu2 %923 }
 0x139   : > { %v782_v34 = vsel %vm781_vm1, %v776_v33, %v778_v27  ;;  %3460 = vmatpush.msk.msrb.mxu1 %vm367_vm8, %v787_v32 }
 0x13a   : > { %v786_v36 = vsel %vm3824_vm6, %v782_v34, 0.0  ;;  %3461 = vmatmul.msk.f32.vlgmr.msrb.gmra.mxu1 %vm363_vm9, %v3457_v35 }
 0x13b   : > { %3458 = vmatpush.msk.msrb.mxu0 %vm367_vm8, %v786_v36 }
 0x13c   : > { %3459 = vmatmul.msk.f32.vlgmr.msrb.gmra.mxu0 %vm363_vm9, %v3457_v35 }
 0x13e   : > { %v856_v38 = vpop.permute.xlu0 %855 }
 0x13f   : > { %v859_v40 = vsel %vm857_vm2, %v854_v37, %v856_v38 }
 0x140   : > { %v852_v41 = vpop.permute.xlu1 %851  ;;  %3465 = vmatpush.msk.msrb.mxu3 %vm367_vm8, %v859_v40 }
 0x141   : > { %v858_v42 = vsel %vm857_vm2, %v852_v41, %v854_v37  ;;  %3466 = vmatmul.msk.f32.vlgmr.msrb.gmra.mxu3 %vm363_vm9, %v3462_v39 }
 0x142   : > { %3463 = vmatpush.msk.msrb.mxu2 %vm367_vm8, %v858_v42 }
 0x143   : > { %3464 = vmatmul.msk.f32.vlgmr.msrb.gmra.mxu2 %vm363_vm9, %v3462_v39 }
 0x146   : > { %v926_v44 = vpop.permute.xlu0 %925 }
 0x147   : > { %v929_v45 = vsel %vm4629_vm4, %v924_v43, %v926_v44 }
 0x148   : > { %v933_v47 = vsel %vm3879_vm10, %v929_v45, 0.0  ;;  %v922_v48 = vpop.permute.xlu1 %921 }
 0x149   : > { %v928_v49 = vsel %vm4629_vm4, %v922_v48, %v924_v43  ;;  %3470 = vmatpush.msk.msra.mxu1 %vm367_vm8, %v933_v47 }
 0x14a   : > { %v932_v50 = vsel %vm3896_vm13, %v928_v49, 0.0  ;;  %3471 = vmatmul.msk.f32.vlgmr.msra.gmra.mxu1 %vm363_vm9, %v3467_v46 }
 0x14b   : > { %3468 = vmatpush.msk.msra.mxu0 %vm367_vm8, %v932_v50 }
 0x14c   : > { %3469 = vmatmul.msk.f32.vlgmr.msra.gmra.mxu0 %vm363_vm9, %v3467_v46 }
 0x150   : > { %v989_v23 = vpop.permute.xlu1 %988 }
 0x190   : > { %v409_v51 = vpop.f32.mrf.mxu1 }
 0x191   : > { %v459_v57 = vadd.f32 %v458_v54, %v409_v51 }
 0x196   : > { %v389_v52 = vpop.f32.mrf.mxu0 }
 0x197   : > { %v439_v60 = vadd.f32 %v438_v56, %v389_v52 }
 0x198   : > { %v536_v55 = vpop.f32.mrf.mxu1 }
 0x199   : > { %v540_v61 = vadd.f32 %v536_v55, %v459_v57 }
 0x19e   : > { %v516_v58 = vpop.f32.mrf.mxu0 }
 0x19f   : > { %v539_v1 = vadd.f32 %v516_v58, %v439_v60 }
 0x1a5   : > { %v612_v59 = vpop.f32.mrf.mxu3 }
 0x1a6   : > { %v682_v63 = vpop.f32.mrf.mxu1  ;;  %v616_v2 = vadd.f32 %v612_v59, %v540_v61 }
 0x1a7   : > { %v592_v0 = vpop.f32.mrf.mxu2 }
 0x1a8   : > { %v662_v3 = vpop.f32.mrf.mxu0  ;;  %v615_v4 = vadd.f32 %v592_v0, %v539_v1  ;;  %v686_v5 = vadd.f32 %v682_v63, %v616_v2 }
 0x1aa   : > { %v685_v8 = vadd.f32 %v662_v3, %v615_v4 }
 0x1b5   : > { %v758_v6 = vpop.f32.mrf.mxu3 }
 0x1b6   : > { %v762_v9 = vadd.f32 %v758_v6, %v686_v5 }
 0x1b7   : > { %v738_v7 = vpop.f32.mrf.mxu2  ;;  %v834_v10 = vpop.f32.mrf.mxu1 }
 0x1b8   : > { %v761_v11 = vadd.f32 %v738_v7, %v685_v8  ;;  %v838_v15 = vadd.f32 %v834_v10, %v762_v9 }
 0x1b9   : > { %v814_v14 = vpop.f32.mrf.mxu0 }
 0x1ba   : > { %v837_v17 = vadd.f32 %v814_v14, %v761_v11 }
 0x1c4   : > { %v904_v16 = vpop.f32.mrf.mxu3 }
 0x1c5   : > { %v908_v18 = vadd.f32 %v904_v16, %v838_v15 }
 0x1c6   : > { %v884_v19 = vpop.f32.mrf.mxu2 }
 0x1c7   : > { %v907_v20 = vadd.f32 %v884_v19, %v837_v17  ;;  %v980_v21 = vpop.f32.mrf.mxu1  ;;  %v1058_v19 = vld [vmem:[%s4625_s4 + $0x18] sm:$0xff] }
 0x1c8   : > { %v984_v22 = vadd.f32 %v980_v21, %v908_v18  ;;  %1076 = vperm.xlu0 %3635, %v1058_v19  }
 0x1c9   : > { %v960_v24 = vpop.f32.mrf.mxu0 }
 0x1ca   : > { %v992_v25 = vadd.f32 %v989_v23, %v984_v22  ;;  %v983_v26 = vadd.f32 %v960_v24, %v907_v20  ;;  %v1057_v20 = vld [vmem:[%s4625_s4 + $0x10] sm:$0xff] }
 0x1cb   : > { %1071 = vperm.xlu2 %3634, %v1057_v20  }
 0x1cc   : > { %v994_v27 = vmul.f32 0.70710677, %v992_v25  ;;  %v3987_v28 = vadd.f32 %v989_v23, %v983_v26  ;;  %v1046_v16 = vmul.f32 0.5, %v992_v25  ;;  %v1051_v23 = vld [vmem:[%s4624_s3] sm:$0xff] }
 0x1ce   : > { %v996_v29 = vand.u32 2147483647, %v994_v27  ;;  %v993_v30 = vmul.f32 0.70710677, %v3987_v28  ;;  %vm1040_vm5 = vcmp.ge.f32.partialorder %v994_v27, 0.0  ;;  %v1045_v24 = vmul.f32 0.5, %v3987_v28 }
 0x1cf   : > { %v1056_v27 = vld [vmem:[%s4625_s4 + $0x8] sm:$0xff]  ;;  %v1053_v28 = vld [vmem:[%s4624_s3 + $0x10] sm:$0xff] }
 0x1d0   : > { %v998_v31 = vmul.f32 0.3275911, %v996_v29  ;;  %v995_v32 = vand.u32 2147483647, %v993_v30  ;;  %v1028_v42 = vsub.f32 0.0, %v996_v29  ;;  %vm1039_vm4 = vcmp.ge.f32.partialorder %v993_v30, 0.0 }
 0x1d1   : > { %v1054_v30 = vld [vmem:[%s4624_s3 + $0x18] sm:$0xff] }
 0x1d2   : > { %v1000_v33 = vadd.f32 1.0, %v998_v31  ;;  %v997_v34 = vmul.f32 0.3275911, %v995_v32  ;;  %v1027_v47 = vsub.f32 0.0, %v995_v32  ;;  %v1030_v48 = vmul.f32 %v1028_v42, %v996_v29  ;;  %v1052_v29 = vld [vmem:[%s4624_s3 + $0x8] sm:$0xff] }
 0x1d3   : > { %1066 = vperm.xlu2 %3634, %v1056_v27  }
 0x1d4   : > { %3696 = vrcp.f32 %v1000_v33  ;;  %v999_v35 = vadd.f32 1.0, %v997_v34  ;;  %v1029_v54 = vmul.f32 %v1027_v47, %v995_v32  ;;  %v1033_v55 = vmul.f32 1.442695, %v1030_v48  ;;  %v1062_v32 = vpop.permute.xlu1 %1061 }
 0x1d6   : > { %3698 = vrcp.f32 %v999_v35  ;;  %v1031_v60 = vmul.f32 1.442695, %v1029_v54 }
 0x1d7   : > { %3700 = vpow2.f32 %v1033_v55 }
 0x1d8   : > { %3702 = vpow2.f32 %v1031_v60 }
 0x1da   : > { %v3697_v36 = vpop.eup %3696 }
 0x1db   : > { %v1004_v37 = vmul.f32 %v3697_v36, %v1000_v33 }
 0x1dc   : > { %v3699_v38 = vpop.eup %3698 }
 0x1dd   : > { %v1006_v39 = vsub.f32 2.0, %v1004_v37  ;;  %v1003_v40 = vmul.f32 %v3699_v38, %v999_v35  ;;  %v3701_v4 = vpop.eup %3700 }
 0x1de   : > { %v3703_v8 = vpop.eup %3702 }
 0x1df   : > { %v1008_v41 = vmul.f32 %v3697_v36, %v1006_v39  ;;  %v1005_v43 = vsub.f32 2.0, %v1003_v40 }
 0x1e1   : > { %v1010_v44 = vmul.f32 1.0614054, %v1008_v41  ;;  %v1007_v45 = vmul.f32 %v3699_v38, %v1005_v43 }
 0x1e3   : > { %v1012_v46 = vadd.f32 -1.4531521, %v1010_v44  ;;  %v1009_v49 = vmul.f32 1.0614054, %v1007_v45 }
 0x1e5   : > { %v1014_v50 = vmul.f32 %v1012_v46, %v1008_v41  ;;  %v1011_v51 = vadd.f32 -1.4531521, %v1009_v49 }
 0x1e7   : > { %v1016_v52 = vadd.f32 1.4214138, %v1014_v50  ;;  %v1013_v56 = vmul.f32 %v1011_v51, %v1007_v45 }
 0x1e9   : > { %v1018_v57 = vmul.f32 %v1016_v52, %v1008_v41  ;;  %v1015_v58 = vadd.f32 1.4214138, %v1013_v56 }
 0x1eb   : > { %v1020_v59 = vadd.f32 -0.28449672, %v1018_v57  ;;  %v1017_v61 = vmul.f32 %v1015_v58, %v1007_v45 }
 0x1ed   : > { %v1022_v63 = vmul.f32 %v1020_v59, %v1008_v41  ;;  %v1019_v0 = vadd.f32 -0.28449672, %v1017_v61 }
 0x1ef   : > { %v1024_v1 = vadd.f32 0.2548296, %v1022_v63  ;;  %v1021_v2 = vmul.f32 %v1019_v0, %v1007_v45 }
 0x1f1   : > { %v1026_v3 = vmul.f32 %v1024_v1, %v1008_v41  ;;  %v1023_v5 = vadd.f32 0.2548296, %v1021_v2 }
 0x1f3   : > { %v1036_v6 = vmul.f32 %v3701_v4, %v1026_v3  ;;  %v1025_v7 = vmul.f32 %v1023_v5, %v1007_v45 }
 0x1f5   : > { %v1038_v9 = vsub.f32 1.0, %v1036_v6  ;;  %v1035_v10 = vmul.f32 %v3703_v8, %v1025_v7 }
 0x1f7   : > { %v1042_v11 = vsub.f32 0.0, %v1038_v9  ;;  %v1037_v14 = vsub.f32 1.0, %v1035_v10 }
 0x1f9   : > { %v1044_v15 = vsel %vm1040_vm5, %v1038_v9, %v1042_v11  ;;  %v1041_v18 = vsub.f32 0.0, %v1037_v14 }
 0x1fa   : > { %v1048_v17 = vadd.f32 1.0, %v1044_v15 }
 0x1fb   : > { %v1043_v22 = vsel %vm1039_vm4, %v1037_v14, %v1041_v18 }
 0x1fc   : > { %v1050_v21 = vmul.f32 %v1048_v17, %v1046_v16  ;;  %v1047_v25 = vadd.f32 1.0, %v1043_v22 }
 0x1fe   : > { %3477 = vmatpush.msk.msra.mxu3 %vm367_vm8, %v1050_v21  ;;  %v1049_v26 = vmul.f32 %v1047_v25, %v1045_v24 }
 0x1ff   : > { %3478 = vmatmul.msk.f32.vlgmr.msra.gmra.mxu3 %vm363_vm9, %v1051_v23 }
 0x200   : > { %3472 = vmatpush.msk.msra.mxu2 %vm367_vm8, %v1049_v26  ;;  %vm1389_vm8 = vcmask 277504  }
 0x201   : > { %3473 = vmatmul.msk.f32.vlgmr.msra.gmra.mxu2 %vm363_vm9, %v1051_v23 }
 0x207   : > { %3479 = vmatmul.msk.f32.gmra.mxu3 %vm363_vm9, %v1052_v29 }
 0x209   : > { %3474 = vmatmul.msk.f32.gmra.mxu2 %vm363_vm9, %v1052_v29 }
 0x20f   : > { %3480 = vmatmul.msk.f32.gmra.mxu3 %vm363_vm9, %v1053_v28 }
 0x211   : > { %3475 = vmatmul.msk.f32.gmra.mxu2 %vm363_vm9, %v1053_v28 }
 0x217   : > { %3481 = vmatmul.msk.f32.gmra.mxu3 %vm363_vm9, %v1054_v30 }
 0x219   : > { %3476 = vmatmul.msk.f32.gmra.mxu2 %vm363_vm9, %v1054_v30 }
 0x225   : > { %v1072_v31 = vpop.permute.xlu2 %1071 }
 0x22d   : > { %v1067_v40 = vpop.permute.xlu2 %1066 }
 0x23a   : > { %v1077_v9 = vpop.permute.xlu0 %1076 }
 0x282   : > { %v1143_v33 = vpop.f32.mrf.mxu3 }
 0x283   : > { %v4022_v34 = vadd.f32 %v1143_v33, %v1062_v32 }
 0x284   : > { %v1114_v36 = vpop.f32.mrf.mxu2 }
 0x285   : > { %v4025_v35 = vmul.f32 0.70710677, %v4022_v34  ;;  %v4027_v37 = vadd.f32 %v1114_v36, %v1062_v32 }
 0x287   : > { %v1164_v38 = vand.u32 2147483647, %v4025_v35  ;;  %v4031_v39 = vmul.f32 0.70710677, %v4027_v37 }
 0x289   : > { %v1172_v41 = vmul.f32 0.3275911, %v1164_v38  ;;  %v1163_v42 = vand.u32 2147483647, %v4031_v39  ;;  %v1292_v4 = vsub.f32 0.0, %v1164_v38  ;;  %vm1339_vm9 = vcmp.ge.f32.partialorder %v4031_v39, 0.0 }
 0x28a   : > { %v1146_v43 = vpop.f32.mrf.mxu3  ;;  %v1363_v39 = vmul.f32 0.5, %v4027_v37 }
 0x28b   : > { %v1180_v44 = vadd.f32 1.0, %v1172_v41  ;;  %v4034_v45 = vadd.f32 %v1146_v43, %v1067_v40  ;;  %v1171_v46 = vmul.f32 0.3275911, %v1163_v42  ;;  %v1300_v17 = vmul.f32 %v1292_v4, %v1164_v38 }
 0x28c   : > { %v1117_v48 = vpop.f32.mrf.mxu2  ;;  %v1291_v23 = vsub.f32 0.0, %v1163_v42 }
 0x28d   : > { %3704 = vrcp.f32 %v1180_v44  ;;  %v4037_v47 = vmul.f32 0.70710677, %v4034_v45  ;;  %v1179_v49 = vadd.f32 1.0, %v1171_v46  ;;  %v4039_v50 = vadd.f32 %v1117_v48, %v1067_v40 }
 0x28e   : > { %v1299_v41 = vmul.f32 %v1291_v23, %v1163_v42 }
 0x28f   : > { %v4042_v51 = vand.u32 2147483647, %v4037_v47  ;;  %3706 = vrcp.f32 %v1179_v49  ;;  %v4045_v52 = vmul.f32 0.70710677, %v4039_v50 }
 0x291   : > { %v1174_v54 = vmul.f32 0.3275911, %v4042_v51  ;;  %v4049_v55 = vand.u32 2147483647, %v4045_v52  ;;  %v1294_v46 = vsub.f32 0.0, %v4042_v51 }
 0x292   : > { %v1149_v56 = vpop.f32.mrf.mxu3 }
 0x293   : > { %v3705_v57 = vpop.eup %3704  ;;  %v1182_v58 = vadd.f32 1.0, %v1174_v54  ;;  %v4051_v59 = vadd.f32 %v1149_v56, %v1072_v31  ;;  %v1173_v61 = vmul.f32 0.3275911, %v4049_v55 }
 0x294   : > { %v1196_v60 = vmul.f32 %v3705_v57, %v1180_v44  ;;  %v1120_v0 = vpop.f32.mrf.mxu2 }
 0x295   : > { %3708 = vrcp.f32 %v1182_v58  ;;  %v4055_v63 = vmul.f32 0.70710677, %v4051_v59  ;;  %v3707_v1 = vpop.eup %3706  ;;  %v1181_v2 = vadd.f32 1.0, %v1173_v61  ;;  %v4057_v3 = vadd.f32 %v1120_v0, %v1072_v31 }
 0x296   : > { %v1195_v5 = vmul.f32 %v3707_v1, %v1179_v49  ;;  %v1204_v7 = vsub.f32 2.0, %v1196_v60  ;;  %v1309_v31 = vmul.f32 1.442695, %v1300_v17  ;;  %v1307_v0 = vmul.f32 1.442695, %v1299_v41 }
 0x297   : > { %v4060_v6 = vand.u32 2147483647, %v4055_v63  ;;  %3710 = vrcp.f32 %v1181_v2  ;;  %v4063_v8 = vmul.f32 0.70710677, %v4057_v3  ;;  %vm1344_vm4 = vcmp.ge.f32.partialorder %v4055_v63, 0.0 }
 0x298   : > { %v1203_v11 = vsub.f32 2.0, %v1195_v5  ;;  %v4071_v20 = vmul.f32 %v3705_v57, %v1204_v7  ;;  %v1302_v5 = vmul.f32 %v1294_v46, %v4042_v51 }
 0x299   : > { %v1176_v10 = vmul.f32 0.3275911, %v4060_v6  ;;  %v4067_v14 = vand.u32 2147483647, %v4063_v8  ;;  %vm1343_vm5 = vcmp.ge.f32.partialorder %v4063_v8, 0.0 }
 0x29a   : > { %v1152_v15 = vpop.f32.mrf.mxu3  ;;  %v4077_v27 = vmul.f32 %v3707_v1, %v1203_v11  ;;  %v1220_v40 = vmul.f32 1.0614054, %v4071_v20  ;;  %v1293_v11 = vsub.f32 0.0, %v4049_v55 }
 0x29b   : > { %v3709_v16 = vpop.eup %3708  ;;  %v1184_v18 = vadd.f32 1.0, %v1176_v10  ;;  %v4069_v19 = vadd.f32 %v1152_v15, %v1077_v9  ;;  %v1175_v22 = vmul.f32 0.3275911, %v4067_v14  ;;  %v1296_v15 = vsub.f32 0.0, %v4060_v6 }
 0x29c   : > { %v1198_v21 = vmul.f32 %v3709_v16, %v1182_v58  ;;  %v1123_v25 = vpop.f32.mrf.mxu2  ;;  %v1219_v49 = vmul.f32 1.0614054, %v4077_v27  ;;  %v1228_v42 = vadd.f32 -1.4531521, %v1220_v40  ;;  %v1301_v41 = vmul.f32 %v1293_v11, %v4049_v55 }
 0x29d   : > { %3712 = vrcp.f32 %v1184_v18  ;;  %v4075_v24 = vmul.f32 0.70710677, %v4069_v19  ;;  %v3711_v26 = vpop.eup %3710  ;;  %v1183_v28 = vadd.f32 1.0, %v1175_v22  ;;  %v4079_v30 = vadd.f32 %v1123_v25, %v1077_v9 }
 0x29e   : > { %v1206_v29 = vsub.f32 2.0, %v1198_v21  ;;  %v1197_v32 = vmul.f32 %v3711_v26, %v1181_v2  ;;  %v1227_v61 = vadd.f32 -1.4531521, %v1219_v49  ;;  %v1236_v22 = vmul.f32 %v1228_v42, %v4071_v20 }
 0x29f   : > { %v4082_v33 = vand.u32 2147483647, %v4075_v24  ;;  %3714 = vrcp.f32 %v1183_v28  ;;  %v4087_v38 = vmul.f32 0.70710677, %v4079_v30  ;;  %v1295_v25 = vsub.f32 0.0, %v4067_v14 }
 0x2a0   : > { %v4084_v36 = vmul.f32 %v3709_v16, %v1206_v29  ;;  %v1205_v43 = vsub.f32 2.0, %v1197_v32  ;;  %3716 = vpow2.f32 %v1309_v31  ;;  %v1235_v10 = vmul.f32 %v1227_v61, %v4077_v27 }
 0x2a1   : > { %v1178_v44 = vmul.f32 0.3275911, %v4082_v33  ;;  %v4093_v48 = vand.u32 2147483647, %v4087_v38  ;;  %v1313_v31 = vmul.f32 1.442695, %v1302_v5 }
 0x2a2   : > { %v1222_v57 = vmul.f32 1.0614054, %v4084_v36  ;;  %v4098_v1 = vmul.f32 %v3711_v26, %v1205_v43  ;;  %v1243_v21 = vadd.f32 1.4214138, %v1235_v10  ;;  %v1304_v43 = vmul.f32 %v1296_v15, %v4060_v6 }
 0x2a3   : > { %v3713_v54 = vpop.eup %3712  ;;  %v1186_v56 = vadd.f32 1.0, %v1178_v44  ;;  %v1177_v60 = vmul.f32 0.3275911, %v4093_v48 }
 0x2a4   : > { %v1200_v58 = vmul.f32 %v3713_v54, %v1184_v18  ;;  %v1230_v2 = vadd.f32 -1.4531521, %v1222_v57  ;;  %v1221_v29 = vmul.f32 1.0614054, %v4098_v1  ;;  %v1251_v32 = vmul.f32 %v1243_v21, %v4077_v27 }
 0x2a5   : > { %3718 = vrcp.f32 %v1186_v56  ;;  %v3715_v4 = vpop.eup %3714  ;;  %v1185_v9 = vadd.f32 1.0, %v1177_v60  ;;  %v1303_v60 = vmul.f32 %v1295_v25, %v4067_v14  ;;  %v1317_v5 = vmul.f32 1.442695, %v1304_v43 }
 0x2a6   : > { %v1208_v7 = vsub.f32 2.0, %v1200_v58  ;;  %v1199_v16 = vmul.f32 %v3715_v4, %v1183_v28  ;;  %v1238_v17 = vmul.f32 %v1230_v2, %v4084_v36  ;;  %v4108_v23 = vpop.eup %3716  ;;  %v1229_v46 = vadd.f32 -1.4531521, %v1221_v29 }
 0x2a7   : > { %3720 = vrcp.f32 %v1185_v9  ;;  %v1259_v57 = vadd.f32 -0.28449672, %v1251_v32  ;;  %v1244_v58 = vadd.f32 1.4214138, %v1236_v22  ;;  %v1315_v21 = vmul.f32 1.442695, %v1303_v60 }
 0x2a8   : > { %v4105_v18 = vmul.f32 %v3713_v54, %v1208_v7  ;;  %v1207_v51 = vsub.f32 2.0, %v1199_v16  ;;  %v1246_v26 = vadd.f32 1.4214138, %v1238_v17  ;;  %3722 = vpow2.f32 %v1307_v0 }
 0x2a9   : > { %v1237_v0 = vmul.f32 %v1229_v46, %v4098_v1  ;;  %3724 = vpow2.f32 %v1313_v31  ;;  %v1252_v16 = vmul.f32 %v1244_v58, %v4071_v20 }
 0x2aa   : > { %v1224_v28 = vmul.f32 1.0614054, %v4105_v18  ;;  %v4116_v44 = vmul.f32 %v3715_v4, %v1207_v51  ;;  %v1254_v42 = vmul.f32 %v1246_v26, %v4084_v36  ;;  %v1267_v4 = vmul.f32 %v1259_v57, %v4077_v27 }
 0x2ab   : > { %v3719_v40 = vpop.eup %3718  ;;  %v1245_v17 = vadd.f32 1.4214138, %v1237_v0  ;;  %3726 = vpow2.f32 %v1317_v5  ;;  %v1260_v57 = vadd.f32 -0.28449672, %v1252_v16  ;;  %v1311_v0 = vmul.f32 1.442695, %v1301_v41 }
 0x2ac   : > { %v1202_v49 = vmul.f32 %v3719_v40, %v1186_v56  ;;  %v1232_v54 = vadd.f32 -1.4531521, %v1224_v28  ;;  %v1223_v61 = vmul.f32 1.0614054, %v4116_v44  ;;  %v1298_v56 = vsub.f32 0.0, %v4082_v33 }
 0x2ad   : > { %v3721_v2 = vpop.eup %3720  ;;  %v1262_v25 = vadd.f32 -0.28449672, %v1254_v42  ;;  %v1275_v29 = vadd.f32 0.2548296, %v1267_v4  ;;  %3728 = vpow2.f32 %v1315_v21 }
 0x2ae   : > { %v1210_v55 = vsub.f32 2.0, %v1202_v49  ;;  %v1240_v6 = vmul.f32 %v1232_v54, %v4105_v18  ;;  %v1201_v7 = vmul.f32 %v3721_v2, %v1185_v9  ;;  %v1231_v10 = vadd.f32 -1.4531521, %v1223_v61  ;;  %v3723_v11 = vpop.eup %3722 }
 0x2af   : > { %v1253_v9 = vmul.f32 %v1245_v17, %v4098_v1  ;;  %v1306_v28 = vmul.f32 %v1298_v56, %v4082_v33  ;;  %v4136_v46 = vpop.eup %3724  ;;  %v1270_v61 = vmul.f32 %v1262_v25, %v4084_v36  ;;  %3730 = vpow2.f32 %v1311_v0 }
 0x2b0   : > { %v4125_v14 = vmul.f32 %v3719_v40, %v1210_v55  ;;  %v1248_v15 = vadd.f32 1.4214138, %v1240_v6  ;;  %v1209_v22 = vsub.f32 2.0, %v1201_v7  ;;  %v1239_v51 = vmul.f32 %v1231_v10, %v4116_v44 }
 0x2b1   : > { %v1297_v40 = vsub.f32 0.0, %v4093_v48  ;;  %v1261_v42 = vadd.f32 -0.28449672, %v1253_v9  ;;  %v1321_v6 = vmul.f32 1.442695, %v1306_v28 }
 0x2b2   : > { %v1256_v26 = vmul.f32 %v1248_v15, %v4105_v18  ;;  %v1226_v31 = vmul.f32 1.0614054, %v4125_v14  ;;  %v4133_v32 = vmul.f32 %v3721_v2, %v1209_v22  ;;  %v1247_v43 = vadd.f32 1.4214138, %v1239_v51 }
 0x2b3   : > { %v1283_v2 = vmul.f32 %v1275_v29, %v4077_v27  ;;  %v1305_v56 = vmul.f32 %v1297_v40, %v4093_v48  ;;  %v1268_v15 = vmul.f32 %v1260_v57, %v4071_v20  ;;  %v1278_v17 = vadd.f32 0.2548296, %v1270_v61  ;;  %v3727_v27 = vpop.eup %3726 }
 0x2b4   : > { %v1264_v49 = vadd.f32 -0.28449672, %v1256_v26  ;;  %v1234_v54 = vadd.f32 -1.4531521, %v1226_v31  ;;  %v1255_v58 = vmul.f32 %v1247_v43, %v4116_v44  ;;  %v1225_v60 = vmul.f32 1.0614054, %v4133_v32  ;;  %v3729_v40 = vpop.eup %3728 }
 0x2b5   : > { %v1269_v22 = vmul.f32 %v1261_v42, %v4098_v1  ;;  %v1323_v51 = vmul.f32 %v3723_v11, %v1283_v2  ;;  %3732 = vpow2.f32 %v1321_v6  ;;  %v1319_v29 = vmul.f32 1.442695, %v1305_v56  ;;  %v3736_v42 = vld [vmem:[#allocation3] sm:$0xff]  ;;  %v3731_v0 = vpop.eup %3730 }
 0x2b6   : > { %v1272_v33 = vmul.f32 %v1264_v49, %v4105_v18  ;;  %v1242_v55 = vmul.f32 %v1234_v54, %v4125_v14  ;;  %v1263_v4 = vadd.f32 -0.28449672, %v1255_v58  ;;  %v1233_v5 = vadd.f32 -1.4531521, %v1225_v60  ;;  %1396 = vst.msk [vmem:[#allocation3 + $0x40] sm:$0xff] %vm1389_vm8, %v3736_v42 }
 0x2b7   : > { %v1276_v28 = vadd.f32 0.2548296, %v1268_v15  ;;  %v1286_v54 = vmul.f32 %v1278_v17, %v4084_v36  ;;  %v1277_v57 = vadd.f32 0.2548296, %v1269_v22  ;;  %3734 = vpow2.f32 %v1319_v29  ;;  %1390 = vst.msk [vmem:[#allocation3 + $0x10] sm:$0xff] %vm1389_vm8, %v3736_v42 }
 0x2b8   : > { %v1280_v7 = vadd.f32 0.2548296, %v1272_v33  ;;  %v1250_v10 = vadd.f32 1.4214138, %v1242_v55  ;;  %v1271_v16 = vmul.f32 %v1263_v4, %v4116_v44  ;;  %v1241_v41 = vmul.f32 %v1233_v5, %v4133_v32  ;;  %1393 = vst.msk [vmem:[#allocation3 + $0x28] sm:$0xff] %vm1389_vm8, %v3736_v42 }
 0x2b9   : > { %v1284_v2 = vmul.f32 %v1276_v28, %v4071_v20  ;;  %v1285_v4 = vmul.f32 %v1277_v57, %v4098_v1  ;;  %1399 = vst.msk [vmem:[#allocation3 + $0x58] sm:$0xff] %vm1389_vm8, %v3736_v42  ;;  %v1368_v20 = vmul.f32 0.5, %v4051_v59  ;;  %vm1346_vm8 = vcmp.ge.f32.partialorder %v4075_v24, 0.0 }
 0x2ba   : > { %v1288_v21 = vmul.f32 %v1280_v7, %v4105_v18  ;;  %v1258_v25 = vmul.f32 %v1250_v10, %v4125_v14  ;;  %v1279_v48 = vadd.f32 0.2548296, %v1271_v16  ;;  %v1249_v26 = vadd.f32 1.4214138, %v1241_v41 }
 0x2bb   : > { %v1331_v18 = vsub.f32 1.0, %v1323_v51  ;;  %v3733_v36 = vpop.eup %3732  ;;  %v1326_v10 = vmul.f32 %v4136_v46, %v1286_v54  ;;  %v1367_v41 = vmul.f32 0.5, %v4057_v3  ;;  %v1324_v17 = vmul.f32 %v4108_v23, %v1284_v2 }
 0x2bc   : > { %v1328_v31 = vmul.f32 %v3727_v27, %v1288_v21  ;;  %v1266_v9 = vadd.f32 -0.28449672, %v1258_v25  ;;  %v1287_v43 = vmul.f32 %v1279_v48, %v4116_v44  ;;  %v1257_v49 = vmul.f32 %v1249_v26, %v4133_v32 }
 0x2bd   : > { %v1347_v56 = vsub.f32 0.0, %v1331_v18  ;;  %v1325_v21 = vmul.f32 %v3731_v0, %v1285_v4  ;;  %v3735_v46 = vpop.eup %3734  ;;  %v1334_v48 = vsub.f32 1.0, %v1326_v10  ;;  %v1365_v2 = vmul.f32 0.5, %v4039_v50 }
 0x2be   : > { %v1336_v58 = vsub.f32 1.0, %v1328_v31  ;;  %v1274_v11 = vmul.f32 %v1266_v9, %v4125_v14  ;;  %v1327_v60 = vmul.f32 %v3729_v40, %v1287_v43  ;;  %v1265_v61 = vadd.f32 -0.28449672, %v1257_v49 }
 0x2bf   : > { %v1355_v59 = vsel %vm1339_vm9, %v1331_v18, %v1347_v56  ;;  %v1332_v31 = vsub.f32 1.0, %v1324_v17  ;;  %v1333_v9 = vsub.f32 1.0, %v1325_v21  ;;  %v1350_v28 = vsub.f32 0.0, %v1334_v48 }
 0x2c0   : > { %v1352_v44 = vsub.f32 0.0, %v1336_v58  ;;  %v1282_v33 = vadd.f32 0.2548296, %v1274_v11  ;;  %v1335_v55 = vsub.f32 1.0, %v1327_v60  ;;  %v1273_v6 = vmul.f32 %v1265_v61, %v4133_v32 }
 0x2c1   : > { %v1371_v23 = vadd.f32 1.0, %v1355_v59  ;;  %vm1342_vm9 = vcmp.ge.f32.partialorder %v4037_v47, 0.0  ;;  %v1370_v49 = vmul.f32 0.5, %v4069_v19  ;;  %v1348_v57 = vsub.f32 0.0, %v1332_v31 }
 0x2c2   : > { %v1360_v5 = vsel %vm1344_vm4, %v1336_v58, %v1352_v44  ;;  %v1290_v7 = vmul.f32 %v1282_v33, %v4125_v14  ;;  %v1351_v16 = vsub.f32 0.0, %v1335_v55  ;;  %v1281_v63 = vadd.f32 0.2548296, %v1273_v6 }
 0x2c3   : > { %v1376_v15 = vadd.f32 1.0, %v1360_v5  ;;  %vm1345_vm4 = vcmp.ge.f32.partialorder %v4087_v38, 0.0  ;;  %v1379_v24 = vmul.f32 %v1371_v23, %v1363_v39  ;;  %v1349_v58 = vsub.f32 0.0, %v1333_v9 }
 0x2c4   : > { %v1330_v1 = vmul.f32 %v3733_v36, %v1290_v7  ;;  %v1359_v27 = vsel %vm1343_vm5, %v1335_v55, %v1351_v16  ;;  %v1289_v14 = vmul.f32 %v1281_v63, %v4133_v32  ;;  %v1369_v18 = vmul.f32 0.5, %v4079_v30 }
 0x2c5   : > { %v1384_v22 = vmul.f32 %v1376_v15, %v1368_v20  ;;  %v1375_v51 = vadd.f32 1.0, %v1359_v27  ;;  %v1358_v61 = vsel %vm1342_vm9, %v1334_v48, %v1350_v28  ;;  %vm1340_vm5 = vcmp.ge.f32.partialorder %v4025_v35, 0.0  ;;  %v2916_v48 = vld [vmem:[%s4627_s6] sm:$0xff] }
 0x2c6   : > { %v1338_v25 = vsub.f32 1.0, %v1330_v1  ;;  %v1329_v8 = vmul.f32 %v3735_v46, %v1289_v14  ;;  %v1374_v47 = vadd.f32 1.0, %v1358_v61  ;;  %v1356_v19 = vsel %vm1340_vm5, %v1332_v31, %v1348_v57  ;;  %v4247_v31 = vld [vmem:[%s4626_s5 + $0x8] sm:$0xff] }
 0x2c7   : > { %1418 = vrot.lane.b32.xlu2 %v1384_v22, %s3746_s30  ;;  %v1383_v3 = vmul.f32 %v1375_v51, %v1367_v41  ;;  %v1366_v38 = vmul.f32 0.5, %v4034_v45  ;;  %v1372_v30 = vadd.f32 1.0, %v1356_v19  ;;  %v1364_v33 = vmul.f32 0.5, %v4022_v34 }
 0x2c8   : > { %v1354_v26 = vsub.f32 0.0, %v1338_v25  ;;  %v1337_v29 = vsub.f32 1.0, %v1329_v8  ;;  %vm1440_vm9 = vcmask 1047688  }
 0x2c9   : > { %1416 = vrot.lane.b32.xlu1 %v1383_v3, %s3746_s30  ;;  %v1382_v44 = vmul.f32 %v1374_v47, %v1366_v38  ;;  %v1380_v35 = vmul.f32 %v1372_v30, %v1364_v33 }
 0x2ca   : > { %v1362_v32 = vsel %vm1346_vm8, %v1338_v25, %v1354_v26  ;;  %v1353_v40 = vsub.f32 0.0, %v1337_v29  ;;  %vm1341_vm8 = vcmp.ge.f32.partialorder %v4045_v52, 0.0 }
 0x2cb   : > { %v1378_v43 = vadd.f32 1.0, %v1362_v32  ;;  %v1357_v42 = vsel %vm1341_vm8, %v1333_v9, %v1349_v58 }
 0x2cc   : > { %v1361_v54 = vsel %vm1345_vm4, %v1337_v29, %v1353_v40  ;;  %v1373_v0 = vadd.f32 1.0, %v1357_v42 }
 0x2cd   : > { %v1377_v11 = vadd.f32 1.0, %v1361_v54  ;;  %v1386_v60 = vmul.f32 %v1378_v43, %v1370_v49 }
 0x2ce   : > { %v1381_v52 = vmul.f32 %v1373_v0, %v1365_v2 }
 0x2cf   : > { %1408 = vrot.lane.b32.xlu2 %v1379_v24, %s3746_s30  ;;  %v1385_v37 = vmul.f32 %v1377_v11, %v1369_v18  ;;  %v4260_v24 = vld [vmem:[%s4626_s5] sm:$0xff] }
 0x2d1   : > { %1420 = vrot.lane.b32.xlu0 %v1385_v37, %s3746_s30  ;;  %1422 = vrot.lane.b32.xlu1 %v1386_v60, %s3746_s30  ;;  %v4287_v37 = vld [vmem:[%s4626_s5 + $0x10] sm:$0xff] }
 0x2d7   : > { %1414 = vrot.lane.b32.xlu2 %v1382_v44, %s3746_s30 }
 0x2d9   : > { %1410 = vrot.lane.b32.xlu0 %v1380_v35, %s3746_s30  ;;  %1412 = vrot.lane.b32.xlu1 %v1381_v52, %s3746_s30 }
 0x321   : > { %v1419_v36 = vpop.permute.xlu2 %1418 }
 0x322   : > { %1449 = vst.msk [vmem:[#allocation3 + $0x40] sm:$0xff] %vm318_vm3, %v1419_v36 }
 0x329   : > { %v1409_v45 = vpop.permute.xlu2 %1408  ;;  %v1462_v16 = vld [vmem:[#allocation3 + $0x40] sm:$0xff] }
 0x32a   : > { %1441 = vst.msk [vmem:[#allocation3] sm:$0xff] %vm1440_vm9, %v1409_v45 }
 0x331   : > { %v1415_v55 = vpop.permute.xlu2 %1414  ;;  %v1693_v51 = vld [vmem:[#allocation3] sm:$0xff] }
 0x332   : > { %1446 = vst.msk [vmem:[#allocation3 + $0x28] sm:$0xff] %vm318_vm3, %v1415_v55 }
 0x339   : > { %v1630_v34 = vld [vmem:[#allocation3 + $0x28] sm:$0xff] }
 0x33a   : > { %1638 = vrot.lane.b32.xlu2 %v1630_v34, %s3749_s10 }
 0x33b   : > { %v1417_v50 = vpop.permute.xlu1 %1416 }
 0x33c   : > { %v1426_v6 = vsel %vm318_vm3, %v1417_v50, %v1419_v36  ;;  %1447 = vst.msk [vmem:[#allocation3 + $0x30] sm:$0xff] %vm1440_vm9, %v1417_v50 }
 0x343   : > { %v1421_v4 = vpop.permute.xlu0 %1420  ;;  %v1423_v5 = vpop.permute.xlu1 %1422  ;;  %v1460_v56 = vld [vmem:[#allocation3 + $0x30] sm:$0xff] }
 0x344   : > { %1450 = vst.msk [vmem:[#allocation3 + $0x48] sm:$0xff] %vm1440_vm9, %v1421_v4  ;;  %v4200_v7 = vsel %vm318_vm3, %v1421_v4, %v1423_v5  ;;  %v3636_v10 = vpack.i.bf16 %v1426_v6, %v1460_v56 }
 0x345   : > { %1452 = vst.msk [vmem:[#allocation3 + $0x58] sm:$0xff] %vm318_vm3, %v1423_v5 }
 0x346   : > { %3637 = vrot.lane.b32.xlu0 %v3636_v10, %s3747_s8 }
 0x34b   : > { %v1411_v20 = vpop.permute.xlu0 %1410  ;;  %v1413_v15 = vpop.permute.xlu1 %1412  ;;  %v1565_v63 = vld [vmem:[#allocation3 + $0x48] sm:$0xff] }
 0x34c   : > { %v1424_v41 = vsel %vm318_vm3, %v1409_v45, %v1411_v20  ;;  %1443 = vst.msk [vmem:[#allocation3 + $0x10] sm:$0xff] %vm318_vm3, %v1411_v20  ;;  %v1425_v1 = vsel %vm318_vm3, %v1413_v15, %v1415_v55  ;;  %v3641_v17 = vpack.i.bf16 %v1565_v63, %v1462_v16  ;;  %v1567_v22 = vld [vmem:[#allocation3 + $0x58] sm:$0xff]  ;;  %vm1476_vm3 = vcmask 64512   ;;  %v4311_v55 = vld [vmem:[%s4626_s5 + $0x20] sm:$0xff] }
 0x34d   : > { %1444 = vst.msk [vmem:[#allocation3 + $0x18] sm:$0xff] %vm1440_vm9, %v1413_v15  ;;  %v3656_v27 = vpack.i.bf16 %v1567_v22, %v4200_v7  ;;  %v3661_v21 = vpack.i.bf16 %v1630_v34, %v1425_v1  ;;  %v3646_v25 = vpack.i.bf16 %v1424_v41, %v1693_v51  ;;  %v4352_v15 = vld [vmem:[%s4626_s5 + $0x30] sm:$0xff] }
 0x34e   : > { %3642 = vrot.lane.b32.xlu1 %v3641_v17, %s3747_s8 }
 0x34f   : > { %3657 = vrot.lane.b32.xlu2 %v3656_v27, %s3747_s8 }
 0x353   : > { %v1695_v46 = vld [vmem:[#allocation3 + $0x10] sm:$0xff] }
 0x354   : > { %v1628_v14 = vld [vmem:[#allocation3 + $0x18] sm:$0xff] }
 0x355   : > { %1634 = vrot.lane.b32.xlu0 %v1628_v14, %s3749_s10  ;;  %v3651_v59 = vpack.i.bf16 %v1628_v14, %v1695_v46 }
 0x356   : > { %1636 = vrot.lane.b32.xlu1 %v1425_v1, %s3749_s10 }
 0x357   : > { %3662 = vrot.lane.b32.xlu2 %v3661_v21, %s3750_s11 }
 0x35d   : > { %3647 = vrot.lane.b32.xlu0 %v3646_v25, %s3750_s11 }
 0x35e   : > { %3652 = vrot.lane.b32.xlu1 %v3651_v59, %s3750_s11 }
 0x35f   : > { %1817 = vrot.lane.b32.xlu2 %v1567_v22, %s3749_s10 }
 0x365   : > { %1813 = vrot.lane.b32.xlu0 %v1565_v63, %s3749_s10 }
 0x366   : > { %1815 = vrot.lane.b32.xlu1 %v4200_v7, %s3749_s10 }
 0x367   : > { %3677 = vrot.lane.b32.xlu2 %v3656_v27, %s3750_s11 }
 0x36d   : > { %3667 = vrot.lane.b32.xlu0 %v3636_v10, %s3750_s11 }
 0x36e   : > { %3672 = vrot.lane.b32.xlu1 %v3641_v17, %s3750_s11 }
 0x36f   : > { %2093 = vrot.lane.b32.xlu2 %v1462_v16, %s3748_s9 }
 0x375   : > { %2089 = vrot.lane.b32.xlu0 %v1460_v56, %s3748_s9 }
 0x376   : > { %2091 = vrot.lane.b32.xlu1 %v1426_v6, %s3748_s9  ;;  %s4608_s9 = scalar_lea.vmem %s4628_s7, %s3613_s29 }
 0x377   : > { %2249 = vrot.lane.b32.xlu2 %v1695_v46, %s3751_s12 }
 0x37d   : > { %2245 = vrot.lane.b32.xlu0 %v1693_v51, %s3751_s12 }
 0x37e   : > { %2247 = vrot.lane.b32.xlu1 %v1424_v41, %s3751_s12 }
 0x37f   : > { %2399 = vrot.lane.b32.xlu2 %v1462_v16, %s3751_s12  ;;  %v4357_v16 = vld [vmem:[%s4626_s5 + $0x28] sm:$0xff] }
 0x385   : > { %2395 = vrot.lane.b32.xlu0 %v1460_v56, %s3751_s12 }
 0x386   : > { %2397 = vrot.lane.b32.xlu1 %v1426_v6, %s3751_s12 }
 0x387   : > { %2745 = vrot.lane.b32.xlu2 %v1630_v34, %s3752_s13  ;;  %v4318_v34 = vld [vmem:[%s4626_s5 + $0x18] sm:$0xff] }
 0x38d   : > { %2741 = vrot.lane.b32.xlu0 %v1628_v14, %s3752_s13 }
 0x38e   : > { %2743 = vrot.lane.b32.xlu1 %v1425_v1, %s3752_s13 }
 0x38f   : > { %3692 = vrot.lane.b32.xlu2 %v3661_v21, %s3753_s14 }
 0x394   : > { %v1639_v8 = vpop.permute.xlu2 %1638 }
 0x395   : > { %3682 = vrot.lane.b32.xlu0 %v3646_v25, %s3753_s14  ;;  %v4392_v25 = vld [vmem:[%s4626_s5 + $0x38] sm:$0xff] }
 0x396   : > { %3687 = vrot.lane.b32.xlu1 %v3651_v59, %s3753_s14 }
 0x397   : > { %3301 = vrot.lane.b32.xlu2 %v1695_v46, %s3754_s15 }
 0x39d   : > { %3297 = vrot.lane.b32.xlu0 %v1693_v51, %s3754_s15  ;;  %v4379_v51 = vld [vmem:[%s4626_s5 + $0x40] sm:$0xff] }
 0x39e   : > { %3299 = vrot.lane.b32.xlu1 %v1424_v41, %s3754_s15 }
 0x39f   : > { %2919 = vperm.xlu2 %3634, %v2916_v48  }
 0x3a5   : > { %1987 = vperm.xlu0 %3635, %v2916_v48  }
 0x3a6   : > { %2455 = vperm.xlu1 %3633, %v2916_v48  }
 0x3a9   : > { %v3658_v3 = vpop.permute.xlu2 %3657 }
 0x3aa   : > { %v3659_v39 = vunpack.i.l.bf16 %v3658_v3  ;;  %v3660_v49 = vunpack.i.h.bf16 %v3658_v3 }
 0x3ac   : > { %v4275_v58 = vsel %vm360_vm12, %v3659_v39, %v3660_v49 }
 0x3ad   : > { %3357 = vperm.xlu0 %3635, %v2916_v48  }
 0x3b1   : > { %v3663_v32 = vpop.permute.xlu2 %3662 }
 0x3b2   : > { %v3664_v19 = vunpack.i.l.bf16 %v3663_v32  ;;  %v3665_v2 = vunpack.i.h.bf16 %v3663_v32 }
 0x3b4   : > { %v4328_v4 = vsel %vm635_vm15, %v3664_v19, %v3665_v2 }
 0x3b8   : > { %v3638_v26 = vpop.permute.xlu0 %3637 }
 0x3b9   : > { %v3640_v23 = vunpack.i.h.bf16 %v3638_v26  ;;  %v3639_v29 = vunpack.i.l.bf16 %v3638_v26  ;;  %v1818_v60 = vpop.permute.xlu2 %1817 }
 0x3bb   : > { %v4250_v9 = vsel %vm360_vm12, %v3639_v29, %v3640_v23 }
 0x3bc   : > { %1495 = vmatpush.msrb.mxu0 %v4250_v9 }
 0x3bd   : > { %3483 = vmatmul.msk.f32.vlgmr.msrb.gmra.mxu0 %vm1476_vm3, %v4247_v31 }
 0x3be   : > { %3485 = vmatpush.msk.msra.mxu0 %vm3824_vm6, %v1565_v63 }
 0x3c0   : > { %v3643_v28 = vpop.permute.xlu1 %3642 }
 0x3c1   : > { %v3645_v40 = vunpack.i.h.bf16 %v3643_v28  ;;  %v3644_v43 = vunpack.i.l.bf16 %v3643_v28  ;;  %v3678_v35 = vpop.permute.xlu2 %3677 }
 0x3c2   : > { %v3680_v50 = vunpack.i.h.bf16 %v3678_v35  ;;  %v3679_v6 = vunpack.i.l.bf16 %v3678_v35 }
 0x3c3   : > { %v1473_v54 = vsel %vm360_vm12, %v3640_v23, %v3644_v43  ;;  %v4264_v57 = vsel %vm360_vm12, %v3645_v40, %v3659_v39 }
 0x3c4   : > { %1515 = vmatpush.msrb.mxu1 %v1473_v54  ;;  %1599 = vmatpush.msrb.mxu0 %v4264_v57  ;;  %v4346_v20 = vsel %vm635_vm15, %v3679_v6, %v3680_v50 }
 0x3c5   : > { %3484 = vmatmul.msk.f32.vlgmr.msrb.gmra.mxu1 %vm1476_vm3, %v4247_v31  ;;  %3486 = vmatmul.msk.f32.vlgmr.msra.gmra.mxu0 %vm1476_vm3, %v4260_v24 }
 0x3c6   : > { %3487 = vmatpush.msk.msra.mxu1 %vm3830_vm7, %v4200_v7 }
 0x3c7   : > { %v1635_v18 = vpop.permute.xlu0 %1634 }
 0x3c8   : > { %1619 = vmatpush.msrb.mxu1 %v4275_v58  ;;  %v1637_v11 = vpop.permute.xlu1 %1636 }
 0x3c9   : > { %v4279_v61 = vsel %vm559_vm14, %v1635_v18, %v1637_v11  ;;  %v4290_v47 = vsel %vm559_vm14, %v1637_v11, %v1639_v8  ;;  %v2094_v59 = vpop.permute.xlu2 %2093 }
 0x3ca   : > { %3493 = vmatpush.msk.msra.mxu0 %vm3824_vm6, %v4279_v61 }
 0x3cd   : > { %3488 = vmatmul.msk.f32.vlgmr.msra.gmra.mxu1 %vm1476_vm3, %v4260_v24  ;;  %3490 = vmatmul.msk.f32.vlgmr.msrb.gmra.mxu0 %vm1476_vm3, %v4287_v37 }
 0x3ce   : > { %3495 = vmatpush.msk.msra.mxu1 %vm3830_vm7, %v4290_v47 }
 0x3cf   : > { %v3648_v42 = vpop.permute.xlu0 %3647 }
 0x3d0   : > { %v3653_v38 = vpop.permute.xlu1 %3652  ;;  %v3650_v30 = vunpack.i.h.bf16 %v3648_v42  ;;  %v3649_v0 = vunpack.i.l.bf16 %v3648_v42 }
 0x3d1   : > { %v3655_v44 = vunpack.i.h.bf16 %v3653_v38  ;;  %v3654_v33 = vunpack.i.l.bf16 %v3653_v38  ;;  %v2250_v23 = vpop.permute.xlu2 %2249 }
 0x3d2   : > { %v4300_v52 = vsel %vm635_vm15, %v3649_v0, %v3650_v30 }
 0x3d3   : > { %v4303_v36 = vsel %vm635_vm15, %v3650_v30, %v3654_v33  ;;  %v4306_v45 = vsel %vm635_vm15, %v3655_v44, %v3664_v19  ;;  %1727 = vmatpush.msrb.mxu2 %v4300_v52 }
 0x3d4   : > { %1747 = vmatpush.msrb.mxu3 %v4303_v36  ;;  %1784 = vmatpush.msrb.mxu0 %v4306_v45 }
 0x3d5   : > { %3491 = vmatmul.msk.f32.vlgmr.msrb.gmra.mxu1 %vm1476_vm3, %v4287_v37  ;;  %3498 = vmatmul.msk.f32.vlgmr.msrb.gmra.mxu2 %vm1476_vm3, %v4311_v55 }
 0x3d6   : > { %3499 = vmatmul.msk.f32.vlgmr.msrb.gmra.mxu3 %vm1476_vm3, %v4311_v55  ;;  %1804 = vmatpush.msrb.mxu1 %v4328_v4 }
 0x3d7   : > { %3494 = vmatmul.msk.f32.vlgmr.msra.gmra.mxu0 %vm1476_vm3, %v4318_v34  ;;  %v1814_v5 = vpop.permute.xlu0 %1813 }
 0x3d8   : > { %v1816_v56 = vpop.permute.xlu1 %1815 }
 0x3d9   : > { %v4334_v7 = vsel %vm559_vm14, %v1814_v5, %v1816_v56  ;;  %v4337_v10 = vsel %vm559_vm14, %v1816_v56, %v1818_v60  ;;  %v2400_v49 = vpop.permute.xlu2 %2399 }
 0x3da   : > { %3504 = vmatpush.msk.msra.mxu2 %vm3824_vm6, %v4334_v7  ;;  %3506 = vmatpush.msk.msra.mxu3 %vm3830_vm7, %v4337_v10 }
 0x3dc   : > { %1977 = vmatpush.msrb.mxu3 %v4346_v20 }
 0x3dd   : > { %3496 = vmatmul.msk.f32.vlgmr.msra.gmra.mxu1 %vm1476_vm3, %v4318_v34  ;;  %3505 = vmatmul.msk.f32.vlgmr.msra.gmra.mxu2 %vm1476_vm3, %v4352_v15 }
 0x3de   : > { %3507 = vmatmul.msk.f32.vlgmr.msra.gmra.mxu3 %vm1476_vm3, %v4352_v15 }
 0x3df   : > { %2077 = vmatpush.msra.mxu3 %v1473_v54  ;;  %3501 = vmatmul.msk.f32.vlgmr.msrb.gmra.mxu0 %vm1476_vm3, %v4357_v16  ;;  %v3668_v63 = vpop.permute.xlu0 %3667 }
 0x3e0   : > { %v3673_v41 = vpop.permute.xlu1 %3672  ;;  %v3670_v1 = vunpack.i.h.bf16 %v3668_v63  ;;  %v3669_v17 = vunpack.i.l.bf16 %v3668_v63 }
 0x3e1   : > { %v3675_v22 = vunpack.i.h.bf16 %v3673_v41  ;;  %v3674_v27 = vunpack.i.l.bf16 %v3673_v41 }
 0x3e2   : > { %v4368_v14 = vsel %vm635_vm15, %v3669_v17, %v3670_v1 }
 0x3e3   : > { %v4371_v21 = vsel %vm635_vm15, %v3670_v1, %v3674_v27  ;;  %v4374_v46 = vsel %vm635_vm15, %v3675_v22, %v3679_v6  ;;  %1900 = vmatpush.msra.mxu0 %v4368_v14 }
 0x3e4   : > { %1920 = vmatpush.msra.mxu1 %v4371_v21  ;;  %1957 = vmatpush.msrb.mxu2 %v4374_v46 }
 0x3e5   : > { %2014 = vmatpush.msrb.mxu0 %v4264_v57  ;;  %3502 = vmatmul.msk.f32.vlgmr.msrb.gmra.mxu1 %vm1476_vm3, %v4357_v16  ;;  %v2746_v57 = vpop.permute.xlu2 %2745 }
 0x3e6   : > { %3512 = vmatmul.msk.f32.vlgmr.msrb.gmra.mxu2 %vm1476_vm3, %v4379_v51  ;;  %3513 = vmatmul.msk.f32.vlgmr.msrb.gmra.mxu3 %vm1476_vm3, %v4379_v51 }
 0x3e7   : > { %2034 = vmatpush.msrb.mxu1 %v4275_v58  ;;  %2057 = vmatpush.msra.mxu2 %v4250_v9  ;;  %v2090_v48 = vpop.permute.xlu0 %2089 }
 0x3e8   : > { %2185 = vmatpush.msrb.mxu3 %v4303_v36  ;;  %v2092_v8 = vpop.permute.xlu1 %2091  ;;  %3509 = vmatmul.msk.f32.vlgmr.msra.gmra.mxu0 %vm1476_vm3, %v4392_v25 }
 0x3e9   : > { %2165 = vmatpush.msrb.mxu2 %v4300_v52  ;;  %v2095_v3 = vsel %vm483_vm11, %v2090_v48, %v2092_v8  ;;  %v2096_v26 = vsel %vm483_vm11, %v2092_v8, %v2094_v59 }
 0x3ea   : > { %3520 = vmatpush.msk.msra.mxu0 %vm3896_vm13, %v2095_v3 }
 0x3ed   : > { %3510 = vmatmul.msk.f32.vlgmr.msra.gmra.mxu1 %vm1476_vm3, %v4392_v25 }
 0x3ee   : > { %3517 = vmatmul.msk.f32.vlgmr.msra.gmra.mxu2 %vm1476_vm3, %v4260_v24  ;;  %3518 = vmatmul.msk.f32.vlgmr.msra.gmra.mxu3 %vm1476_vm3, %v4260_v24 }
 0x3ef   : > { %3522 = vmatpush.msk.msra.mxu1 %vm3879_vm10, %v2096_v26  ;;  %v2246_v29 = vpop.permute.xlu0 %2245 }
 0x3f0   : > { %v2248_v9 = vpop.permute.xlu1 %2247  ;;  %3515 = vmatmul.msk.f32.vlgmr.msrb.gmra.mxu0 %vm1476_vm3, %v4247_v31 }
 0x3f1   : > { %v4417_v32 = vsel %vm705_vm0, %v2246_v29, %v2248_v9  ;;  %v4420_v28 = vsel %vm705_vm0, %v2248_v9, %v2250_v23  ;;  %2211 = vmatpush.msrb.mxu0 %v4306_v45 }
 0x3f2   : > { %3531 = vmatpush.msk.msra.mxu2 %vm3896_vm13, %v4417_v32  ;;  %3533 = vmatpush.msk.msra.mxu3 %vm3879_vm10, %v4420_v28 }
 0x3f5   : > { %3516 = vmatmul.msk.f32.vlgmr.msrb.gmra.mxu1 %vm1476_vm3, %v4247_v31 }
 0x3f6   : > { %3525 = vmatmul.msk.f32.vlgmr.msrb.gmra.mxu2 %vm1476_vm3, %v4318_v34  ;;  %3526 = vmatmul.msk.f32.vlgmr.msrb.gmra.mxu3 %vm1476_vm3, %v4318_v34 }
 0x3f7   : > { %2231 = vmatpush.msrb.mxu1 %v4328_v4  ;;  %2367 = vmatpush.msrb.mxu2 %v4374_v46  ;;  %v2396_v40 = vpop.permute.xlu0 %2395 }
 0x3f8   : > { %2387 = vmatpush.msrb.mxu3 %v4346_v20  ;;  %3521 = vmatmul.msk.f32.vlgmr.msra.gmra.mxu0 %vm1476_vm3, %v4287_v37  ;;  %v2398_v39 = vpop.permute.xlu1 %2397 }
 0x3f9   : > { %2321 = vmatpush.msra.mxu0 %v4368_v14  ;;  %v4451_v43 = vsel %vm705_vm0, %v2396_v40, %v2398_v39  ;;  %v4459_v54 = vsel %vm705_vm0, %v2398_v39, %v2400_v49 }
 0x3fd   : > { %3523 = vmatmul.msk.f32.vlgmr.msra.gmra.mxu1 %vm1476_vm3, %v4287_v37 }
 0x3fe   : > { %3532 = vmatmul.msk.f32.vlgmr.msra.gmra.mxu2 %vm1476_vm3, %v4357_v16  ;;  %3534 = vmatmul.msk.f32.vlgmr.msra.gmra.mxu3 %vm1476_vm3, %v4357_v16 }
 0x3ff   : > { %2341 = vmatpush.msra.mxu1 %v4371_v21  ;;  %2482 = vmatpush.msra.mxu2 %v4300_v52  ;;  %v2742_v18 = vpop.permute.xlu0 %2741 }
 0x400   : > { %2502 = vmatpush.msra.mxu3 %v4303_v36  ;;  %3528 = vmatmul.msk.f32.vlgmr.msrb.gmra.mxu0 %vm1476_vm3, %v4311_v55  ;;  %v2744_v58 = vpop.permute.xlu1 %2743 }
 0x401   : > { %3542 = vmatpush.msk.msrb.mxu0 %vm3896_vm13, %v4451_v43  ;;  %v2747_v11 = vsel %vm781_vm1, %v2742_v18, %v2744_v58  ;;  %v2748_v60 = vsel %vm781_vm1, %v2744_v58, %v2746_v57 }
 0x405   : > { %3529 = vmatmul.msk.f32.vlgmr.msrb.gmra.mxu1 %vm1476_vm3, %v4311_v55 }
 0x406   : > { %3539 = vmatmul.msk.f32.vlgmr.msrb.gmra.mxu2 %vm1476_vm3, %v4392_v25  ;;  %3540 = vmatmul.msk.f32.vlgmr.msrb.gmra.mxu3 %vm1476_vm3, %v4392_v25 }
 0x407   : > { %3544 = vmatpush.msk.msrb.mxu1 %vm3879_vm10, %v4459_v54  ;;  %2569 = vmatpush.msrb.mxu2 %v4306_v45  ;;  %v3683_v19 = vpop.permute.xlu0 %3682 }
 0x408   : > { %2589 = vmatpush.msrb.mxu3 %v4328_v4  ;;  %3536 = vmatmul.msk.f32.vlgmr.msra.gmra.mxu0 %vm1476_vm3, %v4352_v15  ;;  %v3685_v0 = vunpack.i.h.bf16 %v3683_v19  ;;  %v3684_v44 = vunpack.i.l.bf16 %v3683_v19 }
 0x409   : > { %3549 = vmatpush.msk.msra.mxu0 %vm3824_vm6, %v4279_v61  ;;  %v3693_v61 = vpop.permute.xlu2 %3692 }
 0x40a   : > { %v3695_v42 = vunpack.i.h.bf16 %v3693_v61  ;;  %v3694_v38 = vunpack.i.l.bf16 %v3693_v61  ;;  %v2811_v33 = vsel %vm857_vm2, %v3684_v44, %v3685_v0 }
 0x40c   : > { %v2868_v13 = vsel %vm857_vm2, %v3694_v38, %v3695_v42 }
 0x40d   : > { %3537 = vmatmul.msk.f32.vlgmr.msra.gmra.mxu1 %vm1476_vm3, %v4352_v15 }
 0x40e   : > { %3547 = vmatmul.msk.f32.vlgmr.msra.gmra.mxu2 %vm1476_vm3, %v4247_v31  ;;  %3548 = vmatmul.msk.f32.vlgmr.msra.gmra.mxu3 %vm1476_vm3, %v4247_v31 }
 0x40f   : > { %3551 = vmatpush.msk.msra.mxu1 %vm3830_vm7, %v4290_v47  ;;  %2661 = vmatpush.msra.mxu2 %v4368_v14  ;;  %v3688_v47 = vpop.permute.xlu1 %3687 }
 0x410   : > { %2681 = vmatpush.msra.mxu3 %v4371_v21  ;;  %3543 = vmatmul.msk.f32.vlgmr.msrb.gmra.mxu0 %vm1476_vm3, %v4379_v51  ;;  %v3690_v30 = vunpack.i.h.bf16 %v3688_v47  ;;  %v3689_v2 = vunpack.i.l.bf16 %v3688_v47 }
 0x411   : > { %3557 = vmatpush.msk.msrb.mxu0 %vm3824_vm6, %v4334_v7 }
 0x412   : > { %v2867_v12 = vsel %vm857_vm2, %v3690_v30, %v3694_v38  ;;  %v2812_v35 = vsel %vm857_vm2, %v3685_v0, %v3689_v2 }
 0x415   : > { %3545 = vmatmul.msk.f32.vlgmr.msrb.gmra.mxu1 %vm1476_vm3, %v4379_v51 }
 0x416   : > { %3554 = vmatmul.msk.f32.vlgmr.msrb.gmra.mxu2 %vm1476_vm3, %v4287_v37  ;;  %3555 = vmatmul.msk.f32.vlgmr.msrb.gmra.mxu3 %vm1476_vm3, %v4287_v37 }
 0x417   : > { %3559 = vmatpush.msk.msrb.mxu1 %vm3830_vm7, %v4337_v10  ;;  %3568 = vmatpush.msk.msrb.mxu2 %vm3824_vm6, %v2747_v11  ;;  %vm4638_vm6 = vcmask 769024  }
 0x418   : > { %3570 = vmatpush.msk.msrb.mxu3 %vm3830_vm7, %v2748_v60  ;;  %3550 = vmatmul.msk.f32.vlgmr.msra.gmra.mxu0 %vm1476_vm3, %v4260_v24  ;;  %vm4639_vm7 = vmmov %vm4638_vm6 }
 0x419   : > { %2707 = vmatpush.msra.mxu0 %v4374_v46 }
 0x41d   : > { %3552 = vmatmul.msk.f32.vlgmr.msra.gmra.mxu1 %vm1476_vm3, %v4260_v24 }
 0x41e   : > { %3562 = vmatmul.msk.f32.vlgmr.msra.gmra.mxu2 %vm1476_vm3, %v4311_v55  ;;  %3563 = vmatmul.msk.f32.vlgmr.msra.gmra.mxu3 %vm1476_vm3, %v4311_v55 }
 0x41f   : > { %2727 = vmatpush.msra.mxu1 %v4346_v20  ;;  %2889 = vmatpush.msra.mxu2 %v2867_v12 }
 0x420   : > { %2909 = vmatpush.msra.mxu3 %v2868_v13  ;;  %3558 = vmatmul.msk.f32.vlgmr.msrb.gmra.mxu0 %vm1476_vm3, %v4318_v34 }
 0x421   : > { %2833 = vmatpush.msrb.mxu0 %v2811_v33 }
 0x425   : > { %3560 = vmatmul.msk.f32.vlgmr.msrb.gmra.mxu1 %vm1476_vm3, %v4318_v34 }
 0x426   : > { %3569 = vmatmul.msk.f32.vlgmr.msrb.gmra.mxu2 %vm1476_vm3, %v4352_v15  ;;  %3571 = vmatmul.msk.f32.vlgmr.msrb.gmra.mxu3 %vm1476_vm3, %v4352_v15 }
 0x427   : > { %2853 = vmatpush.msrb.mxu1 %v2812_v35  ;;  %2989 = vmatpush.msrb.mxu2 %v4300_v52 }
 0x428   : > { %3009 = vmatpush.msrb.mxu3 %v4303_v36  ;;  %3565 = vmatmul.msk.f32.vlgmr.msra.gmra.mxu0 %vm1476_vm3, %v4357_v16 }
 0x429   : > { %2946 = vmatpush.msra.mxu0 %v4306_v45  ;;  %v3300_v45 = vpop.permute.xlu1 %3299 }
 0x42d   : > { %3566 = vmatmul.msk.f32.vlgmr.msra.gmra.mxu1 %vm1476_vm3, %v4357_v16 }
 0x42e   : > { %3576 = vmatmul.msk.f32.vlgmr.msra.gmra.mxu2 %vm1476_vm3, %v4379_v51  ;;  %3577 = vmatmul.msk.f32.vlgmr.msra.gmra.mxu3 %vm1476_vm3, %v4379_v51 }
 0x42f   : > { %2966 = vmatpush.msra.mxu1 %v4328_v4  ;;  %3079 = vmatpush.msra.mxu2 %v4368_v14  ;;  %v3302_v4 = vpop.permute.xlu2 %3301 }
 0x430   : > { %3099 = vmatpush.msra.mxu3 %v4371_v21  ;;  %3573 = vmatmul.msk.f32.vlgmr.msrb.gmra.mxu0 %vm1476_vm3, %v4392_v25 }
 0x431   : > { %3584 = vmatpush.msk.msrb.mxu0 %vm3896_vm13, %v4417_v32 }
 0x435   : > { %3574 = vmatmul.msk.f32.vlgmr.msrb.gmra.mxu1 %vm1476_vm3, %v4392_v25 }
 0x436   : > { %3581 = vmatmul.msk.f32.vlgmr.msrb.gmra.mxu2 %vm1476_vm3, %v4260_v24  ;;  %3582 = vmatmul.msk.f32.vlgmr.msrb.gmra.mxu3 %vm1476_vm3, %v4260_v24 }
 0x437   : > { %3586 = vmatpush.msk.msrb.mxu1 %vm3879_vm10, %v4420_v28  ;;  %3595 = vmatpush.msk.msrb.mxu2 %vm3896_vm13, %v4451_v43 }
 0x438   : > { %3597 = vmatpush.msk.msrb.mxu3 %vm3879_vm10, %v4459_v54  ;;  %3579 = vmatmul.msk.f32.vlgmr.msra.gmra.mxu0 %vm1476_vm3, %v4247_v31 }
 0x439   : > { %3125 = vmatpush.msra.mxu0 %v4374_v46 }
 0x43a   : > { %v1497_v52 = vpop.f32.mrf.mxu0 }
 0x43d   : > { %3580 = vmatmul.msk.f32.vlgmr.msra.gmra.mxu1 %vm1476_vm3, %v4247_v31  ;;  %v3298_v31 = vpop.permute.xlu0 %3297 }
 0x43e   : > { %3589 = vmatmul.msk.f32.vlgmr.msra.gmra.mxu2 %vm1476_vm3, %v4318_v34  ;;  %3590 = vmatmul.msk.f32.vlgmr.msra.gmra.mxu3 %vm1476_vm3, %v4318_v34  ;;  %v3303_v34 = vsel %vm4638_vm6, %v3298_v31, %v3300_v45 }
 0x43f   : > { %3145 = vmatpush.msra.mxu1 %v4346_v20  ;;  %3263 = vmatpush.msra.mxu2 %v2867_v12 }
 0x440   : > { %3283 = vmatpush.msra.mxu3 %v2868_v13  ;;  %3585 = vmatmul.msk.f32.vlgmr.msrb.gmra.mxu0 %vm1476_vm3, %v4287_v37 }
 0x441   : > { %3217 = vmatpush.msrb.mxu0 %v2811_v33 }
 0x442   : > { %v1517_v24 = vpop.f32.mrf.mxu1  ;;  %v1540_v36 = vpop.f32.mrf.mxu0 }
 0x443   : > { %v1541_v10 = vadd.f32 %v1540_v36, %v1497_v52 }
 0x445   : > { %3587 = vmatmul.msk.f32.vlgmr.msrb.gmra.mxu1 %vm1476_vm3, %v4287_v37  ;;  %v3304_v37 = vsel %vm4639_vm7, %v3300_v45, %v3302_v4 }
 0x446   : > { %3596 = vmatmul.msk.f32.vlgmr.msrb.gmra.mxu2 %vm1476_vm3, %v4357_v16  ;;  %3237 = vmatpush.msrb.mxu1 %v2812_v35 }
 0x447   : > { %3598 = vmatmul.msk.f32.vlgmr.msrb.gmra.mxu3 %vm1476_vm3, %v4357_v16 }
 0x448   : > { %3592 = vmatmul.msk.f32.vlgmr.msra.gmra.mxu0 %vm1476_vm3, %v4311_v55 }
 0x449   : > { %3606 = vmatpush.msk.msra.mxu0 %vm3896_vm13, %v3303_v34 }
 0x44a   : > { %v1560_v50 = vpop.f32.mrf.mxu1  ;;  %v1601_v6 = vpop.f32.mrf.mxu0 }
 0x44b   : > { %v1561_v53 = vadd.f32 %v1560_v50, %v1517_v24  ;;  %v1624_v16 = vadd.f32 %v1601_v6, %v1541_v10 }
 0x44d   : > { %3593 = vmatmul.msk.f32.vlgmr.msra.gmra.mxu1 %vm1476_vm3, %v4311_v55 }
 0x44e   : > { %3603 = vmatmul.msk.f32.vlgmr.msra.gmra.mxu2 %vm1476_vm3, %v4392_v25  ;;  %3608 = vmatpush.msk.msra.mxu1 %vm3879_vm10, %v3304_v37  ;;  %v2456_v37 = vpop.permute.xlu1 %2455 }
 0x44f   : > { %3604 = vmatmul.msk.f32.vlgmr.msra.gmra.mxu3 %vm1476_vm3, %v4392_v25 }
 0x450   : > { %3600 = vmatmul.msk.f32.vlgmr.msrb.gmra.mxu0 %vm1476_vm3, %v4352_v15 }
 0x452   : > { %v1621_v62 = vpop.f32.mrf.mxu1 }
 0x453   : > { %v1625_v63 = vadd.f32 %v1621_v62, %v1561_v53 }
 0x454   : > { %v1666_v5 = vpop.f32.mrf.mxu0 }
 0x455   : > { %3601 = vmatmul.msk.f32.vlgmr.msrb.gmra.mxu1 %vm1476_vm3, %v4352_v15  ;;  %v1689_v41 = vadd.f32 %v1666_v5, %v1624_v16 }
 0x458   : > { %3607 = vmatmul.msk.f32.vlgmr.msra.gmra.mxu0 %vm1476_vm3, %v4379_v51  ;;  %v1729_v55 = vpop.f32.mrf.mxu2 }
 0x459   : > { %v1749_v56 = vpop.f32.mrf.mxu3  ;;  %v1752_v15 = vadd.f32 %v1729_v55, %v1689_v41 }
 0x45a   : > { %v1686_v7 = vpop.f32.mrf.mxu1 }
 0x45b   : > { %v1690_v1 = vadd.f32 %v1686_v7, %v1625_v63 }
 0x45c   : > { %v1786_v20 = vpop.f32.mrf.mxu0 }
 0x45d   : > { %3609 = vmatmul.msk.f32.vlgmr.msra.gmra.mxu1 %vm1476_vm3, %v4379_v51  ;;  %v1809_v14 = vadd.f32 %v1786_v20, %v1752_v15  ;;  %v1753_v21 = vadd.f32 %v1749_v56, %v1690_v1  ;;  %v1988_v51 = vpop.permute.xlu0 %1987 }
 0x460   : > { %v1845_v17 = vpop.f32.mrf.mxu2 }
 0x461   : > { %v1865_v22 = vpop.f32.mrf.mxu3  ;;  %v1868_v46 = vadd.f32 %v1845_v17, %v1809_v14 }
 0x462   : > { %v1806_v27 = vpop.f32.mrf.mxu1 }
 0x463   : > { %v1810_v59 = vadd.f32 %v1806_v27, %v1753_v21 }
 0x465   : > { %v1902_v25 = vpop.f32.mrf.mxu0  ;;  %v1869_v3 = vadd.f32 %v1865_v22, %v1810_v59 }
 0x466   : > { %v1925_v48 = vadd.f32 %v1902_v25, %v1868_v46 }
 0x469   : > { %v1959_v8 = vpop.f32.mrf.mxu2  ;;  %v1979_v23 = vpop.f32.mrf.mxu3 }
 0x46a   : > { %v1982_v26 = vadd.f32 %v1959_v8, %v1925_v48  ;;  %v1922_v29 = vpop.f32.mrf.mxu1 }
 0x46b   : > { %v1926_v32 = vadd.f32 %v1922_v29, %v1869_v3 }
 0x46c   : > { %v1990_v9 = vadd.f32 %v1988_v51, %v1982_v26 }
 0x46d   : > { %v2016_v28 = vpop.f32.mrf.mxu0  ;;  %v1983_v39 = vadd.f32 %v1979_v23, %v1926_v32 }
 0x46e   : > { %1992 = vst [vmem:[%s4608_s9] sm:$0xff] %v1990_v9 }
 0x46f   : > { %v1991_v40 = vadd.f32 %v1988_v51, %v1983_v39 }
 0x471   : > { %v2059_v43 = vpop.f32.mrf.mxu2  ;;  %1993 = vst [vmem:[%s4608_s9 + $0x8] sm:$0xff] %v1991_v40  ;;  %v2079_v49 = vpop.f32.mrf.mxu3 }
 0x472   : > { %v2036_v54 = vpop.f32.mrf.mxu1  ;;  %v2060_v58 = vadd.f32 %v2059_v43, %v2016_v28 }
 0x473   : > { %v2080_v42 = vadd.f32 %v2079_v49, %v2036_v54 }
 0x475   : > { %v2121_v57 = vpop.f32.mrf.mxu0 }
 0x476   : > { %v2144_v61 = vadd.f32 %v2121_v57, %v2060_v58  ;;  %v2920_v57 = vpop.permute.xlu2 %2919 }
 0x479   : > { %v2167_v18 = vpop.f32.mrf.mxu2  ;;  %v2187_v11 = vpop.f32.mrf.mxu3 }
 0x47a   : > { %v2141_v60 = vpop.f32.mrf.mxu1  ;;  %v2190_v19 = vadd.f32 %v2167_v18, %v2144_v61 }
 0x47b   : > { %v2145_v30 = vadd.f32 %v2141_v60, %v2080_v42 }
 0x47d   : > { %v2213_v47 = vpop.f32.mrf.mxu0  ;;  %v2191_v33 = vadd.f32 %v2187_v11, %v2145_v30 }
 0x47e   : > { %v2236_v44 = vadd.f32 %v2213_v47, %v2190_v19 }
 0x481   : > { %v2277_v38 = vpop.f32.mrf.mxu2  ;;  %v2297_v0 = vpop.f32.mrf.mxu3 }
 0x482   : > { %v2233_v12 = vpop.f32.mrf.mxu1  ;;  %v2300_v13 = vadd.f32 %v2277_v38, %v2236_v44 }
 0x483   : > { %v2237_v35 = vadd.f32 %v2233_v12, %v2191_v33 }
 0x485   : > { %v2323_v2 = vpop.f32.mrf.mxu0  ;;  %v2301_v34 = vadd.f32 %v2297_v0, %v2237_v35 }
 0x486   : > { %v2346_v52 = vadd.f32 %v2323_v2, %v2300_v13 }
 0x489   : > { %v2369_v24 = vpop.f32.mrf.mxu2  ;;  %v2389_v36 = vpop.f32.mrf.mxu3 }
 0x48a   : > { %v2392_v45 = vadd.f32 %v2369_v24, %v2346_v52  ;;  %v2343_v31 = vpop.f32.mrf.mxu1 }
 0x48b   : > { %v2347_v50 = vadd.f32 %v2343_v31, %v2301_v34 }
 0x48d   : > { %v2427_v6 = vpop.f32.mrf.mxu0  ;;  %v2393_v55 = vadd.f32 %v2389_v36, %v2347_v50 }
 0x48e   : > { %v2450_v4 = vadd.f32 %v2427_v6, %v2392_v45 }
 0x490   : > { %v2458_v62 = vadd.f32 %v2456_v37, %v2450_v4 }
 0x491   : > { %v2484_v5 = vpop.f32.mrf.mxu2  ;;  %v2504_v56 = vpop.f32.mrf.mxu3 }
 0x492   : > { %2460 = vst [vmem:[%s4608_s9 + $0x10] sm:$0xff] %v2458_v62  ;;  %v2447_v7 = vpop.f32.mrf.mxu1 }
 0x493   : > { %v2451_v10 = vadd.f32 %v2447_v7, %v2393_v55 }
 0x495   : > { %v2459_v53 = vadd.f32 %v2456_v37, %v2451_v10  ;;  %v2527_v20 = vpop.f32.mrf.mxu0 }
 0x496   : > { %v2528_v1 = vadd.f32 %v2527_v20, %v2484_v5 }
 0x497   : > { %2461 = vst [vmem:[%s4608_s9 + $0x18] sm:$0xff] %v2459_v53 }
 0x499   : > { %v2571_v16 = vpop.f32.mrf.mxu2  ;;  %v2591_v63 = vpop.f32.mrf.mxu3 }
 0x49a   : > { %v2547_v41 = vpop.f32.mrf.mxu1  ;;  %v2594_v22 = vadd.f32 %v2571_v16, %v2528_v1 }
 0x49b   : > { %v2548_v27 = vadd.f32 %v2547_v41, %v2504_v56 }
 0x49d   : > { %v2617_v17 = vpop.f32.mrf.mxu0  ;;  %v2595_v59 = vadd.f32 %v2591_v63, %v2548_v27  ;;  %v3358_v63 = vpop.permute.xlu0 %3357 }
 0x49e   : > { %v2640_v46 = vadd.f32 %v2617_v17, %v2594_v22 }
 0x4a1   : > { %v2663_v15 = vpop.f32.mrf.mxu2  ;;  %v2683_v14 = vpop.f32.mrf.mxu3 }
 0x4a2   : > { %v2637_v21 = vpop.f32.mrf.mxu1  ;;  %v2686_v25 = vadd.f32 %v2663_v15, %v2640_v46 }
 0x4a3   : > { %v2641_v8 = vadd.f32 %v2637_v21, %v2595_v59 }
 0x4a5   : > { %v2709_v48 = vpop.f32.mrf.mxu0  ;;  %v2687_v29 = vadd.f32 %v2683_v14, %v2641_v8 }
 0x4a6   : > { %v2732_v26 = vadd.f32 %v2709_v48, %v2686_v25 }
 0x4a9   : > { %v2773_v3 = vpop.f32.mrf.mxu2  ;;  %v2793_v23 = vpop.f32.mrf.mxu3 }
 0x4aa   : > { %v2729_v51 = vpop.f32.mrf.mxu1  ;;  %v2796_v9 = vadd.f32 %v2773_v3, %v2732_v26 }
 0x4ab   : > { %v2733_v32 = vadd.f32 %v2729_v51, %v2687_v29 }
 0x4ad   : > { %v2835_v28 = vpop.f32.mrf.mxu0  ;;  %v2797_v43 = vadd.f32 %v2793_v23, %v2733_v32 }
 0x4ae   : > { %v2858_v39 = vadd.f32 %v2835_v28, %v2796_v9 }
 0x4b1   : > { %v2891_v40 = vpop.f32.mrf.mxu2  ;;  %v2911_v54 = vpop.f32.mrf.mxu3 }
 0x4b2   : > { %v2914_v49 = vadd.f32 %v2891_v40, %v2858_v39  ;;  %v2855_v58 = vpop.f32.mrf.mxu1 }
 0x4b3   : > { %v2859_v11 = vadd.f32 %v2855_v58, %v2797_v43 }
 0x4b4   : > { %v2922_v18 = vadd.f32 %v2920_v57, %v2914_v49 }
 0x4b5   : > { %v2948_v60 = vpop.f32.mrf.mxu0  ;;  %v2915_v61 = vadd.f32 %v2911_v54, %v2859_v11 }
 0x4b6   : > { %2924 = vst [vmem:[%s4608_s9 + $0x20] sm:$0xff] %v2922_v18 }
 0x4b7   : > { %v2923_v47 = vadd.f32 %v2920_v57, %v2915_v61 }
 0x4b9   : > { %v2991_v19 = vpop.f32.mrf.mxu2  ;;  %2925 = vst [vmem:[%s4608_s9 + $0x28] sm:$0xff] %v2923_v47  ;;  %v3011_v38 = vpop.f32.mrf.mxu3 }
 0x4ba   : > { %v2968_v42 = vpop.f32.mrf.mxu1  ;;  %v2992_v0 = vadd.f32 %v2991_v19, %v2948_v60 }
 0x4bb   : > { %v3012_v52 = vadd.f32 %v3011_v38, %v2968_v42 }
 0x4bd   : > { %v3035_v30 = vpop.f32.mrf.mxu0 }
 0x4be   : > { %v3058_v33 = vadd.f32 %v3035_v30, %v2992_v0 }
 0x4c1   : > { %v3081_v44 = vpop.f32.mrf.mxu2  ;;  %v3101_v13 = vpop.f32.mrf.mxu3 }
 0x4c2   : > { %v3055_v12 = vpop.f32.mrf.mxu1  ;;  %v3104_v35 = vadd.f32 %v3081_v44, %v3058_v33 }
 0x4c3   : > { %v3059_v36 = vadd.f32 %v3055_v12, %v3012_v52 }
 0x4c5   : > { %v3127_v2 = vpop.f32.mrf.mxu0  ;;  %v3105_v6 = vadd.f32 %v3101_v13, %v3059_v36 }
 0x4c6   : > { %v3150_v45 = vadd.f32 %v3127_v2, %v3104_v35 }
 0x4c9   : > { %v3173_v24 = vpop.f32.mrf.mxu2 }
 0x4ca   : > { %v3147_v31 = vpop.f32.mrf.mxu1  ;;  %v3196_v34 = vadd.f32 %v3173_v24, %v3150_v45  ;;  %v3193_v50 = vpop.f32.mrf.mxu3 }
 0x4cb   : > { %v3151_v37 = vadd.f32 %v3147_v31, %v3105_v6 }
 0x4cd   : > { %v3219_v4 = vpop.f32.mrf.mxu0  ;;  %v3197_v7 = vadd.f32 %v3193_v50, %v3151_v37 }
 0x4ce   : > { %v3242_v62 = vadd.f32 %v3219_v4, %v3196_v34 }
 0x4d1   : > { %v3265_v5 = vpop.f32.mrf.mxu2 }
 0x4d2   : > { %v3288_v55 = vadd.f32 %v3265_v5, %v3242_v62  ;;  %v3239_v56 = vpop.f32.mrf.mxu1  ;;  %v3285_v16 = vpop.f32.mrf.mxu3 }
 0x4d3   : > { %v3243_v10 = vadd.f32 %v3239_v56, %v3197_v7 }
 0x4d5   : > { %v3329_v53 = vpop.f32.mrf.mxu0  ;;  %v3289_v1 = vadd.f32 %v3285_v16, %v3243_v10 }
 0x4d6   : > { %v3352_v20 = vadd.f32 %v3329_v53, %v3288_v55 }
 0x4d8   : > { %v3360_v41 = vadd.f32 %v3358_v63, %v3352_v20 }
 0x4da   : > { %3362 = vst [vmem:[%s4608_s9 + $0x30] sm:$0xff] %v3360_v41  ;;  %v3349_v17 = vpop.f32.mrf.mxu1 }
 0x4db   : > { %v3353_v22 = vadd.f32 %v3349_v17, %v3289_v1 }
 0x4dd   : > { %v3361_v15 = vadd.f32 %v3358_v63, %v3353_v22 }
 0x4df   : > { %3363 = vst [vmem:[%s4608_s9 + $0x38] sm:$0xff] %v3361_v15 }
 0x4e0 PF: > { %s17_s24 = sadd.s32 1, %s3743_s24  }
 0x4e1   : > { %p14_p4 = scmp.ge.s32.totalorder %s17_s24, 4  }
 0x4e3   :  { %16 = sbr.rel (!%p14_p4) target bundleno = 1 (0x1), region = 102 }

</bundles_post_ra>
